<compile_context>
chip_gen: v5e
topology: v5e:2x2
jax: 0.10.0
libtpu: 0.0.40
codegen_flags: <defaults>
</compile_context>

<pallas_src>
import functools
import math

import jax
import jax.numpy as jnp
from jax.experimental import pallas as pl
from jax.experimental.pallas import tpu as pltpu


def _round_up(x, m):
    return ((x + m - 1) // m) * m


# ----------------------------------------------------------------------------
# Fused forward kernel.
#   x_ref    : (T*Bp, Dp)      time-major flattened + padded LSTM input
#   nf_ref   : (G*N, Fp)       flattened node features (G = T*Bp)
#   a_ref    : (G*N, G*N)      block-diagonal normalized adjacency
#   p_ref    : (G, G*N)        block row-mean pooling matrix
#   rec_ref  : (Dp+Gh+2H+8, 8H) packed recurrence slab
#   gcn_ref  : (Fp+8, Gh)      packed GCN slab (W_gcn ; b_gcn)
#   head_ref : (2H+2Wh+8, Wh)  packed head/fusion slab
#   out_ref  : (Bp, 2)
# ----------------------------------------------------------------------------
def fused_kernel(x_ref, nf_ref, a_ref, p_ref, rec_ref, gcn_ref, head_ref,
                 out_ref, *, T, Bp, H, Dp, Gh, Fp, Wh):
    f32 = jnp.float32

    # ---- GCN branch: (X W) -> A_bd (XW) -> ReLU -> mean pool (matmul) -------
    wg = gcn_ref[0:Fp, :]                                         # (Fp, Gh)
    bg = gcn_ref[Fp:Fp + 1, :]                                    # (1, Gh)
    xw = jnp.dot(nf_ref[...], wg, preferred_element_type=f32)     # (G*N, Gh)
    h_nodes = jnp.maximum(
        jnp.dot(a_ref[...], xw, preferred_element_type=f32) + bg, 0.0)
    pooled = jnp.dot(p_ref[...], h_nodes,
                     preferred_element_type=f32)                  # (T*Bp, Gh)

    # ---- Hoisted fused input projection for BOTH LSTMs -----------------------
    o_ih2 = Dp
    o_hh = Dp + Gh
    o_b = Dp + Gh + 2 * H
    w_ih1 = rec_ref[0:Dp, :]                                      # (Dp, 8H)
    w_ih2 = rec_ref[o_ih2:o_hh, :]                                # (Gh, 8H)
    w_hh = rec_ref[o_hh:o_b, :]                                   # (2H, 8H) block-diag
    b_all = rec_ref[o_b:o_b + 1, :]                               # (1, 8H)

    gx = (jnp.dot(x_ref[...], w_ih1, preferred_element_type=f32)
          + jnp.dot(pooled, w_ih2, preferred_element_type=f32)
          + b_all)                                                # (T*Bp, 8H)

    # ---- Lane-stacked recurrence: both LSTMs advance together per step -------
    # gate lane layout: [ i1 i2 | f1 f2 | o1 o2 | g1 g2 ], each block H wide.
    h = jnp.zeros((Bp, 2 * H), f32)
    c = jnp.zeros((Bp, 2 * H), f32)
    for t in range(T):                       # T static & small -> fully unrolled
        r = t * Bp                           # multiple of 8 -> sublane-aligned
        pre = gx[r:r + Bp, :] + jnp.dot(h, w_hh, preferred_element_type=f32)
        s = jax.nn.sigmoid(pre[:, :6 * H])   # one EUP pass for i, f, o (both LSTMs)
        g = jnp.tanh(pre[:, 6 * H:])         # one EUP pass for g (both LSTMs)
        c = s[:, 2 * H:4 * H] * c + s[:, 0:2 * H] * g
        h = s[:, 4 * H:6 * H] * jnp.tanh(c)

    # ---- heads + fusion MLP (dropout = identity at inference) ----------------
    hW2 = 2 * H
    hW3 = 2 * H + Wh
    hb = 2 * H + 2 * Wh
    W1 = head_ref[0:hW2, :]                                       # (2H, Wh) block-diag heads
    W2 = head_ref[hW2:hW3, :]                                     # (Wh, Wh) fusion layer 1
    W3 = head_ref[hW3:hb, 0:2]                                    # (Wh, 2)  fusion layer 2
    bh = head_ref[hb:hb + 1, :]
    bf1 = head_ref[hb + 1:hb + 2, :]
    bf2 = head_ref[hb + 2:hb + 3, 0:2]

    combined = jnp.dot(h, W1, preferred_element_type=f32) + bh    # (Bp, Wh) = [coords | feat | 0]
    fused = jnp.maximum(
        jnp.dot(combined, W2, preferred_element_type=f32) + bf1, 0.0)
    out_ref[...] = jnp.dot(fused, W3, preferred_element_type=f32) + bf2


# ----------------------------------------------------------------------------
# Wrapper: all layout plumbing (padding, time-major flatten, block-diag adj,
# pooling matrix, weight slabs) happens here at trace time.
# ----------------------------------------------------------------------------
def hybrid_forward(lstm_input, adj_norm, node_feats, params):
    """
    lstm_input : (B, T, D)        batch-first, like the PyTorch module
    adj_norm   : (B, T, N, N)     normalized dense adjacency per graph
    node_feats : (B, T, N, F)     node features per graph
    returns    : (B, 2)           predicted ball coordinates
    """
    f32 = jnp.float32
    B, T, D = lstm_input.shape
    N = adj_norm.shape[2]
    F = node_feats.shape[3]
    H = params["w_hh1"].shape[0]
    Gh = params["w_gcn"].shape[1]
    Fh = params["w_f2"].shape[0]

    Bp = max(8, _round_up(B, 8))                 # pad batch to a sublane multiple
    Dp = max(8, _round_up(D, 8))
    Fp = max(8, _round_up(F, 8))
    Wh = max(8, _round_up(max(Gh + 2, Fh), 8))   # head/fusion slab width
    G = T * Bp

    def pad_b(x):                                # zero-pad batch axis to Bp
        return jnp.pad(x, [(0, Bp - B)] + [(0, 0)] * (x.ndim - 1))

    # --- time-major flattened inputs (row g = t*Bp + b) ------------------------
    x_flat = jnp.transpose(pad_b(lstm_input), (1, 0, 2)).reshape(T * Bp, D)
    x_flat = jnp.pad(x_flat, ((0, 0), (0, Dp - D)))                    # (T*Bp, Dp)

    adj_g = jnp.transpose(pad_b(adj_norm), (1, 0, 2, 3)).reshape(G, N, N)
    a_bd = (adj_g[:, :, None, :] *
            jnp.eye(G, dtype=f32)[:, None, :, None]).reshape(G * N, G * N)

    nf_g = jnp.transpose(pad_b(node_feats), (1, 0, 2, 3)).reshape(G * N, F)
    nf_g = jnp.pad(nf_g, ((0, 0), (0, Fp - F)))                        # (G*N, Fp)

    p_pool = (jnp.eye(G, dtype=f32)[:, :, None] *
              jnp.full((N,), 1.0 / N, f32)).reshape(G, G * N)          # (G, G*N)

    # --- recurrence slab: gate lane layout [i1 i2 | f1 f2 | o1 o2 | g1 g2] -----
    def place(w, which):   # w: (rows, 4H) in torch gate order i,f,g,o
        gi, gf, gg, go = w[:, 0:H], w[:, H:2 * H], w[:, 2 * H:3 * H], w[:, 3 * H:4 * H]
        z = jnp.zeros_like(gi)
        blocks = [gi, z, gf, z, go, z, gg, z] if which == 0 else [z, gi, z, gf, z, go, z, gg]
        return jnp.concatenate(blocks, axis=1)                         # (rows, 8H)

    w_ih1_p = jnp.pad(place(params["w_ih1"], 0), ((0, Dp - D), (0, 0)))   # (Dp, 8H)
    w_ih2_p = place(params["w_ih2"], 1)                                   # (Gh, 8H)
    w_hh_bd = jnp.concatenate([place(params["w_hh1"], 0),
                               place(params["w_hh2"], 1)], axis=0)        # (2H, 8H)
    b_all = place(params["b1"], 0) + place(params["b2"], 1)               # (1, 8H)
    rec_slab = jnp.concatenate(
        [w_ih1_p, w_ih2_p, w_hh_bd, jnp.pad(b_all, ((0, 7), (0, 0)))], axis=0)

    # --- GCN slab --------------------------------------------------------------
    gcn_slab = jnp.concatenate(
        [jnp.pad(params["w_gcn"], ((0, Fp - F), (0, 0))),
         params["b_gcn"],
         jnp.zeros((7, Gh), f32)], axis=0)                                # (Fp+8, Gh)

    # --- head / fusion slab (width Wh) ------------------------------------------
    def padw(x, rows, cols):
        return jnp.pad(x, ((0, rows - x.shape[0]), (0, cols - x.shape[1])))

    W1 = jnp.concatenate(
        [padw(params["w_lc"], H, Wh),                                    # coords cols 0:2
         jnp.pad(params["w_go"], ((0, 0), (2, Wh - 2 - Gh)))], axis=0)   # feat cols 2:2+Gh
    W2 = padw(params["w_f1"], Wh, Wh)
    W3 = padw(params["w_f2"], Wh, Wh)
    bh = jnp.pad(jnp.concatenate([params["b_lc"], params["b_go"]], axis=1),
                 ((0, 0), (0, Wh - 2 - Gh)))
    bf1 = padw(params["b_f1"], 1, Wh)
    bf2 = padw(params["b_f2"], 1, Wh)
    n_rows = 2 * H + 2 * Wh + 3
    head_slab = jnp.concatenate(
        [W1, W2, W3, bh, bf1, bf2,
         jnp.zeros(((-n_rows) % 8, Wh), f32)], axis=0)                    # (2H+2Wh+8, Wh)

    vmem = pl.BlockSpec(memory_space=pltpu.MemorySpace.VMEM)
    args = (x_flat, nf_g, a_bd, p_pool, rec_slab, gcn_slab, head_slab)
    kernel = functools.partial(fused_kernel, T=T, Bp=Bp, H=H, Dp=Dp, Gh=Gh,
                               Fp=Fp, Wh=Wh)
    res = pl.pallas_call(
        kernel,
        out_shape=jax.ShapeDtypeStruct((Bp, 2), jnp.float32),
        in_specs=[vmem] * len(args),
        out_specs=vmem,
    )(*args)
    return res[:B]


# ----------------------------------------------------------------------------
# Deterministic parameter init (PyTorch-style uniform(-1/sqrt(fan_in), ...)).
# Canonical layouts: W (in_features, out_features); b (1, out_features);
# LSTM gate order i, f, g, o with a single folded bias (b_ih + b_hh).
# ----------------------------------------------------------------------------
def init_params(key, d_lstm, f_node, H, Gh, Fh):
    ks = jax.random.split(key, 16)

    def u(k, shape, fan_in):
        bound = 1.0 / math.sqrt(fan_in)
        return jax.random.uniform(k, shape, jnp.float32, -bound, bound)

    return {
        # BallPredictorLSTM
        "w_ih1": u(ks[0], (d_lstm, 4 * H), H),
        "w_hh1": u(ks[1], (H, 4 * H), H),
        "b1":    u(ks[2], (1, 4 * H), H),
        "w_lc":  u(ks[3], (H, 2), H),
        "b_lc":  u(ks[4], (1, 2), H),
        # TemporalGNN
        "w_gcn": u(ks[5], (f_node, Gh), f_node),
        "b_gcn": u(ks[6], (1, Gh), f_node),
        "w_ih2": u(ks[7], (Gh, 4 * H), H),
        "w_hh2": u(ks[8], (H, 4 * H), H),
        "b2":    u(ks[9], (1, 4 * H), H),
        "w_go":  u(ks[10], (H, Gh), H),
        "b_go":  u(ks[11], (1, Gh), H),
        # fusion
        "w_f1":  u(ks[12], (Gh + 2, Fh), Gh + 2),
        "b_f1":  u(ks[13], (1, Fh), Gh + 2),
        "w_f2":  u(ks[14], (Fh, 2), Fh),
        "b_f2":  u(ks[15], (1, 2), Fh),
    }


def make_normalized_adjacency(key, B, T, N):
    """Dense GCN-normalized adjacency: D^-1/2 (A + I) D^-1/2."""
    a = (jax.random.uniform(key, (B, T, N, N)) < 0.4).astype(jnp.float32)
    a = jnp.maximum(a, jnp.swapaxes(a, -1, -2))                # symmetrize
    a = a + jnp.eye(N, dtype=jnp.float32)                      # self-loops
    deg = jnp.sum(a, axis=-1)                                  # (B, T, N)
    d_inv_sqrt = 1.0 / jnp.sqrt(deg)
    return a * d_inv_sqrt[..., :, None] * d_inv_sqrt[..., None, :]


if __name__ == "__main__":
    # Small, self-consistent shapes.
    B, T = 2, 8                 # batch, sequence length
    D_LSTM = 6                  # lstm_input_size
    N_NODES, F_NODE = 8, 4      # nodes per graph, gnn_input_dim
    H = 32                      # lstm_hidden_size
    GH = 16                     # gnn_hidden_dim
    FH = 16                     # fusion_hidden_size

    root = jax.random.PRNGKey(0)
    k_par, k_x, k_adj, k_nf = jax.random.split(root, 4)

    params = init_params(k_par, D_LSTM, F_NODE, H, GH, FH)
    lstm_input = jax.random.normal(k_x, (B, T, D_LSTM), jnp.float32)
    adj_norm = make_normalized_adjacency(k_adj, B, T, N_NODES)
    node_feats = jax.random.normal(k_nf, (B, T, N_NODES, F_NODE), jnp.float32)

    fwd = jax.jit(hybrid_forward)
    pred = fwd(lstm_input, adj_norm, node_feats, params)
    pred = jax.block_until_ready(pred)

    assert pred.shape == (B, 2), pred.shape
    assert bool(jnp.all(jnp.isfinite(pred)))
    print("KERNEL_OK")
</pallas_src>

<mosaic_0001>
module attributes {stable_mosaic.version = 11 : i64} {
  func.func @fused_kernel(%arg0: memref<64x8xf32, #tpu.memory_space<vmem>>, %arg1: memref<512x8xf32, #tpu.memory_space<vmem>>, %arg2: memref<512x512xf32, #tpu.memory_space<vmem>>, %arg3: memref<64x512xf32, #tpu.memory_space<vmem>>, %arg4: memref<96x256xf32, #tpu.memory_space<vmem>>, %arg5: memref<16x16xf32, #tpu.memory_space<vmem>>, %arg6: memref<120x24xf32, #tpu.memory_space<vmem>>, %arg7: memref<8x2xf32, #tpu.memory_space<vmem>>) attributes {dimension_semantics = [], scalar_prefetch = 0 : i64, scratch_operands = 0 : i64, tpu.core_type = #tpu.core_type<tc>} {
    %c0 = arith.constant 0 : index
    %c0_0 = arith.constant 0 : index
    %0 = vector.load %arg5[%c0, %c0_0] : memref<16x16xf32, #tpu.memory_space<vmem>>, vector<8x16xf32>
    %c8 = arith.constant 8 : index
    %c0_1 = arith.constant 0 : index
    %1 = vector.load %arg5[%c8, %c0_1] : memref<16x16xf32, #tpu.memory_space<vmem>>, vector<1x16xf32>
    %c0_2 = arith.constant 0 : index
    %c0_3 = arith.constant 0 : index
    %2 = vector.load %arg1[%c0_2, %c0_3] : memref<512x8xf32, #tpu.memory_space<vmem>>, vector<512x8xf32>
    %cst = arith.constant dense<0.000000e+00> : vector<512x16xf32>
    %3 = tpu.matmul %2, %0, %cst {dimension_numbers = #tpu.dot_dimension_numbers<[1], [0], [0], [1], [0, 0, 1, 1], [], []>} : vector<512x8xf32>, vector<8x16xf32>, vector<512x16xf32> -> vector<512x16xf32>
    %c0_4 = arith.constant 0 : index
    %c0_5 = arith.constant 0 : index
    %4 = vector.load %arg2[%c0_4, %c0_5] : memref<512x512xf32, #tpu.memory_space<vmem>>, vector<512x512xf32>
    %cst_6 = arith.constant dense<0.000000e+00> : vector<512x16xf32>
    %5 = tpu.matmul %4, %3, %cst_6 {dimension_numbers = #tpu.dot_dimension_numbers<[1], [0], [0], [1], [0, 0, 1, 1], [], []>} : vector<512x512xf32>, vector<512x16xf32>, vector<512x16xf32> -> vector<512x16xf32>
    %6 = vector.broadcast %1 : vector<1x16xf32> to vector<512x16xf32>
    %7 = arith.addf %5, %6 : vector<512x16xf32>
    %cst_7 = arith.constant 0.000000e+00 : f32
    %8 = vector.broadcast %cst_7 : f32 to vector<512x16xf32>
    %9 = arith.maximumf %7, %8 : vector<512x16xf32>
    %c0_8 = arith.constant 0 : index
    %c0_9 = arith.constant 0 : index
    %10 = vector.load %arg3[%c0_8, %c0_9] : memref<64x512xf32, #tpu.memory_space<vmem>>, vector<64x512xf32>
    %cst_10 = arith.constant dense<0.000000e+00> : vector<64x16xf32>
    %11 = tpu.matmul %10, %9, %cst_10 {dimension_numbers = #tpu.dot_dimension_numbers<[1], [0], [0], [1], [0, 0, 1, 1], [], []>} : vector<64x512xf32>, vector<512x16xf32>, vector<64x16xf32> -> vector<64x16xf32>
    %c0_11 = arith.constant 0 : index
    %c0_12 = arith.constant 0 : index
    %12 = vector.load %arg4[%c0_11, %c0_12] : memref<96x256xf32, #tpu.memory_space<vmem>>, vector<8x256xf32>
    %c8_13 = arith.constant 8 : index
    %c0_14 = arith.constant 0 : index
    %13 = vector.load %arg4[%c8_13, %c0_14] : memref<96x256xf32, #tpu.memory_space<vmem>>, vector<16x256xf32>
    %c24 = arith.constant 24 : index
    %c0_15 = arith.constant 0 : index
    %14 = vector.load %arg4[%c24, %c0_15] : memref<96x256xf32, #tpu.memory_space<vmem>>, vector<64x256xf32>
    %c88 = arith.constant 88 : index
    %c0_16 = arith.constant 0 : index
    %15 = vector.load %arg4[%c88, %c0_16] : memref<96x256xf32, #tpu.memory_space<vmem>>, vector<1x256xf32>
    %c0_17 = arith.constant 0 : index
    %c0_18 = arith.constant 0 : index
    %16 = vector.load %arg0[%c0_17, %c0_18] : memref<64x8xf32, #tpu.memory_space<vmem>>, vector<64x8xf32>
    %cst_19 = arith.constant dense<0.000000e+00> : vector<64x256xf32>
    %17 = tpu.matmul %16, %12, %cst_19 {dimension_numbers = #tpu.dot_dimension_numbers<[1], [0], [0], [1], [0, 0, 1, 1], [], []>} : vector<64x8xf32>, vector<8x256xf32>, vector<64x256xf32> -> vector<64x256xf32>
    %cst_20 = arith.constant dense<0.000000e+00> : vector<64x256xf32>
    %18 = tpu.matmul %11, %13, %cst_20 {dimension_numbers = #tpu.dot_dimension_numbers<[1], [0], [0], [1], [0, 0, 1, 1], [], []>} : vector<64x16xf32>, vector<16x256xf32>, vector<64x256xf32> -> vector<64x256xf32>
    %19 = arith.addf %17, %18 : vector<64x256xf32>
    %20 = vector.broadcast %15 : vector<1x256xf32> to vector<64x256xf32>
    %21 = arith.addf %19, %20 : vector<64x256xf32>
    %cst_21 = arith.constant 0.000000e+00 : f32
    %22 = vector.broadcast %cst_21 : f32 to vector<8x64xf32>
    %cst_22 = arith.constant 0.000000e+00 : f32
    %23 = vector.broadcast %cst_22 : f32 to vector<8x64xf32>
    %24 = vector.extract_strided_slice %21 {offsets = [0, 0], sizes = [8, 256], strides = [1, 1]} : vector<64x256xf32> to vector<8x256xf32>
    %cst_23 = arith.constant dense<0.000000e+00> : vector<8x256xf32>
    %25 = tpu.matmul %22, %14, %cst_23 {dimension_numbers = #tpu.dot_dimension_numbers<[1], [0], [0], [1], [0, 0, 1, 1], [], []>} : vector<8x64xf32>, vector<64x256xf32>, vector<8x256xf32> -> vector<8x256xf32>
    %26 = arith.addf %24, %25 : vector<8x256xf32>
    %27 = vector.extract_strided_slice %26 {offsets = [0, 0], sizes = [8, 192], strides = [1, 1]} : vector<8x256xf32> to vector<8x192xf32>
    %28 = arith.negf %27 : vector<8x192xf32>
    %29 = math.exp %28 : vector<8x192xf32>
    %cst_24 = arith.constant 1.000000e+00 : f32
    %30 = vector.broadcast %cst_24 : f32 to vector<8x192xf32>
    %31 = arith.addf %30, %29 : vector<8x192xf32>
    %32 = arith.divf %30, %31 : vector<8x192xf32>
    %33 = vector.extract_strided_slice %26 {offsets = [0, 192], sizes = [8, 64], strides = [1, 1]} : vector<8x256xf32> to vector<8x64xf32>
    %34 = math.tanh %33 : vector<8x64xf32>
    %35 = vector.extract_strided_slice %32 {offsets = [0, 64], sizes = [8, 64], strides = [1, 1]} : vector<8x192xf32> to vector<8x64xf32>
    %36 = arith.mulf %35, %23 : vector<8x64xf32>
    %37 = vector.extract_strided_slice %32 {offsets = [0, 0], sizes = [8, 64], strides = [1, 1]} : vector<8x192xf32> to vector<8x64xf32>
    %38 = arith.mulf %37, %34 : vector<8x64xf32>
    %39 = arith.addf %36, %38 : vector<8x64xf32>
    %40 = vector.extract_strided_slice %32 {offsets = [0, 128], sizes = [8, 64], strides = [1, 1]} : vector<8x192xf32> to vector<8x64xf32>
    %41 = math.tanh %39 : vector<8x64xf32>
    %42 = arith.mulf %40, %41 : vector<8x64xf32>
    %43 = vector.extract_strided_slice %21 {offsets = [8, 0], sizes = [8, 256], strides = [1, 1]} : vector<64x256xf32> to vector<8x256xf32>
    %cst_25 = arith.constant dense<0.000000e+00> : vector<8x256xf32>
    %44 = tpu.matmul %42, %14, %cst_25 {dimension_numbers = #tpu.dot_dimension_numbers<[1], [0], [0], [1], [0, 0, 1, 1], [], []>} : vector<8x64xf32>, vector<64x256xf32>, vector<8x256xf32> -> vector<8x256xf32>
    %45 = arith.addf %43, %44 : vector<8x256xf32>
    %46 = vector.extract_strided_slice %45 {offsets = [0, 0], sizes = [8, 192], strides = [1, 1]} : vector<8x256xf32> to vector<8x192xf32>
    %47 = arith.negf %46 : vector<8x192xf32>
    %48 = math.exp %47 : vector<8x192xf32>
    %cst_26 = arith.constant 1.000000e+00 : f32
    %49 = vector.broadcast %cst_26 : f32 to vector<8x192xf32>
    %50 = arith.addf %49, %48 : vector<8x192xf32>
    %51 = arith.divf %49, %50 : vector<8x192xf32>
    %52 = vector.extract_strided_slice %45 {offsets = [0, 192], sizes = [8, 64], strides = [1, 1]} : vector<8x256xf32> to vector<8x64xf32>
    %53 = math.tanh %52 : vector<8x64xf32>
    %54 = vector.extract_strided_slice %51 {offsets = [0, 64], sizes = [8, 64], strides = [1, 1]} : vector<8x192xf32> to vector<8x64xf32>
    %55 = arith.mulf %54, %39 : vector<8x64xf32>
    %56 = vector.extract_strided_slice %51 {offsets = [0, 0], sizes = [8, 64], strides = [1, 1]} : vector<8x192xf32> to vector<8x64xf32>
    %57 = arith.mulf %56, %53 : vector<8x64xf32>
    %58 = arith.addf %55, %57 : vector<8x64xf32>
    %59 = vector.extract_strided_slice %51 {offsets = [0, 128], sizes = [8, 64], strides = [1, 1]} : vector<8x192xf32> to vector<8x64xf32>
    %60 = math.tanh %58 : vector<8x64xf32>
    %61 = arith.mulf %59, %60 : vector<8x64xf32>
    %62 = vector.extract_strided_slice %21 {offsets = [16, 0], sizes = [8, 256], strides = [1, 1]} : vector<64x256xf32> to vector<8x256xf32>
    %cst_27 = arith.constant dense<0.000000e+00> : vector<8x256xf32>
    %63 = tpu.matmul %61, %14, %cst_27 {dimension_numbers = #tpu.dot_dimension_numbers<[1], [0], [0], [1], [0, 0, 1, 1], [], []>} : vector<8x64xf32>, vector<64x256xf32>, vector<8x256xf32> -> vector<8x256xf32>
    %64 = arith.addf %62, %63 : vector<8x256xf32>
    %65 = vector.extract_strided_slice %64 {offsets = [0, 0], sizes = [8, 192], strides = [1, 1]} : vector<8x256xf32> to vector<8x192xf32>
    %66 = arith.negf %65 : vector<8x192xf32>
    %67 = math.exp %66 : vector<8x192xf32>
    %cst_28 = arith.constant 1.000000e+00 : f32
    %68 = vector.broadcast %cst_28 : f32 to vector<8x192xf32>
    %69 = arith.addf %68, %67 : vector<8x192xf32>
    %70 = arith.divf %68, %69 : vector<8x192xf32>
    %71 = vector.extract_strided_slice %64 {offsets = [0, 192], sizes = [8, 64], strides = [1, 1]} : vector<8x256xf32> to vector<8x64xf32>
    %72 = math.tanh %71 : vector<8x64xf32>
    %73 = vector.extract_strided_slice %70 {offsets = [0, 64], sizes = [8, 64], strides = [1, 1]} : vector<8x192xf32> to vector<8x64xf32>
    %74 = arith.mulf %73, %58 : vector<8x64xf32>
    %75 = vector.extract_strided_slice %70 {offsets = [0, 0], sizes = [8, 64], strides = [1, 1]} : vector<8x192xf32> to vector<8x64xf32>
    %76 = arith.mulf %75, %72 : vector<8x64xf32>
    %77 = arith.addf %74, %76 : vector<8x64xf32>
    %78 = vector.extract_strided_slice %70 {offsets = [0, 128], sizes = [8, 64], strides = [1, 1]} : vector<8x192xf32> to vector<8x64xf32>
    %79 = math.tanh %77 : vector<8x64xf32>
    %80 = arith.mulf %78, %79 : vector<8x64xf32>
    %81 = vector.extract_strided_slice %21 {offsets = [24, 0], sizes = [8, 256], strides = [1, 1]} : vector<64x256xf32> to vector<8x256xf32>
    %cst_29 = arith.constant dense<0.000000e+00> : vector<8x256xf32>
    %82 = tpu.matmul %80, %14, %cst_29 {dimension_numbers = #tpu.dot_dimension_numbers<[1], [0], [0], [1], [0, 0, 1, 1], [], []>} : vector<8x64xf32>, vector<64x256xf32>, vector<8x256xf32> -> vector<8x256xf32>
    %83 = arith.addf %81, %82 : vector<8x256xf32>
    %84 = vector.extract_strided_slice %83 {offsets = [0, 0], sizes = [8, 192], strides = [1, 1]} : vector<8x256xf32> to vector<8x192xf32>
    %85 = arith.negf %84 : vector<8x192xf32>
    %86 = math.exp %85 : vector<8x192xf32>
    %cst_30 = arith.constant 1.000000e+00 : f32
    %87 = vector.broadcast %cst_30 : f32 to vector<8x192xf32>
    %88 = arith.addf %87, %86 : vector<8x192xf32>
    %89 = arith.divf %87, %88 : vector<8x192xf32>
    %90 = vector.extract_strided_slice %83 {offsets = [0, 192], sizes = [8, 64], strides = [1, 1]} : vector<8x256xf32> to vector<8x64xf32>
    %91 = math.tanh %90 : vector<8x64xf32>
    %92 = vector.extract_strided_slice %89 {offsets = [0, 64], sizes = [8, 64], strides = [1, 1]} : vector<8x192xf32> to vector<8x64xf32>
    %93 = arith.mulf %92, %77 : vector<8x64xf32>
    %94 = vector.extract_strided_slice %89 {offsets = [0, 0], sizes = [8, 64], strides = [1, 1]} : vector<8x192xf32> to vector<8x64xf32>
    %95 = arith.mulf %94, %91 : vector<8x64xf32>
    %96 = arith.addf %93, %95 : vector<8x64xf32>
    %97 = vector.extract_strided_slice %89 {offsets = [0, 128], sizes = [8, 64], strides = [1, 1]} : vector<8x192xf32> to vector<8x64xf32>
    %98 = math.tanh %96 : vector<8x64xf32>
    %99 = arith.mulf %97, %98 : vector<8x64xf32>
    %100 = vector.extract_strided_slice %21 {offsets = [32, 0], sizes = [8, 256], strides = [1, 1]} : vector<64x256xf32> to vector<8x256xf32>
    %cst_31 = arith.constant dense<0.000000e+00> : vector<8x256xf32>
    %101 = tpu.matmul %99, %14, %cst_31 {dimension_numbers = #tpu.dot_dimension_numbers<[1], [0], [0], [1], [0, 0, 1, 1], [], []>} : vector<8x64xf32>, vector<64x256xf32>, vector<8x256xf32> -> vector<8x256xf32>
    %102 = arith.addf %100, %101 : vector<8x256xf32>
    %103 = vector.extract_strided_slice %102 {offsets = [0, 0], sizes = [8, 192], strides = [1, 1]} : vector<8x256xf32> to vector<8x192xf32>
    %104 = arith.negf %103 : vector<8x192xf32>
    %105 = math.exp %104 : vector<8x192xf32>
    %cst_32 = arith.constant 1.000000e+00 : f32
    %106 = vector.broadcast %cst_32 : f32 to vector<8x192xf32>
    %107 = arith.addf %106, %105 : vector<8x192xf32>
    %108 = arith.divf %106, %107 : vector<8x192xf32>
    %109 = vector.extract_strided_slice %102 {offsets = [0, 192], sizes = [8, 64], strides = [1, 1]} : vector<8x256xf32> to vector<8x64xf32>
    %110 = math.tanh %109 : vector<8x64xf32>
    %111 = vector.extract_strided_slice %108 {offsets = [0, 64], sizes = [8, 64], strides = [1, 1]} : vector<8x192xf32> to vector<8x64xf32>
    %112 = arith.mulf %111, %96 : vector<8x64xf32>
    %113 = vector.extract_strided_slice %108 {offsets = [0, 0], sizes = [8, 64], strides = [1, 1]} : vector<8x192xf32> to vector<8x64xf32>
    %114 = arith.mulf %113, %110 : vector<8x64xf32>
    %115 = arith.addf %112, %114 : vector<8x64xf32>
    %116 = vector.extract_strided_slice %108 {offsets = [0, 128], sizes = [8, 64], strides = [1, 1]} : vector<8x192xf32> to vector<8x64xf32>
    %117 = math.tanh %115 : vector<8x64xf32>
    %118 = arith.mulf %116, %117 : vector<8x64xf32>
    %119 = vector.extract_strided_slice %21 {offsets = [40, 0], sizes = [8, 256], strides = [1, 1]} : vector<64x256xf32> to vector<8x256xf32>
    %cst_33 = arith.constant dense<0.000000e+00> : vector<8x256xf32>
    %120 = tpu.matmul %118, %14, %cst_33 {dimension_numbers = #tpu.dot_dimension_numbers<[1], [0], [0], [1], [0, 0, 1, 1], [], []>} : vector<8x64xf32>, vector<64x256xf32>, vector<8x256xf32> -> vector<8x256xf32>
    %121 = arith.addf %119, %120 : vector<8x256xf32>
    %122 = vector.extract_strided_slice %121 {offsets = [0, 0], sizes = [8, 192], strides = [1, 1]} : vector<8x256xf32> to vector<8x192xf32>
    %123 = arith.negf %122 : vector<8x192xf32>
    %124 = math.exp %123 : vector<8x192xf32>
    %cst_34 = arith.constant 1.000000e+00 : f32
    %125 = vector.broadcast %cst_34 : f32 to vector<8x192xf32>
    %126 = arith.addf %125, %124 : vector<8x192xf32>
    %127 = arith.divf %125, %126 : vector<8x192xf32>
    %128 = vector.extract_strided_slice %121 {offsets = [0, 192], sizes = [8, 64], strides = [1, 1]} : vector<8x256xf32> to vector<8x64xf32>
    %129 = math.tanh %128 : vector<8x64xf32>
    %130 = vector.extract_strided_slice %127 {offsets = [0, 64], sizes = [8, 64], strides = [1, 1]} : vector<8x192xf32> to vector<8x64xf32>
    %131 = arith.mulf %130, %115 : vector<8x64xf32>
    %132 = vector.extract_strided_slice %127 {offsets = [0, 0], sizes = [8, 64], strides = [1, 1]} : vector<8x192xf32> to vector<8x64xf32>
    %133 = arith.mulf %132, %129 : vector<8x64xf32>
    %134 = arith.addf %131, %133 : vector<8x64xf32>
    %135 = vector.extract_strided_slice %127 {offsets = [0, 128], sizes = [8, 64], strides = [1, 1]} : vector<8x192xf32> to vector<8x64xf32>
    %136 = math.tanh %134 : vector<8x64xf32>
    %137 = arith.mulf %135, %136 : vector<8x64xf32>
    %138 = vector.extract_strided_slice %21 {offsets = [48, 0], sizes = [8, 256], strides = [1, 1]} : vector<64x256xf32> to vector<8x256xf32>
    %cst_35 = arith.constant dense<0.000000e+00> : vector<8x256xf32>
    %139 = tpu.matmul %137, %14, %cst_35 {dimension_numbers = #tpu.dot_dimension_numbers<[1], [0], [0], [1], [0, 0, 1, 1], [], []>} : vector<8x64xf32>, vector<64x256xf32>, vector<8x256xf32> -> vector<8x256xf32>
    %140 = arith.addf %138, %139 : vector<8x256xf32>
    %141 = vector.extract_strided_slice %140 {offsets = [0, 0], sizes = [8, 192], strides = [1, 1]} : vector<8x256xf32> to vector<8x192xf32>
    %142 = arith.negf %141 : vector<8x192xf32>
    %143 = math.exp %142 : vector<8x192xf32>
    %cst_36 = arith.constant 1.000000e+00 : f32
    %144 = vector.broadcast %cst_36 : f32 to vector<8x192xf32>
    %145 = arith.addf %144, %143 : vector<8x192xf32>
    %146 = arith.divf %144, %145 : vector<8x192xf32>
    %147 = vector.extract_strided_slice %140 {offsets = [0, 192], sizes = [8, 64], strides = [1, 1]} : vector<8x256xf32> to vector<8x64xf32>
    %148 = math.tanh %147 : vector<8x64xf32>
    %149 = vector.extract_strided_slice %146 {offsets = [0, 64], sizes = [8, 64], strides = [1, 1]} : vector<8x192xf32> to vector<8x64xf32>
    %150 = arith.mulf %149, %134 : vector<8x64xf32>
    %151 = vector.extract_strided_slice %146 {offsets = [0, 0], sizes = [8, 64], strides = [1, 1]} : vector<8x192xf32> to vector<8x64xf32>
    %152 = arith.mulf %151, %148 : vector<8x64xf32>
    %153 = arith.addf %150, %152 : vector<8x64xf32>
    %154 = vector.extract_strided_slice %146 {offsets = [0, 128], sizes = [8, 64], strides = [1, 1]} : vector<8x192xf32> to vector<8x64xf32>
    %155 = math.tanh %153 : vector<8x64xf32>
    %156 = arith.mulf %154, %155 : vector<8x64xf32>
    %157 = vector.extract_strided_slice %21 {offsets = [56, 0], sizes = [8, 256], strides = [1, 1]} : vector<64x256xf32> to vector<8x256xf32>
    %cst_37 = arith.constant dense<0.000000e+00> : vector<8x256xf32>
    %158 = tpu.matmul %156, %14, %cst_37 {dimension_numbers = #tpu.dot_dimension_numbers<[1], [0], [0], [1], [0, 0, 1, 1], [], []>} : vector<8x64xf32>, vector<64x256xf32>, vector<8x256xf32> -> vector<8x256xf32>
    %159 = arith.addf %157, %158 : vector<8x256xf32>
    %160 = vector.extract_strided_slice %159 {offsets = [0, 0], sizes = [8, 192], strides = [1, 1]} : vector<8x256xf32> to vector<8x192xf32>
    %161 = arith.negf %160 : vector<8x192xf32>
    %162 = math.exp %161 : vector<8x192xf32>
    %cst_38 = arith.constant 1.000000e+00 : f32
    %163 = vector.broadcast %cst_38 : f32 to vector<8x192xf32>
    %164 = arith.addf %163, %162 : vector<8x192xf32>
    %165 = arith.divf %163, %164 : vector<8x192xf32>
    %166 = vector.extract_strided_slice %159 {offsets = [0, 192], sizes = [8, 64], strides = [1, 1]} : vector<8x256xf32> to vector<8x64xf32>
    %167 = math.tanh %166 : vector<8x64xf32>
    %168 = vector.extract_strided_slice %165 {offsets = [0, 64], sizes = [8, 64], strides = [1, 1]} : vector<8x192xf32> to vector<8x64xf32>
    %169 = arith.mulf %168, %153 : vector<8x64xf32>
    %170 = vector.extract_strided_slice %165 {offsets = [0, 0], sizes = [8, 64], strides = [1, 1]} : vector<8x192xf32> to vector<8x64xf32>
    %171 = arith.mulf %170, %167 : vector<8x64xf32>
    %172 = arith.addf %169, %171 : vector<8x64xf32>
    %173 = vector.extract_strided_slice %165 {offsets = [0, 128], sizes = [8, 64], strides = [1, 1]} : vector<8x192xf32> to vector<8x64xf32>
    %174 = math.tanh %172 : vector<8x64xf32>
    %175 = arith.mulf %173, %174 : vector<8x64xf32>
    %c0_39 = arith.constant 0 : index
    %c0_40 = arith.constant 0 : index
    %176 = vector.load %arg6[%c0_39, %c0_40] : memref<120x24xf32, #tpu.memory_space<vmem>>, vector<64x24xf32>
    %c64 = arith.constant 64 : index
    %c0_41 = arith.constant 0 : index
    %177 = vector.load %arg6[%c64, %c0_41] : memref<120x24xf32, #tpu.memory_space<vmem>>, vector<24x24xf32>
    %c88_42 = arith.constant 88 : index
    %c0_43 = arith.constant 0 : index
    %178 = vector.load %arg6[%c88_42, %c0_43] : memref<120x24xf32, #tpu.memory_space<vmem>>, vector<24x2xf32>
    %c112 = arith.constant 112 : index
    %c0_44 = arith.constant 0 : index
    %179 = vector.load %arg6[%c112, %c0_44] : memref<120x24xf32, #tpu.memory_space<vmem>>, vector<1x24xf32>
    %c113 = arith.constant 113 : index
    %c0_45 = arith.constant 0 : index
    %180 = vector.load %arg6[%c113, %c0_45] : memref<120x24xf32, #tpu.memory_space<vmem>>, vector<1x24xf32>
    %c114 = arith.constant 114 : index
    %c0_46 = arith.constant 0 : index
    %181 = vector.load %arg6[%c114, %c0_46] : memref<120x24xf32, #tpu.memory_space<vmem>>, vector<1x2xf32>
    %cst_47 = arith.constant dense<0.000000e+00> : vector<8x24xf32>
    %182 = tpu.matmul %175, %176, %cst_47 {dimension_numbers = #tpu.dot_dimension_numbers<[1], [0], [0], [1], [0, 0, 1, 1], [], []>} : vector<8x64xf32>, vector<64x24xf32>, vector<8x24xf32> -> vector<8x24xf32>
    %183 = vector.broadcast %179 : vector<1x24xf32> to vector<8x24xf32>
    %184 = arith.addf %182, %183 : vector<8x24xf32>
    %cst_48 = arith.constant dense<0.000000e+00> : vector<8x24xf32>
    %185 = tpu.matmul %184, %177, %cst_48 {dimension_numbers = #tpu.dot_dimension_numbers<[1], [0], [0], [1], [0, 0, 1, 1], [], []>} : vector<8x24xf32>, vector<24x24xf32>, vector<8x24xf32> -> vector<8x24xf32>
    %186 = vector.broadcast %180 : vector<1x24xf32> to vector<8x24xf32>
    %187 = arith.addf %185, %186 : vector<8x24xf32>
    %cst_49 = arith.constant 0.000000e+00 : f32
    %188 = vector.broadcast %cst_49 : f32 to vector<8x24xf32>
    %189 = arith.maximumf %187, %188 : vector<8x24xf32>
    %cst_50 = arith.constant dense<0.000000e+00> : vector<8x2xf32>
    %190 = tpu.matmul %189, %178, %cst_50 {dimension_numbers = #tpu.dot_dimension_numbers<[1], [0], [0], [1], [0, 0, 1, 1], [], []>} : vector<8x24xf32>, vector<24x2xf32>, vector<8x2xf32> -> vector<8x2xf32>
    %191 = vector.broadcast %181 : vector<1x2xf32> to vector<8x2xf32>
    %192 = arith.addf %190, %191 : vector<8x2xf32>
    %c0_51 = arith.constant 0 : index
    %c0_52 = arith.constant 0 : index
    %193 = vector.load %arg7[%c0_51, %c0_52] : memref<8x2xf32, #tpu.memory_space<vmem>>, vector<8x2xf32>
    tpu.vector_store %arg7[%c0_51, %c0_52], %192 {strides = array<i32>} : memref<8x2xf32, #tpu.memory_space<vmem>>, vector<8x2xf32>,
    return
  }
}

</mosaic_0001>

<bundles_post_ra>
// kernel: hybrid_forward.1
= control target key start
LH: loop header
LB: loop body
LE: loop exit
PB: predicated region body
PF: predicated region fallthrough
CT: control target
= control target key end

     0   :  { %vm92_vm0 = vcmask 64512   ;;  %vm1879_vm1 = vcmask 130048   ;;  %vm2113_vm10 = vcmask 523264   ;;  %s5598_s5 = inlined_call_operand.vmem [shape: f32[16,16], index: 5, kind: input, shape index: {}]   ;;  %s5599_s1 = inlined_call_operand.vmem [shape: f32[512,8], index: 1, kind: input, shape index: {}]   ;;  %s5600_s2 = inlined_call_operand.vmem [shape: f32[512,512], index: 2, kind: input, shape index: {}]   ;;  %s5601_s3 = inlined_call_operand.vmem [shape: f32[64,512], index: 3, kind: input, shape index: {}]   ;;  %s5602_s4 = inlined_call_operand.vmem [shape: f32[96,256], index: 4, kind: input, shape index: {}]   ;;  %s5603_s0 = inlined_call_operand.vmem [shape: f32[64,8], index: 0, kind: input, shape index: {}]   ;;  %s5604_s6 = inlined_call_operand.vmem [shape: f32[120,24], index: 6, kind: input, shape index: {}]   ;;  %s5605_s7 = inlined_call_operand.vmem [shape: f32[8,2], index: 7, kind: output, shape index: {}]  }
   0x1   :  { %v26_v0 = vld [vmem:[%s5598_s5] sm:$0xff]  ;;  %v29_v2 = vld [vmem:[%s5599_s1 + $0x8] sm:$0xff]  ;;  %v30_v3 = vld [vmem:[%s5599_s1 + $0x10] sm:$0xff] }
   0x2   :  { %300 = vmatpush.msra.mxu0 %v26_v0  ;;  %v28_v1 = vld [vmem:[%s5599_s1] sm:$0xff]  ;;  %3150 = vmatpush.msra.mxu3 %v26_v0  ;;  %v31_v4 = vld [vmem:[%s5599_s1 + $0x18] sm:$0xff]  ;;  %v33_v6 = vld [vmem:[%s5599_s1 + $0x28] sm:$0xff] }
   0x3   :  { %3019 = vmatmul.msk.f32.vlgmr.msra.gmra.mxu0 %vm92_vm0, %v28_v1  ;;  %3149 = vmatpush.msra.mxu2 %v26_v0  ;;  %v32_v5 = vld [vmem:[%s5599_s1 + $0x20] sm:$0xff]  ;;  %v34_v7 = vld [vmem:[%s5599_s1 + $0x30] sm:$0xff]  ;;  %v35_v8 = vld [vmem:[%s5599_s1 + $0x38] sm:$0xff] }
   0x4   :  { %v36_v9 = vld [vmem:[%s5599_s1 + $0x40] sm:$0xff]  ;;  %v37_v10 = vld [vmem:[%s5599_s1 + $0x48] sm:$0xff]  ;;  %v38_v11 = vld [vmem:[%s5599_s1 + $0x50] sm:$0xff] }
   0x5   :  { %v39_v12 = vld [vmem:[%s5599_s1 + $0x58] sm:$0xff]  ;;  %v40_v13 = vld [vmem:[%s5599_s1 + $0x60] sm:$0xff]  ;;  %v41_v14 = vld [vmem:[%s5599_s1 + $0x68] sm:$0xff] }
   0x6   :  { %v42_v15 = vld [vmem:[%s5599_s1 + $0x70] sm:$0xff]  ;;  %v81_v16 = vld [vmem:[%s5599_s1 + $0x1a8] sm:$0xff]  ;;  %v43_v17 = vld [vmem:[%s5599_s1 + $0x78] sm:$0xff] }
   0x7   :  { %3072 = vmatmul.msk.f32.vlgmr.msra.gmra.mxu3 %vm92_vm0, %v81_v16  ;;  %v82_v18 = vld [vmem:[%s5599_s1 + $0x1b0] sm:$0xff]  ;;  %v44_v20 = vld [vmem:[%s5599_s1 + $0x80] sm:$0xff]  ;;  %v83_v21 = vld [vmem:[%s5599_s1 + $0x1b8] sm:$0xff] }
   0x8   :  { %v45_v23 = vld [vmem:[%s5599_s1 + $0x88] sm:$0xff]  ;;  %v84_v24 = vld [vmem:[%s5599_s1 + $0x1c0] sm:$0xff]  ;;  %v46_v26 = vld [vmem:[%s5599_s1 + $0x90] sm:$0xff] }
   0x9   :  { %v85_v27 = vld [vmem:[%s5599_s1 + $0x1c8] sm:$0xff]  ;;  %v47_v29 = vld [vmem:[%s5599_s1 + $0x98] sm:$0xff]  ;;  %v86_v30 = vld [vmem:[%s5599_s1 + $0x1d0] sm:$0xff] }
   0xa   :  { %v48_v32 = vld [vmem:[%s5599_s1 + $0xa0] sm:$0xff]  ;;  %v87_v33 = vld [vmem:[%s5599_s1 + $0x1d8] sm:$0xff]  ;;  %v49_v35 = vld [vmem:[%s5599_s1 + $0xa8] sm:$0xff] }
   0xb   :  { %3020 = vmatmul.msk.f32.gmra.mxu0 %vm92_vm0, %v29_v2  ;;  %v88_v36 = vld [vmem:[%s5599_s1 + $0x1e0] sm:$0xff]  ;;  %v50_v38 = vld [vmem:[%s5599_s1 + $0xb0] sm:$0xff]  ;;  %v89_v39 = vld [vmem:[%s5599_s1 + $0x1e8] sm:$0xff] }
   0xc   :  { %v51_v41 = vld [vmem:[%s5599_s1 + $0xb8] sm:$0xff]  ;;  %v90_v42 = vld [vmem:[%s5599_s1 + $0x1f0] sm:$0xff]  ;;  %v52_v44 = vld [vmem:[%s5599_s1 + $0xc0] sm:$0xff] }
   0xd   :  { %v91_v45 = vld [vmem:[%s5599_s1 + $0x1f8] sm:$0xff]  ;;  %v53_v47 = vld [vmem:[%s5599_s1 + $0xc8] sm:$0xff]  ;;  %v54_v49 = vld [vmem:[%s5599_s1 + $0xd0] sm:$0xff] }
   0xe   :  { %v71_v50 = vld [vmem:[%s5599_s1 + $0x158] sm:$0xff]  ;;  %v72_v53 = vld [vmem:[%s5599_s1 + $0x160] sm:$0xff]  ;;  %v73_v56 = vld [vmem:[%s5599_s1 + $0x168] sm:$0xff] }
   0xf   :  { %3073 = vmatmul.msk.f32.gmra.mxu3 %vm92_vm0, %v82_v18  ;;  %3062 = vmatmul.msk.f32.vlgmr.msra.gmra.mxu2 %vm92_vm0, %v71_v50  ;;  %v55_v52 = vld [vmem:[%s5599_s1 + $0xd8] sm:$0xff]  ;;  %v56_v55 = vld [vmem:[%s5599_s1 + $0xe0] sm:$0xff]  ;;  %v57_v58 = vld [vmem:[%s5599_s1 + $0xe8] sm:$0xff] }
  0x10   :  { %v74_v59 = vld [vmem:[%s5599_s1 + $0x170] sm:$0xff]  ;;  %v75_v62 = vld [vmem:[%s5599_s1 + $0x178] sm:$0xff]  ;;  %v76_v1 = vld [vmem:[%s5599_s1 + $0x180] sm:$0xff] }
  0x11   :  { %v58_v61 = vld [vmem:[%s5599_s1 + $0xf0] sm:$0xff]  ;;  %v59_v0 = vld [vmem:[%s5599_s1 + $0xf8] sm:$0xff] }
  0x12   :  { %v63_v16 = vld [vmem:[%s5599_s1 + $0x118] sm:$0xff] }
  0x13   :  { %3021 = vmatmul.msk.f32.gmra.mxu0 %vm92_vm0, %v30_v3 }
  0x17   :  { %3074 = vmatmul.msk.f32.gmra.mxu3 %vm92_vm0, %v83_v21  ;;  %3063 = vmatmul.msk.f32.gmra.mxu2 %vm92_vm0, %v72_v53 }
  0x1b   :  { %3022 = vmatmul.msk.f32.gmra.mxu0 %vm92_vm0, %v31_v4  ;;  %v60_v4 = vld [vmem:[%s5599_s1 + $0x100] sm:$0xff] }
  0x1f   :  { %3075 = vmatmul.msk.f32.gmra.mxu3 %vm92_vm0, %v84_v24  ;;  %3064 = vmatmul.msk.f32.gmra.mxu2 %vm92_vm0, %v73_v56 }
  0x23   :  { %3023 = vmatmul.msk.f32.gmra.mxu0 %vm92_vm0, %v32_v5  ;;  %v77_v5 = vld [vmem:[%s5599_s1 + $0x188] sm:$0xff] }
  0x27   :  { %3076 = vmatmul.msk.f32.gmra.mxu3 %vm92_vm0, %v85_v27  ;;  %3065 = vmatmul.msk.f32.gmra.mxu2 %vm92_vm0, %v74_v59 }
  0x2b   :  { %3024 = vmatmul.msk.f32.gmra.mxu0 %vm92_vm0, %v33_v6 }
  0x2f   :  { %3077 = vmatmul.msk.f32.gmra.mxu3 %vm92_vm0, %v86_v30  ;;  %3066 = vmatmul.msk.f32.gmra.mxu2 %vm92_vm0, %v75_v62 }
  0x33   :  { %3025 = vmatmul.msk.f32.gmra.mxu0 %vm92_vm0, %v34_v7 }
  0x37   :  { %3078 = vmatmul.msk.f32.gmra.mxu3 %vm92_vm0, %v87_v33  ;;  %3067 = vmatmul.msk.f32.gmra.mxu2 %vm92_vm0, %v76_v1 }
  0x3b   :  { %3026 = vmatmul.msk.f32.gmra.mxu0 %vm92_vm0, %v35_v8  ;;  %v61_v8 = vld [vmem:[%s5599_s1 + $0x108] sm:$0xff] }
  0x3f   :  { %3079 = vmatmul.msk.f32.gmra.mxu3 %vm92_vm0, %v88_v36  ;;  %3068 = vmatmul.msk.f32.gmra.mxu2 %vm92_vm0, %v77_v5 }
  0x43   :  { %3027 = vmatmul.msk.f32.gmra.mxu0 %vm92_vm0, %v36_v9  ;;  %v78_v9 = vld [vmem:[%s5599_s1 + $0x190] sm:$0xff] }
  0x47   :  { %3080 = vmatmul.msk.f32.gmra.mxu3 %vm92_vm0, %v89_v39  ;;  %3069 = vmatmul.msk.f32.gmra.mxu2 %vm92_vm0, %v78_v9  ;;  %v507_v9 = vld [vmem:[%s5600_s2 + $0x68] sm:$0xff] }
  0x4b   :  { %3028 = vmatmul.msk.f32.gmra.mxu0 %vm92_vm0, %v37_v10 }
  0x4f   :  { %3081 = vmatmul.msk.f32.gmra.mxu3 %vm92_vm0, %v90_v42 }
  0x53   :  { %3029 = vmatmul.msk.f32.gmra.mxu0 %vm92_vm0, %v38_v11 }
  0x57   :  { %3082 = vmatmul.msk.f32.gmra.mxu3 %vm92_vm0, %v91_v45 }
  0x5b   :  { %3030 = vmatmul.msk.f32.gmra.mxu0 %vm92_vm0, %v39_v12  ;;  %v62_v12 = vld [vmem:[%s5599_s1 + $0x110] sm:$0xff] }
  0x63   :  { %3031 = vmatmul.msk.f32.gmra.mxu0 %vm92_vm0, %v40_v13  ;;  %v79_v13 = vld [vmem:[%s5599_s1 + $0x198] sm:$0xff] }
  0x64   :  { %3070 = vmatmul.msk.f32.gmra.mxu2 %vm92_vm0, %v79_v13  ;;  %v496_v13 = vld [vmem:[%s5600_s2 + $0x10] sm:$0xff] }
  0x6b   :  { %3032 = vmatmul.msk.f32.gmra.mxu0 %vm92_vm0, %v41_v14 }
  0x73   :  { %3033 = vmatmul.msk.f32.gmra.mxu0 %vm92_vm0, %v42_v15 }
  0x7b   :  { %3034 = vmatmul.msk.f32.gmra.mxu0 %vm92_vm0, %v43_v17  ;;  %v80_v17 = vld [vmem:[%s5599_s1 + $0x1a0] sm:$0xff] }
  0x7c   :  { %3071 = vmatmul.msk.f32.gmra.mxu2 %vm92_vm0, %v80_v17  ;;  %v500_v17 = vld [vmem:[%s5600_s2 + $0x30] sm:$0xff] }
  0x80   :  { %v3371_v19 = vpop.f32.mrf.mxu0 }
  0x83   :  { %3035 = vmatmul.msk.f32.gmra.mxu0 %vm92_vm0, %v44_v20 }
  0x88   :  { %v3381_v22 = vpop.f32.mrf.mxu0 }
  0x8a   :  { %v3507_v2 = vpop.f32.mrf.mxu3 }
  0x8b   :  { %3036 = vmatmul.msk.f32.gmra.mxu0 %vm92_vm0, %v45_v23  ;;  %v65_v23 = vld [vmem:[%s5599_s1 + $0x128] sm:$0xff] }
  0x90   :  { %v3391_v25 = vpop.f32.mrf.mxu0 }
  0x92   :  { %v3519_v6 = vpop.f32.mrf.mxu3  ;;  %v431_v39 = vpop.f32.mrf.mxu2 }
  0x93   :  { %3037 = vmatmul.msk.f32.gmra.mxu0 %vm92_vm0, %v46_v26  ;;  %v66_v26 = vld [vmem:[%s5599_s1 + $0x130] sm:$0xff] }
  0x98   :  { %v3401_v28 = vpop.f32.mrf.mxu0 }
  0x9a   :  { %v467_v10 = vpop.f32.mrf.mxu3 }
  0x9b   :  { %3038 = vmatmul.msk.f32.gmra.mxu0 %vm92_vm0, %v47_v29  ;;  %v67_v29 = vld [vmem:[%s5599_s1 + $0x138] sm:$0xff] }
  0xa0   :  { %v3411_v31 = vpop.f32.mrf.mxu0 }
  0xa2   :  { %v470_v14 = vpop.f32.mrf.mxu3 }
  0xa3   :  { %3039 = vmatmul.msk.f32.gmra.mxu0 %vm92_vm0, %v48_v32  ;;  %v68_v32 = vld [vmem:[%s5599_s1 + $0x140] sm:$0xff] }
  0xa8   :  { %v3421_v34 = vpop.f32.mrf.mxu0 }
  0xaa   :  { %v473_v18 = vpop.f32.mrf.mxu3 }
  0xab   :  { %3040 = vmatmul.msk.f32.gmra.mxu0 %vm92_vm0, %v49_v35  ;;  %v69_v35 = vld [vmem:[%s5599_s1 + $0x148] sm:$0xff] }
  0xb0   :  { %v3431_v37 = vpop.f32.mrf.mxu0 }
  0xb2   :  { %v476_v21 = vpop.f32.mrf.mxu3 }
  0xb3   :  { %3041 = vmatmul.msk.f32.gmra.mxu0 %vm92_vm0, %v50_v38  ;;  %v70_v38 = vld [vmem:[%s5599_s1 + $0x150] sm:$0xff] }
  0xb8   :  { %v323_v40 = vpop.f32.mrf.mxu0 }
  0xba   :  { %v479_v24 = vpop.f32.mrf.mxu3 }
  0xbb   :  { %3042 = vmatmul.msk.f32.gmra.mxu0 %vm92_vm0, %v51_v41  ;;  %v434_v41 = vpop.f32.mrf.mxu2 }
  0xc0   :  { %v326_v43 = vpop.f32.mrf.mxu0 }
  0xc2   :  { %v482_v27 = vpop.f32.mrf.mxu3 }
  0xc3   :  { %3043 = vmatmul.msk.f32.gmra.mxu0 %vm92_vm0, %v52_v44 }
  0xc8   :  { %v329_v46 = vpop.f32.mrf.mxu0 }
  0xca   :  { %v485_v30 = vpop.f32.mrf.mxu3 }
  0xcb   :  { %3044 = vmatmul.msk.f32.gmra.mxu0 %vm92_vm0, %v53_v47 }
  0xd0   :  { %v332_v48 = vpop.f32.mrf.mxu0 }
  0xd2   :  { %v488_v33 = vpop.f32.mrf.mxu3 }
  0xd3   :  { %3045 = vmatmul.msk.f32.gmra.mxu0 %vm92_vm0, %v54_v49 }
  0xd8   :  { %v335_v51 = vpop.f32.mrf.mxu0 }
  0xda   :  { %v491_v36 = vpop.f32.mrf.mxu3 }
  0xdb   :  { %3046 = vmatmul.msk.f32.gmra.mxu0 %vm92_vm0, %v55_v52 }
  0xdc   :  { %1378 = vmatpush.msrb.mxu0 %v491_v36  ;;  %v535_v36 = vld [vmem:[%s5600_s2 + $0x148] sm:$0xff] }
  0xde   :  { %1379 = vmatpush.msrb.mxu0 %v488_v33  ;;  %v516_v33 = vld [vmem:[%s5600_s2 + $0xb0] sm:$0xff] }
  0xe0   :  { %v338_v54 = vpop.f32.mrf.mxu0  ;;  %1380 = vmatpush.msrb.mxu0 %v485_v30  ;;  %v525_v30 = vld [vmem:[%s5600_s2 + $0xf8] sm:$0xff] }
  0xe2   :  { %1381 = vmatpush.msrb.mxu0 %v482_v27  ;;  %v522_v27 = vld [vmem:[%s5600_s2 + $0xe0] sm:$0xff] }
  0xe3   :  { %3047 = vmatmul.msk.f32.gmra.mxu0 %vm92_vm0, %v56_v55 }
  0xe4   :  { %1382 = vmatpush.msrb.mxu0 %v479_v24  ;;  %v523_v24 = vld [vmem:[%s5600_s2 + $0xe8] sm:$0xff] }
  0xe6   :  { %1383 = vmatpush.msrb.mxu0 %v476_v21  ;;  %v504_v21 = vld [vmem:[%s5600_s2 + $0x50] sm:$0xff] }
  0xe8   :  { %v341_v57 = vpop.f32.mrf.mxu0  ;;  %1384 = vmatpush.msrb.mxu0 %v473_v18  ;;  %v513_v18 = vld [vmem:[%s5600_s2 + $0x98] sm:$0xff] }
  0xea   :  { %1385 = vmatpush.msrb.mxu0 %v470_v14  ;;  %v509_v14 = vld [vmem:[%s5600_s2 + $0x78] sm:$0xff] }
  0xeb   :  { %3048 = vmatmul.msk.f32.gmra.mxu0 %vm92_vm0, %v57_v58 }
  0xec   :  { %1386 = vmatpush.msrb.mxu0 %v467_v10  ;;  %v505_v10 = vld [vmem:[%s5600_s2 + $0x58] sm:$0xff] }
  0xee   :  { %1387 = vmatpush.msrb.mxu0 %v3519_v6  ;;  %v503_v6 = vld [vmem:[%s5600_s2 + $0x48] sm:$0xff] }
  0xf0   :  { %v344_v60 = vpop.f32.mrf.mxu0  ;;  %1388 = vmatpush.msrb.mxu0 %v3507_v2  ;;  %v499_v2 = vld [vmem:[%s5600_s2 + $0x28] sm:$0xff] }
  0xf3   :  { %3049 = vmatmul.msk.f32.gmra.mxu0 %vm92_vm0, %v58_v61 }
  0xf8   :  { %v347_v63 = vpop.f32.mrf.mxu0 }
  0xf9   :  { %751 = vmatpush.msra.mxu1 %v347_v63  ;;  %v495_v63 = vld [vmem:[%s5600_s2 + $0x8] sm:$0xff] }
  0xfb   :  { %3050 = vmatmul.msk.f32.gmra.mxu0 %vm92_vm0, %v59_v0  ;;  %752 = vmatpush.msra.mxu1 %v344_v60  ;;  %v494_v0 = vld [vmem:[%s5600_s2] sm:$0xff] }
  0xfd   :  { %753 = vmatpush.msra.mxu1 %v341_v57 }
  0xff   :  { %754 = vmatpush.msra.mxu1 %v338_v54 }
 0x100   :  { %v3511_v3 = vpop.f32.mrf.mxu0 }
 0x101   :  { %755 = vmatpush.msra.mxu1 %v335_v51 }
 0x103   :  { %3051 = vmatmul.msk.f32.gmra.mxu0 %vm92_vm0, %v60_v4  ;;  %756 = vmatpush.msra.mxu1 %v332_v48  ;;  %v498_v4 = vld [vmem:[%s5600_s2 + $0x20] sm:$0xff] }
 0x105   :  { %757 = vmatpush.msra.mxu1 %v329_v46 }
 0x107   :  { %758 = vmatpush.msra.mxu1 %v326_v43  ;;  %v437_v43 = vpop.f32.mrf.mxu2 }
 0x108   :  { %v3523_v7 = vpop.f32.mrf.mxu0 }
 0x109   :  { %759 = vmatpush.msra.mxu1 %v323_v40 }
 0x10b   :  { %3052 = vmatmul.msk.f32.gmra.mxu0 %vm92_vm0, %v61_v8  ;;  %760 = vmatpush.msra.mxu1 %v3431_v37  ;;  %v502_v8 = vld [vmem:[%s5600_s2 + $0x40] sm:$0xff] }
 0x10d   :  { %761 = vmatpush.msra.mxu1 %v3421_v34 }
 0x10f   :  { %762 = vmatpush.msra.mxu1 %v3411_v31  ;;  %v440_v45 = vpop.f32.mrf.mxu2 }
 0x110   :  { %v3536_v11 = vpop.f32.mrf.mxu0 }
 0x111   :  { %763 = vmatpush.msra.mxu1 %v3401_v28 }
 0x113   :  { %3053 = vmatmul.msk.f32.gmra.mxu0 %vm92_vm0, %v62_v12  ;;  %764 = vmatpush.msra.mxu1 %v3391_v25  ;;  %v511_v12 = vld [vmem:[%s5600_s2 + $0x88] sm:$0xff] }
 0x115   :  { %765 = vmatpush.msra.mxu1 %v3381_v22 }
 0x117   :  { %766 = vmatpush.msra.mxu1 %v3371_v19  ;;  %v64_v19 = vld [vmem:[%s5599_s1 + $0x120] sm:$0xff]  ;;  %v443_v47 = vpop.f32.mrf.mxu2 }
 0x118   :  { %v3550_v15 = vpop.f32.mrf.mxu0  ;;  %1169 = vmatpush.msrb.mxu3 %v443_v47  ;;  %767 = vmatmul.f32.vlgmr.msra.gmra.mxu1 %v494_v0  ;;  %v542_v47 = vld [vmem:[%s5600_s2 + $0x180] sm:$0xff] }
 0x119   :  { %v558_v0 = vld [vmem:[%s5600_s2 + $0x200] sm:$0xff] }
 0x11a   :  { %1170 = vmatpush.msrb.mxu3 %v440_v45  ;;  %v528_v45 = vld [vmem:[%s5600_s2 + $0x110] sm:$0xff] }
 0x11b   :  { %3054 = vmatmul.msk.f32.gmra.mxu0 %vm92_vm0, %v63_v16  ;;  %v515_v16 = vld [vmem:[%s5600_s2 + $0xa8] sm:$0xff] }
 0x11c   :  { %1171 = vmatpush.msrb.mxu3 %v437_v43  ;;  %v538_v43 = vld [vmem:[%s5600_s2 + $0x160] sm:$0xff] }
 0x11e   :  { %1172 = vmatpush.msrb.mxu3 %v434_v41  ;;  %v524_v41 = vld [vmem:[%s5600_s2 + $0xf0] sm:$0xff] }
 0x11f   :  { %v446_v49 = vpop.f32.mrf.mxu2 }
 0x120   :  { %v3560_v20 = vpop.f32.mrf.mxu0  ;;  %1173 = vmatpush.msrb.mxu3 %v431_v39  ;;  %770 = vmatmul.f32.gmra.mxu1 %v498_v4  ;;  %v534_v39 = vld [vmem:[%s5600_s2 + $0x140] sm:$0xff]  ;;  %v563_v4 = vld [vmem:[%s5600_s2 + $0x228] sm:$0xff] }
 0x123   :  { %3055 = vmatmul.msk.f32.gmra.mxu0 %vm92_vm0, %v64_v19  ;;  %v519_v19 = vld [vmem:[%s5600_s2 + $0xc8] sm:$0xff] }
 0x127   :  { %v449_v51 = vpop.f32.mrf.mxu2 }
 0x128   :  { %v3566_v22 = vpop.f32.mrf.mxu0  ;;  %773 = vmatmul.f32.gmra.mxu1 %v502_v8 }
 0x12b   :  { %3056 = vmatmul.msk.f32.gmra.mxu0 %vm92_vm0, %v65_v23  ;;  %v518_v23 = vld [vmem:[%s5600_s2 + $0xc0] sm:$0xff] }
 0x12f   :  { %v452_v53 = vpop.f32.mrf.mxu2 }
 0x130   :  { %v368_v25 = vpop.f32.mrf.mxu0 }
 0x133   :  { %3057 = vmatmul.msk.f32.gmra.mxu0 %vm92_vm0, %v66_v26  ;;  %v521_v26 = vld [vmem:[%s5600_s2 + $0xd8] sm:$0xff] }
 0x137   :  { %v455_v55 = vpop.f32.mrf.mxu2 }
 0x138   :  { %v371_v28 = vpop.f32.mrf.mxu0 }
 0x13b   :  { %3058 = vmatmul.msk.f32.gmra.mxu0 %vm92_vm0, %v67_v29  ;;  %v512_v29 = vld [vmem:[%s5600_s2 + $0x90] sm:$0xff] }
 0x13f   :  { %v458_v57 = vpop.f32.mrf.mxu2 }
 0x140   :  { %v374_v31 = vpop.f32.mrf.mxu0  ;;  %1389 = vmatpush.msrb.mxu0 %v458_v57  ;;  %v540_v57 = vld [vmem:[%s5600_s2 + $0x170] sm:$0xff] }
 0x142   :  { %1390 = vmatpush.msrb.mxu0 %v455_v55  ;;  %v550_v55 = vld [vmem:[%s5600_s2 + $0x1c0] sm:$0xff] }
 0x143   :  { %3059 = vmatmul.msk.f32.gmra.mxu0 %vm92_vm0, %v68_v32  ;;  %v531_v32 = vld [vmem:[%s5600_s2 + $0x128] sm:$0xff] }
 0x144   :  { %1391 = vmatpush.msrb.mxu0 %v452_v53  ;;  %v536_v53 = vld [vmem:[%s5600_s2 + $0x150] sm:$0xff] }
 0x146   :  { %1392 = vmatpush.msrb.mxu0 %v449_v51  ;;  %v546_v51 = vld [vmem:[%s5600_s2 + $0x1a0] sm:$0xff] }
 0x148   :  { %v377_v34 = vpop.f32.mrf.mxu0  ;;  %1393 = vmatpush.msrb.mxu0 %v446_v49  ;;  %v532_v49 = vld [vmem:[%s5600_s2 + $0x130] sm:$0xff] }
 0x14b   :  { %3060 = vmatmul.msk.f32.gmra.mxu0 %vm92_vm0, %v69_v35  ;;  %v530_v35 = vld [vmem:[%s5600_s2 + $0x120] sm:$0xff] }
 0x150   :  { %v380_v37 = vpop.f32.mrf.mxu0 }
 0x153   :  { %3061 = vmatmul.msk.f32.gmra.mxu0 %vm92_vm0, %v70_v38  ;;  %v533_v38 = vld [vmem:[%s5600_s2 + $0x138] sm:$0xff] }
 0x158   :  { %v383_v40 = vpop.f32.mrf.mxu0 }
 0x160   :  { %v386_v42 = vpop.f32.mrf.mxu0 }
 0x168   :  { %v389_v44 = vpop.f32.mrf.mxu0 }
 0x170   :  { %v392_v46 = vpop.f32.mrf.mxu0 }
 0x178   :  { %v395_v48 = vpop.f32.mrf.mxu0 }
 0x179   :  { %960 = vmatpush.msrb.mxu2 %v395_v48  ;;  %v547_v48 = vld [vmem:[%s5600_s2 + $0x1a8] sm:$0xff] }
 0x17b   :  { %961 = vmatpush.msrb.mxu2 %v392_v46  ;;  %v541_v46 = vld [vmem:[%s5600_s2 + $0x178] sm:$0xff] }
 0x17d   :  { %962 = vmatpush.msrb.mxu2 %v389_v44  ;;  %v543_v44 = vld [vmem:[%s5600_s2 + $0x188] sm:$0xff] }
 0x17f   :  { %963 = vmatpush.msrb.mxu2 %v386_v42  ;;  %v537_v42 = vld [vmem:[%s5600_s2 + $0x158] sm:$0xff] }
 0x180   :  { %v3594_v50 = vpop.f32.mrf.mxu0 }
 0x181   :  { %964 = vmatpush.msrb.mxu2 %v383_v40  ;;  %v539_v40 = vld [vmem:[%s5600_s2 + $0x168] sm:$0xff] }
 0x183   :  { %965 = vmatpush.msrb.mxu2 %v380_v37  ;;  %v520_v37 = vld [vmem:[%s5600_s2 + $0xd0] sm:$0xff] }
 0x185   :  { %966 = vmatpush.msrb.mxu2 %v377_v34  ;;  %v529_v34 = vld [vmem:[%s5600_s2 + $0x118] sm:$0xff] }
 0x187   :  { %967 = vmatpush.msrb.mxu2 %v374_v31  ;;  %v526_v31 = vld [vmem:[%s5600_s2 + $0x100] sm:$0xff] }
 0x188   :  { %v401_v52 = vpop.f32.mrf.mxu0 }
 0x189   :  { %968 = vmatpush.msrb.mxu2 %v371_v28  ;;  %v527_v28 = vld [vmem:[%s5600_s2 + $0x108] sm:$0xff] }
 0x18b   :  { %969 = vmatpush.msrb.mxu2 %v368_v25  ;;  %v508_v25 = vld [vmem:[%s5600_s2 + $0x70] sm:$0xff] }
 0x18d   :  { %970 = vmatpush.msrb.mxu2 %v3566_v22  ;;  %v517_v22 = vld [vmem:[%s5600_s2 + $0xb8] sm:$0xff] }
 0x18f   :  { %971 = vmatpush.msrb.mxu2 %v3560_v20  ;;  %v514_v20 = vld [vmem:[%s5600_s2 + $0xa0] sm:$0xff] }
 0x190   :  { %v404_v54 = vpop.f32.mrf.mxu0 }
 0x191   :  { %972 = vmatpush.msrb.mxu2 %v3550_v15  ;;  %v510_v15 = vld [vmem:[%s5600_s2 + $0x80] sm:$0xff] }
 0x193   :  { %973 = vmatpush.msrb.mxu2 %v3536_v11  ;;  %v506_v11 = vld [vmem:[%s5600_s2 + $0x60] sm:$0xff] }
 0x194   :  { %776 = vmatmul.f32.gmra.mxu1 %v506_v11  ;;  %v567_v11 = vld [vmem:[%s5600_s2 + $0x248] sm:$0xff] }
 0x195   :  { %974 = vmatpush.msrb.mxu2 %v3523_v7  ;;  %v501_v7 = vld [vmem:[%s5600_s2 + $0x38] sm:$0xff] }
 0x197   :  { %975 = vmatpush.msrb.mxu2 %v3511_v3  ;;  %v497_v3 = vld [vmem:[%s5600_s2 + $0x18] sm:$0xff] }
 0x198   :  { %v407_v56 = vpop.f32.mrf.mxu0  ;;  %976 = vmatmul.f32.vlgmr.msrb.gmra.mxu2 %v495_v63  ;;  %1394 = vmatmul.f32.vlgmr.msrb.gmra.mxu0 %v497_v3  ;;  %v557_v63 = vld [vmem:[%s5600_s2 + $0x1f8] sm:$0xff] }
 0x19c   :  { %779 = vmatmul.f32.gmra.mxu1 %v510_v15 }
 0x1a0   :  { %v410_v58 = vpop.f32.mrf.mxu0  ;;  %979 = vmatmul.f32.gmra.mxu2 %v499_v2  ;;  %1397 = vmatmul.f32.gmra.mxu0 %v501_v7  ;;  %v548_v2 = vld [vmem:[%s5600_s2 + $0x1b0] sm:$0xff]  ;;  %v562_v7 = vld [vmem:[%s5600_s2 + $0x220] sm:$0xff] }
 0x1a4   :  { %782 = vmatmul.f32.gmra.mxu1 %v514_v20 }
 0x1a8   :  { %v413_v59 = vpop.f32.mrf.mxu0  ;;  %982 = vmatmul.f32.gmra.mxu2 %v503_v6  ;;  %1400 = vmatmul.f32.gmra.mxu0 %v505_v10  ;;  %v561_v6 = vld [vmem:[%s5600_s2 + $0x218] sm:$0xff] }
 0x1ac   :  { %785 = vmatmul.f32.gmra.mxu1 %v518_v23 }
 0x1b0   :  { %v416_v60 = vpop.f32.mrf.mxu0  ;;  %985 = vmatmul.f32.gmra.mxu2 %v507_v9  ;;  %1403 = vmatmul.f32.gmra.mxu0 %v509_v14  ;;  %v552_v9 = vld [vmem:[%s5600_s2 + $0x1d0] sm:$0xff]  ;;  %v566_v14 = vld [vmem:[%s5600_s2 + $0x240] sm:$0xff] }
 0x1b4   :  { %788 = vmatmul.f32.gmra.mxu1 %v522_v27  ;;  %v575_v27 = vld [vmem:[%s5600_s2 + $0x288] sm:$0xff] }
 0x1b8   :  { %v419_v61 = vpop.f32.mrf.mxu0  ;;  %988 = vmatmul.f32.gmra.mxu2 %v511_v12  ;;  %1406 = vmatmul.f32.gmra.mxu0 %v513_v18  ;;  %v571_v18 = vld [vmem:[%s5600_s2 + $0x268] sm:$0xff] }
 0x1bc   :  { %791 = vmatmul.f32.gmra.mxu1 %v526_v31  ;;  %v574_v31 = vld [vmem:[%s5600_s2 + $0x280] sm:$0xff] }
 0x1c0   :  { %v422_v62 = vpop.f32.mrf.mxu0  ;;  %991 = vmatmul.f32.gmra.mxu2 %v515_v16  ;;  %1409 = vmatmul.f32.gmra.mxu0 %v517_v22  ;;  %v556_v16 = vld [vmem:[%s5600_s2 + $0x1f0] sm:$0xff]  ;;  %v570_v22 = vld [vmem:[%s5600_s2 + $0x260] sm:$0xff] }
 0x1c4   :  { %794 = vmatmul.f32.gmra.mxu1 %v530_v35 }
 0x1c8   :  { %v425_v1 = vpop.f32.mrf.mxu0  ;;  %994 = vmatmul.f32.gmra.mxu2 %v519_v19  ;;  %1412 = vmatmul.f32.gmra.mxu0 %v521_v26  ;;  %v569_v19 = vld [vmem:[%s5600_s2 + $0x258] sm:$0xff] }
 0x1cc   :  { %797 = vmatmul.f32.gmra.mxu1 %v534_v39 }
 0x1d0   :  { %v428_v5 = vpop.f32.mrf.mxu0  ;;  %997 = vmatmul.f32.gmra.mxu2 %v523_v24  ;;  %1415 = vmatmul.f32.gmra.mxu0 %v525_v30 }
 0x1d1   :  { %1174 = vmatpush.msrb.mxu3 %v428_v5 }
 0x1d3   :  { %1175 = vmatpush.msrb.mxu3 %v425_v1 }
 0x1d4   :  { %800 = vmatmul.f32.gmra.mxu1 %v538_v43  ;;  %v578_v43 = vld [vmem:[%s5600_s2 + $0x2a0] sm:$0xff] }
 0x1d5   :  { %1176 = vmatpush.msrb.mxu3 %v422_v62  ;;  %v768_v62 = vpop.f32.mrf.mxu1 }
 0x1d7   :  { %1177 = vmatpush.msrb.mxu3 %v419_v61  ;;  %v544_v61 = vld [vmem:[%s5600_s2 + $0x190] sm:$0xff] }
 0x1d8   :  { %1000 = vmatmul.f32.gmra.mxu2 %v527_v28  ;;  %1418 = vmatmul.f32.gmra.mxu0 %v529_v34 }
 0x1d9   :  { %1178 = vmatpush.msrb.mxu3 %v416_v60  ;;  %v559_v60 = vld [vmem:[%s5600_s2 + $0x208] sm:$0xff] }
 0x1db   :  { %1179 = vmatpush.msrb.mxu3 %v413_v59  ;;  %v554_v59 = vld [vmem:[%s5600_s2 + $0x1e0] sm:$0xff] }
 0x1dc   :  { %803 = vmatmul.f32.gmra.mxu1 %v542_v47 }
 0x1dd   :  { %1180 = vmatpush.msrb.mxu3 %v410_v58  ;;  %v553_v58 = vld [vmem:[%s5600_s2 + $0x1d8] sm:$0xff]  ;;  %v771_v5 = vpop.f32.mrf.mxu1 }
 0x1df   :  { %1181 = vmatpush.msrb.mxu3 %v407_v56  ;;  %v555_v56 = vld [vmem:[%s5600_s2 + $0x1e8] sm:$0xff] }
 0x1e0   :  { %1003 = vmatmul.f32.gmra.mxu2 %v531_v32  ;;  %1421 = vmatmul.f32.gmra.mxu0 %v533_v38  ;;  %v579_v38 = vld [vmem:[%s5600_s2 + $0x2a8] sm:$0xff] }
 0x1e1   :  { %1182 = vmatpush.msrb.mxu3 %v404_v54  ;;  %v549_v54 = vld [vmem:[%s5600_s2 + $0x1b8] sm:$0xff] }
 0x1e3   :  { %1183 = vmatpush.msrb.mxu3 %v401_v52  ;;  %v551_v52 = vld [vmem:[%s5600_s2 + $0x1c8] sm:$0xff] }
 0x1e4   :  { %806 = vmatmul.f32.gmra.mxu1 %v546_v51 }
 0x1e5   :  { %1184 = vmatpush.msrb.mxu3 %v3594_v50  ;;  %v545_v50 = vld [vmem:[%s5600_s2 + $0x198] sm:$0xff]  ;;  %v774_v12 = vpop.f32.mrf.mxu1 }
 0x1e6   :  { %1185 = vmatmul.f32.vlgmr.msrb.gmra.mxu3 %v496_v13  ;;  %v565_v13 = vld [vmem:[%s5600_s2 + $0x238] sm:$0xff] }
 0x1e8   :  { %1006 = vmatmul.f32.gmra.mxu2 %v535_v36  ;;  %1424 = vmatmul.f32.gmra.mxu0 %v537_v42  ;;  %v564_v36 = vld [vmem:[%s5600_s2 + $0x230] sm:$0xff] }
 0x1ec   :  { %809 = vmatmul.f32.gmra.mxu1 %v550_v55  ;;  %v582_v55 = vld [vmem:[%s5600_s2 + $0x2c0] sm:$0xff] }
 0x1ee   :  { %1188 = vmatmul.f32.gmra.mxu3 %v500_v17 }
 0x1f0   :  { %1009 = vmatmul.f32.gmra.mxu2 %v539_v40  ;;  %1427 = vmatmul.f32.gmra.mxu0 %v541_v46 }
 0x1f4   :  { %812 = vmatmul.f32.gmra.mxu1 %v554_v59 }
 0x1f6   :  { %1191 = vmatmul.f32.gmra.mxu3 %v504_v21  ;;  %v3828_v21 = vld [vmem:[%s5598_s5 + $0x8] ss:$0 sm:$0xff] }
 0x1f7   :  { %v769_v24 = vadd.f32 %v3828_v21, %v768_v62  ;;  %v772_v35 = vadd.f32 %v3828_v21, %v771_v5  ;;  %v775_v47 = vadd.f32 %v3828_v21, %v774_v12  ;;  %v587_v62 = vld [vmem:[%s5600_s2 + $0x2e8] sm:$0xff] }
 0x1f8   :  { %1012 = vmatmul.f32.gmra.mxu2 %v543_v44  ;;  %1430 = vmatmul.f32.gmra.mxu0 %v545_v50  ;;  %v583_v50 = vld [vmem:[%s5600_s2 + $0x2c8] sm:$0xff] }
 0x1fc   :  { %815 = vmatmul.f32.gmra.mxu1 %v558_v0 }
 0x1fe   :  { %1194 = vmatmul.f32.gmra.mxu3 %v508_v25  ;;  %v560_v25 = vld [vmem:[%s5600_s2 + $0x210] sm:$0xff] }
 0x200   :  { %1015 = vmatmul.f32.gmra.mxu2 %v547_v48  ;;  %1433 = vmatmul.f32.gmra.mxu0 %v549_v54  ;;  %v568_v48 = vld [vmem:[%s5600_s2 + $0x250] sm:$0xff] }
 0x204   :  { %818 = vmatmul.f32.gmra.mxu1 %v562_v7 }
 0x206   :  { %1197 = vmatmul.f32.gmra.mxu3 %v512_v29  ;;  %v573_v29 = vld [vmem:[%s5600_s2 + $0x278] sm:$0xff] }
 0x208   :  { %1018 = vmatmul.f32.gmra.mxu2 %v551_v52  ;;  %1436 = vmatmul.f32.gmra.mxu0 %v553_v58 }
 0x20c   :  { %821 = vmatmul.f32.gmra.mxu1 %v566_v14  ;;  %v589_v14 = vld [vmem:[%s5600_s2 + $0x2f8] sm:$0xff] }
 0x20e   :  { %1200 = vmatmul.f32.gmra.mxu3 %v516_v33 }
 0x210   :  { %1021 = vmatmul.f32.gmra.mxu2 %v555_v56  ;;  %1439 = vmatmul.f32.gmra.mxu0 %v557_v63 }
 0x211   :  { %v777_v20 = vpop.f32.mrf.mxu1 }
 0x212   :  { %v778_v59 = vadd.f32 %v3828_v21, %v777_v20 }
 0x214   :  { %824 = vmatmul.f32.gmra.mxu1 %v570_v22 }
 0x215   :  { %v1395_v3 = vpop.f32.mrf.mxu0 }
 0x216   :  { %1203 = vmatmul.f32.gmra.mxu3 %v520_v37 }
 0x218   :  { %1024 = vmatmul.f32.gmra.mxu2 %v559_v60  ;;  %1442 = vmatmul.f32.gmra.mxu0 %v561_v6  ;;  %v572_v60 = vld [vmem:[%s5600_s2 + $0x270] sm:$0xff] }
 0x219   :  { %v780_v28 = vpop.f32.mrf.mxu1 }
 0x21a   :  { %v781_v7 = vadd.f32 %v3828_v21, %v780_v28  ;;  %v593_v28 = vld [vmem:[%s5600_s2 + $0x318] sm:$0xff] }
 0x21b   :  { %v977_v1 = vpop.f32.mrf.mxu2 }
 0x21c   :  { %v978_v30 = vadd.f32 %v977_v1, %v769_v24  ;;  %827 = vmatmul.f32.gmra.mxu1 %v574_v31  ;;  %v585_v1 = vld [vmem:[%s5600_s2 + $0x2d8] sm:$0xff] }
 0x21d   :  { %v1398_v10 = vpop.f32.mrf.mxu0 }
 0x21e   :  { %1206 = vmatmul.f32.gmra.mxu3 %v524_v41  ;;  %v577_v41 = vld [vmem:[%s5600_s2 + $0x298] sm:$0xff] }
 0x220   :  { %1027 = vmatmul.f32.gmra.mxu2 %v563_v4  ;;  %1445 = vmatmul.f32.gmra.mxu0 %v565_v13 }
 0x221   :  { %v783_v40 = vpop.f32.mrf.mxu1 }
 0x222   :  { %v784_v22 = vadd.f32 %v3828_v21, %v783_v40 }
 0x223   :  { %v980_v8 = vpop.f32.mrf.mxu2 }
 0x224   :  { %v981_v42 = vadd.f32 %v980_v8, %v772_v35  ;;  %830 = vmatmul.f32.gmra.mxu1 %v578_v43  ;;  %v576_v8 = vld [vmem:[%s5600_s2 + $0x290] sm:$0xff]  ;;  %v598_v43 = vld [vmem:[%s5600_s2 + $0x340] sm:$0xff] }
 0x225   :  { %v1401_v17 = vpop.f32.mrf.mxu0  ;;  %v584_v35 = vld [vmem:[%s5600_s2 + $0x2d0] sm:$0xff] }
 0x226   :  { %1209 = vmatmul.f32.gmra.mxu3 %v528_v45 }
 0x228   :  { %1030 = vmatmul.f32.gmra.mxu2 %v567_v11  ;;  %1448 = vmatmul.f32.gmra.mxu0 %v569_v19 }
 0x229   :  { %v786_v52 = vpop.f32.mrf.mxu1 }
 0x22b   :  { %v983_v15 = vpop.f32.mrf.mxu2 }
 0x22c   :  { %v984_v54 = vadd.f32 %v983_v15, %v775_v47  ;;  %833 = vmatmul.f32.gmra.mxu1 %v582_v55 }
 0x22d   :  { %v3837_v26 = vpop.f32.mrf.mxu0 }
 0x22e   :  { %1212 = vmatmul.f32.gmra.mxu3 %v532_v49 }
 0x230   :  { %1033 = vmatmul.f32.gmra.mxu2 %v571_v18  ;;  %1451 = vmatmul.f32.gmra.mxu0 %v573_v29 }
 0x231   :  { %v789_v0 = vpop.f32.mrf.mxu1 }
 0x232   :  { %v790_v47 = vadd.f32 %v3828_v21, %v789_v0 }
 0x233   :  { %v986_v23 = vpop.f32.mrf.mxu2 }
 0x235   :  { %v3852_v37 = vpop.f32.mrf.mxu0 }
 0x236   :  { %1215 = vmatmul.f32.gmra.mxu3 %v536_v53  ;;  %v581_v53 = vld [vmem:[%s5600_s2 + $0x2b8] sm:$0xff] }
 0x238   :  { %1036 = vmatmul.f32.gmra.mxu2 %v575_v27  ;;  %1454 = vmatmul.f32.gmra.mxu0 %v577_v41  ;;  %v597_v41 = vld [vmem:[%s5600_s2 + $0x338] sm:$0xff] }
 0x239   :  { %v792_v12 = vpop.f32.mrf.mxu1 }
 0x23a   :  { %v793_v13 = vadd.f32 %v3828_v21, %v792_v12 }
 0x23b   :  { %v989_v32 = vpop.f32.mrf.mxu2 }
 0x23c   :  { %v990_v15 = vadd.f32 %v989_v32, %v781_v7  ;;  %v596_v7 = vld [vmem:[%s5600_s2 + $0x330] sm:$0xff] }
 0x23d   :  { %v3871_v49 = vpop.f32.mrf.mxu0 }
 0x23e   :  { %1218 = vmatmul.f32.gmra.mxu3 %v540_v57 }
 0x240   :  { %1039 = vmatmul.f32.gmra.mxu2 %v579_v38  ;;  %1457 = vmatmul.f32.gmra.mxu0 %v581_v53 }
 0x241   :  { %v3938_v27 = vpop.f32.mrf.mxu1 }
 0x243   :  { %v3865_v44 = vpop.f32.mrf.mxu2 }
 0x244   :  { %v993_v29 = vadd.f32 %v3865_v44, %v784_v22  ;;  %v613_v22 = vld [vmem:[%s5600_s2 + $0x3b8] sm:$0xff] }
 0x246   :  { %1221 = vmatmul.f32.gmra.mxu3 %v544_v61  ;;  %v3890_v61 = vpop.f32.mrf.mxu0 }
 0x248   :  { %1042 = vmatmul.f32.gmra.mxu2 %v583_v50  ;;  %1460 = vmatmul.f32.gmra.mxu0 %v585_v1  ;;  %v603_v50 = vld [vmem:[%s5600_s2 + $0x368] sm:$0xff] }
 0x249   :  { %v3961_v40 = vpop.f32.mrf.mxu1 }
 0x24b   :  { %v3884_v56 = vpop.f32.mrf.mxu2 }
 0x24e   :  { %1224 = vmatmul.f32.gmra.mxu3 %v548_v2  ;;  %v987_v2 = vadd.f32 %v986_v23, %v778_v59  ;;  %v580_v23 = vld [vmem:[%s5600_s2 + $0x2b0] sm:$0xff] }
 0x250   :  { %1045 = vmatmul.f32.gmra.mxu2 %v587_v62  ;;  %1463 = vmatmul.f32.gmra.mxu0 %v589_v14  ;;  %v607_v62 = vld [vmem:[%s5600_s2 + $0x388] sm:$0xff]  ;;  %v610_v14 = vld [vmem:[%s5600_s2 + $0x3a0] sm:$0xff] }
 0x251   :  { %v3984_v53 = vpop.f32.mrf.mxu1 }
 0x253   :  { %v3903_v4 = vpop.f32.mrf.mxu2 }
 0x254   :  { %v999_v55 = vadd.f32 %v3903_v4, %v790_v47  ;;  %v622_v47 = vld [vmem:[%s5600_s2 + $0x400] sm:$0xff] }
 0x256   :  { %1227 = vmatmul.f32.gmra.mxu3 %v552_v9  ;;  %v3909_v9 = vpop.f32.mrf.mxu0 }
 0x258   :  { %1466 = vmatmul.f32.gmra.mxu0 %v593_v28  ;;  %v604_v28 = vld [vmem:[%s5600_s2 + $0x370] sm:$0xff] }
 0x259   :  { %v4006_v1 = vpop.f32.mrf.mxu1 }
 0x25e   :  { %1230 = vmatmul.f32.gmra.mxu3 %v556_v16  ;;  %v590_v16 = vld [vmem:[%s5600_s2 + $0x300] sm:$0xff]  ;;  %v3930_v24 = vpop.f32.mrf.mxu0 }
 0x260   :  { %1469 = vmatmul.f32.gmra.mxu0 %v597_v41  ;;  %v608_v41 = vld [vmem:[%s5600_s2 + $0x390] sm:$0xff] }
 0x261   :  { %v4028_v12 = vpop.f32.mrf.mxu1 }
 0x266   :  { %1233 = vmatmul.f32.gmra.mxu3 %v560_v25  ;;  %v595_v25 = vld [vmem:[%s5600_s2 + $0x328] sm:$0xff] }
 0x269   :  { %v1186_v33 = vpop.f32.mrf.mxu3 }
 0x26a   :  { %v1187_v34 = vadd.f32 %v1186_v33, %v978_v30  ;;  %v594_v30 = vld [vmem:[%s5600_s2 + $0x320] sm:$0xff] }
 0x26c   :  { %v3857_v39 = vadd.f32 %v1395_v3, %v1187_v34  ;;  %v586_v3 = vld [vmem:[%s5600_s2 + $0x2e0] sm:$0xff]  ;;  %v787_v34 = vadd.f32 %v3828_v21, %v786_v52 }
 0x26d   :  { %836 = vmatmul.f32.gmra.mxu1 %v586_v3  ;;  %v606_v3 = vld [vmem:[%s5600_s2 + $0x380] sm:$0xff] }
 0x26e   :  { %1236 = vmatmul.f32.gmra.mxu3 %v564_v36  ;;  %v3953_v36 = vpop.f32.mrf.mxu0 }
 0x271   :  { %v1189_v45 = vpop.f32.mrf.mxu3 }
 0x272   :  { %v1190_v46 = vadd.f32 %v1189_v45, %v981_v42  ;;  %v996_v42 = vadd.f32 %v3884_v56, %v787_v34  ;;  %v602_v56 = vld [vmem:[%s5600_s2 + $0x360] sm:$0xff] }
 0x273   :  { %v618_v34 = vld [vmem:[%s5600_s2 + $0x3e0] sm:$0xff] }
 0x274   :  { %v3876_v51 = vadd.f32 %v1398_v10, %v1190_v46  ;;  %v591_v10 = vld [vmem:[%s5600_s2 + $0x308] sm:$0xff] }
 0x275   :  { %1048 = vmatmul.f32.gmra.mxu2 %v591_v10  ;;  %839 = vmatmul.f32.gmra.mxu1 %v590_v16 }
 0x276   :  { %1239 = vmatmul.f32.gmra.mxu3 %v568_v48  ;;  %v588_v48 = vld [vmem:[%s5600_s2 + $0x2f0] sm:$0xff] }
 0x279   :  { %v1192_v57 = vpop.f32.mrf.mxu3 }
 0x27a   :  { %v1193_v58 = vadd.f32 %v1192_v57, %v984_v54  ;;  %v601_v54 = vld [vmem:[%s5600_s2 + $0x358] sm:$0xff] }
 0x27b   :  { %1472 = vmatmul.f32.gmra.mxu0 %v601_v54  ;;  %v612_v54 = vld [vmem:[%s5600_s2 + $0x3b0] sm:$0xff] }
 0x27c   :  { %v3895_v63 = vadd.f32 %v1401_v17, %v1193_v58  ;;  %v1001_v17 = vpop.f32.mrf.mxu2 }
 0x27d   :  { %v3924_v18 = vadd.f32 %v1001_v17, %v793_v13  ;;  %1051 = vmatmul.f32.gmra.mxu2 %v595_v25  ;;  %842 = vmatmul.f32.gmra.mxu1 %v594_v30  ;;  %v609_v13 = vld [vmem:[%s5600_s2 + $0x398] sm:$0xff]  ;;  %v600_v17 = vld [vmem:[%s5600_s2 + $0x350] sm:$0xff]  ;;  %v619_v30 = vld [vmem:[%s5600_s2 + $0x3e8] sm:$0xff] }
 0x27e   :  { %1242 = vmatmul.f32.gmra.mxu3 %v572_v60  ;;  %v592_v60 = vld [vmem:[%s5600_s2 + $0x310] sm:$0xff] }
 0x281   :  { %v1195_v5 = vpop.f32.mrf.mxu3 }
 0x282   :  { %v1196_v6 = vadd.f32 %v1195_v5, %v987_v2  ;;  %v605_v2 = vld [vmem:[%s5600_s2 + $0x378] sm:$0xff] }
 0x283   :  { %1475 = vmatmul.f32.gmra.mxu0 %v605_v2 }
 0x284   :  { %v3915_v11 = vadd.f32 %v3837_v26, %v1196_v6  ;;  %v3947_v31 = vpop.f32.mrf.mxu2 }
 0x285   :  { %845 = vmatmul.f32.gmra.mxu1 %v598_v43  ;;  %v623_v43 = vld [vmem:[%s5600_s2 + $0x408] sm:$0xff] }
 0x286   :  { %1245 = vmatmul.f32.gmra.mxu3 %v576_v8 }
 0x289   :  { %v1198_v20 = vpop.f32.mrf.mxu3 }
 0x28a   :  { %v1199_v19 = vadd.f32 %v1198_v20, %v990_v15  ;;  %v615_v20 = vld [vmem:[%s5600_s2 + $0x3c8] sm:$0xff] }
 0x28b   :  { %1478 = vmatmul.f32.gmra.mxu0 %v609_v13  ;;  %v630_v13 = vld [vmem:[%s5600_s2 + $0x440] sm:$0xff] }
 0x28c   :  { %v3936_v26 = vadd.f32 %v3852_v37, %v1199_v19  ;;  %v599_v37 = vld [vmem:[%s5600_s2 + $0x348] sm:$0xff]  ;;  %v3970_v44 = vpop.f32.mrf.mxu2  ;;  %v810_v19 = vpop.f32.mrf.mxu1 }
 0x28d   :  { %1054 = vmatmul.f32.gmra.mxu2 %v599_v37  ;;  %848 = vmatmul.f32.gmra.mxu1 %v602_v56  ;;  %v627_v56 = vld [vmem:[%s5600_s2 + $0x428] sm:$0xff] }
 0x28e   :  { %1248 = vmatmul.f32.gmra.mxu3 %v580_v23  ;;  %v614_v23 = vld [vmem:[%s5600_s2 + $0x3c0] sm:$0xff] }
 0x291   :  { %v1201_v32 = vpop.f32.mrf.mxu3 }
 0x292   :  { %v1202_v33 = vadd.f32 %v1201_v32, %v993_v29 }
 0x293   :  { %1481 = vmatmul.f32.gmra.mxu0 %v613_v22  ;;  %v808_v22 = vadd.f32 %v3828_v21, %v4028_v12  ;;  %v633_v12 = vld [vmem:[%s5600_s2 + $0x458] sm:$0xff] }
 0x294   :  { %v3959_v38 = vadd.f32 %v3871_v49, %v1202_v33  ;;  %v3976_v49 = vpop.f32.mrf.mxu0  ;;  %v3993_v57 = vpop.f32.mrf.mxu2  ;;  %v617_v33 = vld [vmem:[%s5600_s2 + $0x3d8] sm:$0xff] }
 0x295   :  { %1057 = vmatmul.f32.gmra.mxu2 %v603_v50  ;;  %851 = vmatmul.f32.gmra.mxu1 %v606_v3  ;;  %v813_v32 = vpop.f32.mrf.mxu1  ;;  %v616_v3 = vld [vmem:[%s5600_s2 + $0x3d0] sm:$0xff] }
 0x296   :  { %1251 = vmatmul.f32.gmra.mxu3 %v584_v35 }
 0x299   :  { %v1204_v45 = vpop.f32.mrf.mxu3 }
 0x29a   :  { %v1205_v46 = vadd.f32 %v1204_v45, %v996_v42 }
 0x29b   :  { %1484 = vmatmul.f32.gmra.mxu0 %v617_v33  ;;  %v635_v33 = vld [vmem:[%s5600_s2 + $0x468] sm:$0xff] }
 0x29c   :  { %v3982_v52 = vadd.f32 %v3890_v61, %v1205_v46  ;;  %v3998_v61 = vpop.f32.mrf.mxu0  ;;  %v4014_v4 = vpop.f32.mrf.mxu2  ;;  %v621_v46 = vld [vmem:[%s5600_s2 + $0x3f8] sm:$0xff] }
 0x29d   :  { %1060 = vmatmul.f32.gmra.mxu2 %v607_v62  ;;  %854 = vmatmul.f32.gmra.mxu1 %v610_v14  ;;  %v816_v45 = vpop.f32.mrf.mxu1 }
 0x29e   :  { %1254 = vmatmul.f32.gmra.mxu3 %v588_v48 }
 0x2a1   :  { %v1207_v58 = vpop.f32.mrf.mxu3 }
 0x2a2   :  { %v1208_v59 = vadd.f32 %v1207_v58, %v999_v55 }
 0x2a3   :  { %1487 = vmatmul.f32.gmra.mxu0 %v621_v46 }
 0x2a4   :  { %v4004_v0 = vadd.f32 %v3909_v9, %v1208_v59  ;;  %v4020_v8 = vpop.f32.mrf.mxu0  ;;  %v611_v9 = vld [vmem:[%s5600_s2 + $0x3a8] sm:$0xff]  ;;  %v4036_v15 = vpop.f32.mrf.mxu2  ;;  %v625_v59 = vld [vmem:[%s5600_s2 + $0x418] sm:$0xff] }
 0x2a5   :  { %1063 = vmatmul.f32.gmra.mxu2 %v611_v9  ;;  %857 = vmatmul.f32.gmra.mxu1 %v614_v23  ;;  %v4096_v58 = vpop.f32.mrf.mxu1  ;;  %v629_v9 = vld [vmem:[%s5600_s2 + $0x438] sm:$0xff]  ;;  %v814_v23 = vadd.f32 %v3828_v21, %v813_v32  ;;  %v802_v32 = vadd.f32 %v3828_v21, %v3984_v53  ;;  %v796_v53 = vadd.f32 %v3828_v21, %v3938_v27 }
 0x2a6   :  { %1257 = vmatmul.f32.gmra.mxu3 %v592_v60  ;;  %v626_v60 = vld [vmem:[%s5600_s2 + $0x420] sm:$0xff] }
 0x2a9   :  { %v1210_v5 = vpop.f32.mrf.mxu3 }
 0x2aa   :  { %v1211_v6 = vadd.f32 %v1210_v5, %v3924_v18 }
 0x2ab   :  { %1490 = vmatmul.f32.gmra.mxu0 %v625_v59 }
 0x2ac   :  { %v4026_v10 = vadd.f32 %v3930_v24, %v1211_v6  ;;  %v4043_v18 = vpop.f32.mrf.mxu0  ;;  %v1019_v24 = vpop.f32.mrf.mxu2  ;;  %v631_v6 = vld [vmem:[%s5600_s2 + $0x448] sm:$0xff] }
 0x2ad   :  { %1066 = vmatmul.f32.gmra.mxu2 %v615_v20  ;;  %860 = vmatmul.f32.gmra.mxu1 %v618_v34  ;;  %v805_v34 = vadd.f32 %v3828_v21, %v4006_v1  ;;  %v634_v1 = vld [vmem:[%s5600_s2 + $0x460] sm:$0xff] }
 0x2ae   :  { %1260 = vmatmul.f32.gmra.mxu3 %v596_v7  ;;  %v4114_v7 = vpop.f32.mrf.mxu1 }
 0x2b1   :  { %v4038_v16 = vpop.f32.mrf.mxu3 }
 0x2b3   :  { %1493 = vmatmul.f32.gmra.mxu0 %v629_v9 }
 0x2b4   :  { %v4059_v29 = vpop.f32.mrf.mxu0  ;;  %v1022_v35 = vpop.f32.mrf.mxu2 }
 0x2b5   :  { %1069 = vmatmul.f32.gmra.mxu2 %v619_v30  ;;  %863 = vmatmul.f32.gmra.mxu1 %v622_v47  ;;  %v1023_v46 = vadd.f32 %v1022_v35, %v814_v23  ;;  %v799_v47 = vadd.f32 %v3828_v21, %v3961_v40  ;;  %v1011_v35 = vadd.f32 %v3993_v57, %v802_v32  ;;  %v639_v40 = vld [vmem:[%s5600_s2 + $0x488] sm:$0xff] }
 0x2b6   :  { %1263 = vmatmul.f32.gmra.mxu3 %v600_v17  ;;  %v811_v17 = vadd.f32 %v3828_v21, %v810_v19 }
 0x2b8   :  { %v1020_v19 = vadd.f32 %v1019_v24, %v811_v17  ;;  %v637_v17 = vld [vmem:[%s5600_s2 + $0x478] sm:$0xff] }
 0x2b9   :  { %v4054_v25 = vpop.f32.mrf.mxu3 }
 0x2bb   :  { %1496 = vmatmul.f32.gmra.mxu0 %v633_v12  ;;  %v628_v12 = vld [vmem:[%s5600_s2 + $0x430] sm:$0xff] }
 0x2bc   :  { %v4075_v42 = vpop.f32.mrf.mxu0  ;;  %v4086_v48 = vpop.f32.mrf.mxu2 }
 0x2bd   :  { %1072 = vmatmul.f32.gmra.mxu2 %v623_v43  ;;  %866 = vmatmul.f32.gmra.mxu1 %v626_v60  ;;  %v1017_v43 = vadd.f32 %v4036_v15, %v808_v22 }
 0x2be   :  { %1266 = vmatmul.f32.gmra.mxu3 %v604_v28  ;;  %v620_v28 = vld [vmem:[%s5600_s2 + $0x3f0] sm:$0xff] }
 0x2c1   :  { %v4070_v37 = vpop.f32.mrf.mxu3 }
 0x2c3   :  { %1499 = vmatmul.f32.gmra.mxu0 %v637_v17 }
 0x2c4   :  { %v4091_v55 = vpop.f32.mrf.mxu0  ;;  %v4104_v62 = vpop.f32.mrf.mxu2 }
 0x2c5   :  { %1075 = vmatmul.f32.gmra.mxu2 %v627_v56  ;;  %869 = vmatmul.f32.gmra.mxu1 %v630_v13 }
 0x2c6   :  { %1269 = vmatmul.f32.gmra.mxu3 %v608_v41  ;;  %v4138_v41 = vpop.f32.mrf.mxu1 }
 0x2c9   :  { %v1222_v50 = vpop.f32.mrf.mxu3 }
 0x2cc   :  { %v4109_v5 = vpop.f32.mrf.mxu0  ;;  %v4122_v14 = vpop.f32.mrf.mxu2 }
 0x2cd   :  { %1078 = vmatmul.f32.gmra.mxu2 %v631_v6  ;;  %872 = vmatmul.f32.gmra.mxu1 %v634_v1  ;;  %v624_v6 = vld [vmem:[%s5600_s2 + $0x410] sm:$0xff] }
 0x2ce   :  { %1272 = vmatmul.f32.gmra.mxu3 %v612_v54  ;;  %v1014_v54 = vadd.f32 %v4014_v4, %v805_v34  ;;  %v1008_v4 = vadd.f32 %v3970_v44, %v799_v47 }
 0x2d0   :  { %v1223_v27 = vadd.f32 %v1222_v50, %v1014_v54 }
 0x2d1   :  { %v1225_v2 = vpop.f32.mrf.mxu3 }
 0x2d2   :  { %v1226_v59 = vadd.f32 %v1225_v2, %v1017_v43  ;;  %v4170_v2 = vpop.f32.mrf.mxu1  ;;  %v1432_v23 = vadd.f32 %v4020_v8, %v1223_v27  ;;  %v643_v8 = vld [vmem:[%s5600_s2 + $0x4a8] sm:$0xff] }
 0x2d4   :  { %v4131_v30 = vpop.f32.mrf.mxu0  ;;  %v4149_v24 = vpop.f32.mrf.mxu2  ;;  %v1435_v22 = vadd.f32 %v4043_v18, %v1226_v59  ;;  %v1599_v32 = vmax.f32 %v1432_v23, 0.0  ;;  %v647_v59 = vld [vmem:[%s5600_s2 + $0x4c8] sm:$0xff] }
 0x2d5   :  { %1081 = vmatmul.f32.gmra.mxu2 %v635_v33 }
 0x2d6   :  { %1275 = vmatmul.f32.gmra.mxu3 %v616_v3  ;;  %v817_v3 = vadd.f32 %v3828_v21, %v816_v45  ;;  %v1005_v45 = vadd.f32 %v3947_v31, %v796_v53  ;;  %v1600_v34 = vmax.f32 %v1435_v22, 0.0  ;;  %v1591_v22 = vmax.f32 %v3936_v26, 0.0 }
 0x2d7   :  { %v1589_v26 = vmax.f32 %v3895_v63, 0.0 }
 0x2d8   :  { %v1026_v44 = vadd.f32 %v4086_v48, %v817_v3  ;;  %v1214_v18 = vadd.f32 %v4038_v16, %v1005_v45  ;;  %v1595_v3 = vmax.f32 %v4026_v10, 0.0  ;;  %v1593_v10 = vmax.f32 %v3982_v52, 0.0 }
 0x2d9   :  { %v1228_v20 = vpop.f32.mrf.mxu3  ;;  %v1592_v45 = vmax.f32 %v3959_v38, 0.0 }
 0x2da   :  { %v1229_v56 = vadd.f32 %v1228_v20, %v1020_v19  ;;  %v1220_v20 = vadd.f32 %v4070_v37, %v1011_v35  ;;  %v820_v19 = vadd.f32 %v3828_v21, %v4096_v58  ;;  %v4201_v43 = vpop.f32.mrf.mxu1  ;;  %v641_v58 = vld [vmem:[%s5600_s2 + $0x498] sm:$0xff] }
 0x2db   :  { %1502 = vmatmul.f32.gmra.mxu0 %v641_v58  ;;  %v659_v58 = vld [vmem:[%s5600_s2 + $0x528] sm:$0xff] }
 0x2dc   :  { %v4161_v9 = vpop.f32.mrf.mxu0  ;;  %v1438_v13 = vadd.f32 %v4059_v29, %v1229_v56  ;;  %v638_v29 = vld [vmem:[%s5600_s2 + $0x480] sm:$0xff]  ;;  %v4181_v31 = vpop.f32.mrf.mxu2  ;;  %v1429_v48 = vadd.f32 %v3998_v61, %v1220_v20  ;;  %v1029_v1 = vadd.f32 %v4104_v62, %v820_v19  ;;  %v632_v62 = vld [vmem:[%s5600_s2 + $0x450] sm:$0xff]  ;;  %v651_v20 = vld [vmem:[%s5600_s2 + $0x4e8] sm:$0xff] }
 0x2dd   :  { %1084 = vmatmul.f32.gmra.mxu2 %v639_v40  ;;  %875 = vmatmul.f32.gmra.mxu1 %v638_v29 }
 0x2de   :  { %1278 = vmatmul.f32.gmra.mxu3 %v620_v28  ;;  %v1601_v37 = vmax.f32 %v1438_v13, 0.0  ;;  %v1598_v47 = vmax.f32 %v1429_v48, 0.0  ;;  %v1587_v48 = vmax.f32 %v3857_v39, 0.0 }
 0x2e1   :  { %v1231_v15 = vpop.f32.mrf.mxu3 }
 0x2e2   :  { %v1232_v60 = vadd.f32 %v1231_v15, %v1023_v46  ;;  %v1423_v46 = vadd.f32 %v3953_v36, %v1214_v18  ;;  %v823_v36 = vadd.f32 %v3828_v21, %v4114_v7  ;;  %v645_v7 = vld [vmem:[%s5600_s2 + $0x4b8] sm:$0xff] }
 0x2e3   :  { %1505 = vmatmul.f32.gmra.mxu0 %v645_v7  ;;  %v662_v7 = vld [vmem:[%s5600_s2 + $0x540] sm:$0xff] }
 0x2e4   :  { %v1441_v57 = vadd.f32 %v4075_v42, %v1232_v60  ;;  %v1217_v42 = vadd.f32 %v4054_v25, %v1008_v4  ;;  %v4192_v25 = vpop.f32.mrf.mxu0  ;;  %v1596_v15 = vmax.f32 %v1423_v46, 0.0  ;;  %v1032_v40 = vadd.f32 %v4122_v14, %v823_v36 }
 0x2e5   :  { %1087 = vmatmul.f32.gmra.mxu2 %v643_v8  ;;  %v1594_v4 = vmax.f32 %v4004_v0, 0.0  ;;  %v826_v14 = vadd.f32 %v3828_v21, %v4138_v41  ;;  %v636_v0 = vld [vmem:[%s5600_s2 + $0x470] sm:$0xff]  ;;  %v649_v41 = vld [vmem:[%s5600_s2 + $0x4d8] sm:$0xff] }
 0x2e6   :  { %1281 = vmatmul.f32.gmra.mxu3 %v624_v6  ;;  %v1602_v50 = vmax.f32 %v1441_v57, 0.0  ;;  %v1426_v16 = vadd.f32 %v3976_v49, %v1217_v42  ;;  %v642_v49 = vld [vmem:[%s5600_s2 + $0x4a0] sm:$0xff]  ;;  %v4227_v6 = vpop.f32.mrf.mxu1 }
 0x2e7   :  { %878 = vmatmul.f32.gmra.mxu1 %v642_v49  ;;  %v658_v49 = vld [vmem:[%s5600_s2 + $0x520] sm:$0xff] }
 0x2e8   :  { %1683 = vmatpush.msrb.mxu1 %v1602_v50  ;;  %v1597_v54 = vmax.f32 %v1426_v16, 0.0  ;;  %v1590_v50 = vmax.f32 %v3915_v11, 0.0  ;;  %v640_v11 = vld [vmem:[%s5600_s2 + $0x490] sm:$0xff]  ;;  %v832_v16 = vadd.f32 %v3828_v21, %v4201_v43  ;;  %v657_v43 = vld [vmem:[%s5600_s2 + $0x518] sm:$0xff] }
 0x2e9   :  { %v1234_v28 = vpop.f32.mrf.mxu3 }
 0x2ea   :  { %v1235_v33 = vadd.f32 %v1234_v28, %v1026_v44  ;;  %1684 = vmatpush.msrb.mxu1 %v1601_v37  ;;  %v1035_v44 = vadd.f32 %v4149_v24, %v826_v14  ;;  %v1588_v37 = vmax.f32 %v3876_v51, 0.0  ;;  %v829_v24 = vadd.f32 %v3828_v21, %v4170_v2  ;;  %v655_v28 = vld [vmem:[%s5600_s2 + $0x508] sm:$0xff]  ;;  %v653_v2 = vld [vmem:[%s5600_s2 + $0x4f8] sm:$0xff] }
 0x2eb   :  { %1508 = vmatmul.f32.gmra.mxu0 %v649_v41  ;;  %v665_v14 = vld [vmem:[%s5600_s2 + $0x558] sm:$0xff]  ;;  %v656_v41 = vld [vmem:[%s5600_s2 + $0x510] sm:$0xff] }
 0x2ec   :  { %v4199_v61 = vadd.f32 %v4091_v55, %v1235_v33  ;;  %1685 = vmatpush.msrb.mxu1 %v1600_v34  ;;  %v4211_v55 = vpop.f32.mrf.mxu2  ;;  %v4218_v35 = vpop.f32.mrf.mxu0  ;;  %v1038_v33 = vadd.f32 %v4181_v31, %v829_v24  ;;  %v644_v31 = vld [vmem:[%s5600_s2 + $0x4b0] sm:$0xff] }
 0x2ed   :  { %1090 = vmatmul.f32.gmra.mxu2 %v647_v59 }
 0x2ee   :  { %1284 = vmatmul.f32.gmra.mxu3 %v628_v12  ;;  %1686 = vmatpush.msrb.mxu1 %v1599_v32  ;;  %v4255_v38 = vpop.f32.mrf.mxu1 }
 0x2f0   :  { %1687 = vmatpush.msrb.mxu1 %v1598_v47  ;;  %v1041_v47 = vadd.f32 %v4211_v55, %v832_v16  ;;  %v663_v55 = vld [vmem:[%s5600_s2 + $0x548] sm:$0xff]  ;;  %v677_v16 = vld [vmem:[%s5600_s2 + $0x5b8] sm:$0xff] }
 0x2f1   :  { %v1237_v56 = vpop.f32.mrf.mxu3 }
 0x2f2   :  { %v1238_v53 = vadd.f32 %v1237_v56, %v1029_v1  ;;  %1688 = vmatpush.msrb.mxu1 %v1597_v54 }
 0x2f3   :  { %1511 = vmatmul.f32.gmra.mxu0 %v653_v2  ;;  %v673_v2 = vld [vmem:[%s5600_s2 + $0x598] sm:$0xff] }
 0x2f4   :  { %v4224_v60 = vadd.f32 %v4109_v5, %v1238_v53  ;;  %1689 = vmatpush.msrb.mxu1 %v1596_v15  ;;  %v646_v5 = vld [vmem:[%s5600_s2 + $0x4c0] sm:$0xff]  ;;  %v4237_v27 = vpop.f32.mrf.mxu2  ;;  %v4246_v17 = vpop.f32.mrf.mxu0  ;;  %v835_v53 = vadd.f32 %v3828_v21, %v4227_v6  ;;  %v648_v15 = vld [vmem:[%s5600_s2 + $0x4d0] sm:$0xff] }
 0x2f5   :  { %881 = vmatmul.f32.gmra.mxu1 %v646_v5  ;;  %1093 = vmatmul.f32.gmra.mxu2 %v651_v20  ;;  %v838_v5 = vadd.f32 %v3828_v21, %v4255_v38  ;;  %v666_v20 = vld [vmem:[%s5600_s2 + $0x560] sm:$0xff] }
 0x2f6   :  { %1287 = vmatmul.f32.gmra.mxu3 %v632_v62  ;;  %1690 = vmatpush.msrb.mxu1 %v1595_v3  ;;  %v840_v51 = vpop.f32.mrf.mxu1  ;;  %v661_v3 = vld [vmem:[%s5600_s2 + $0x538] sm:$0xff]  ;;  %v1044_v6 = vadd.f32 %v4237_v27, %v835_v53  ;;  %v667_v27 = vld [vmem:[%s5600_s2 + $0x568] sm:$0xff]  ;;  %v682_v53 = vld [vmem:[%s5600_s2 + $0x5e0] sm:$0xff] }
 0x2f7   :  { %v841_v34 = vadd.f32 %v3828_v21, %v840_v51 }
 0x2f8   :  { %1691 = vmatpush.msrb.mxu1 %v1594_v4 }
 0x2f9   :  { %v1240_v13 = vpop.f32.mrf.mxu3 }
 0x2fa   :  { %v1241_v57 = vadd.f32 %v1240_v13, %v1032_v40  ;;  %1692 = vmatpush.msrb.mxu1 %v1593_v10  ;;  %v652_v10 = vld [vmem:[%s5600_s2 + $0x4f0] sm:$0xff] }
 0x2fb   :  { %1514 = vmatmul.f32.gmra.mxu0 %v657_v43  ;;  %v668_v43 = vld [vmem:[%s5600_s2 + $0x570] sm:$0xff] }
 0x2fc   :  { %v4252_v52 = vadd.f32 %v4131_v30, %v1241_v57  ;;  %1693 = vmatpush.msrb.mxu1 %v1592_v45  ;;  %v650_v30 = vld [vmem:[%s5600_s2 + $0x4e0] sm:$0xff]  ;;  %v4265_v29 = vpop.f32.mrf.mxu2  ;;  %v4274_v18 = vpop.f32.mrf.mxu0 }
 0x2fd   :  { %884 = vmatmul.f32.gmra.mxu1 %v650_v30  ;;  %1096 = vmatmul.f32.gmra.mxu2 %v655_v28  ;;  %v675_v28 = vld [vmem:[%s5600_s2 + $0x5a8] sm:$0xff] }
 0x2fe   :  { %1290 = vmatmul.f32.gmra.mxu3 %v636_v0  ;;  %1694 = vmatpush.msrb.mxu1 %v1591_v22  ;;  %v4306_v1 = vpop.f32.mrf.mxu1  ;;  %v1047_v0 = vadd.f32 %v4265_v29, %v838_v5  ;;  %v686_v5 = vld [vmem:[%s5600_s2 + $0x600] sm:$0xff] }
 0x300   :  { %1695 = vmatpush.msrb.mxu1 %v1590_v50  ;;  %v671_v50 = vld [vmem:[%s5600_s2 + $0x588] sm:$0xff] }
 0x301   :  { %v1243_v42 = vpop.f32.mrf.mxu3 }
 0x302   :  { %v1244_v23 = vadd.f32 %v1243_v42, %v1035_v44  ;;  %1696 = vmatpush.msrb.mxu1 %v1589_v26  ;;  %v669_v26 = vld [vmem:[%s5600_s2 + $0x578] sm:$0xff]  ;;  %v670_v42 = vld [vmem:[%s5600_s2 + $0x580] sm:$0xff] }
 0x303   :  { %1517 = vmatmul.f32.gmra.mxu0 %v661_v3  ;;  %v672_v3 = vld [vmem:[%s5600_s2 + $0x590] sm:$0xff] }
 0x304   :  { %v4280_v63 = vadd.f32 %v4161_v9, %v1244_v23  ;;  %1697 = vmatpush.msrb.mxu1 %v1588_v37  ;;  %v654_v9 = vld [vmem:[%s5600_s2 + $0x500] sm:$0xff]  ;;  %v1049_v19 = vpop.f32.mrf.mxu2  ;;  %v4298_v32 = vpop.f32.mrf.mxu0 }
 0x305   :  { %887 = vmatmul.f32.gmra.mxu1 %v654_v9  ;;  %v4291_v39 = vadd.f32 %v1049_v19, %v841_v34  ;;  %1099 = vmatmul.f32.gmra.mxu2 %v659_v58  ;;  %v664_v19 = vld [vmem:[%s5600_s2 + $0x550] sm:$0xff] }
 0x306   :  { %1293 = vmatmul.f32.gmra.mxu3 %v640_v11  ;;  %1698 = vmatpush.msrb.mxu1 %v1587_v48  ;;  %v4330_v59 = vpop.f32.mrf.mxu1  ;;  %v660_v11 = vld [vmem:[%s5600_s2 + $0x530] sm:$0xff] }
 0x309   :  { %v1246_v12 = vpop.f32.mrf.mxu3 }
 0x30a   :  { %v1247_v8 = vadd.f32 %v1246_v12, %v1038_v33  ;;  %v674_v33 = vld [vmem:[%s5600_s2 + $0x5a0] sm:$0xff]  ;;  %v679_v12 = vld [vmem:[%s5600_s2 + $0x5c8] sm:$0xff] }
 0x30b   :  { %1520 = vmatmul.f32.gmra.mxu0 %v665_v14  ;;  %v676_v14 = vld [vmem:[%s5600_s2 + $0x5b0] sm:$0xff] }
 0x30c   :  { %v4304_v46 = vadd.f32 %v4192_v25, %v1247_v8  ;;  %v4315_v54 = vpop.f32.mrf.mxu2  ;;  %v4322_v36 = vpop.f32.mrf.mxu0 }
 0x30d   :  { %890 = vmatmul.f32.gmra.mxu1 %v658_v49  ;;  %1102 = vmatmul.f32.gmra.mxu2 %v663_v55  ;;  %v683_v49 = vld [vmem:[%s5600_s2 + $0x5e8] sm:$0xff] }
 0x30e   :  { %1296 = vmatmul.f32.gmra.mxu3 %v644_v31  ;;  %v4354_v45 = vpop.f32.mrf.mxu1  ;;  %v678_v31 = vld [vmem:[%s5600_s2 + $0x5c0] sm:$0xff] }
 0x311   :  { %v1249_v25 = vpop.f32.mrf.mxu3 }
 0x312   :  { %v1250_v56 = vadd.f32 %v1249_v25, %v1041_v47 }
 0x313   :  { %1523 = vmatmul.f32.gmra.mxu0 %v669_v26 }
 0x314   :  { %v4328_v62 = vadd.f32 %v4218_v35, %v1250_v56  ;;  %v4339_v40 = vpop.f32.mrf.mxu2  ;;  %v4346_v13 = vpop.f32.mrf.mxu0  ;;  %v681_v56 = vld [vmem:[%s5600_s2 + $0x5d8] sm:$0xff] }
 0x315   :  { %893 = vmatmul.f32.gmra.mxu1 %v662_v7  ;;  %1105 = vmatmul.f32.gmra.mxu2 %v667_v27  ;;  %v687_v7 = vld [vmem:[%s5600_s2 + $0x608] sm:$0xff] }
 0x316   :  { %1299 = vmatmul.f32.gmra.mxu3 %v648_v15  ;;  %v4376_v29 = vpop.f32.mrf.mxu1 }
 0x319   :  { %v1252_v35 = vpop.f32.mrf.mxu3 }
 0x31a   :  { %v1253_v4 = vadd.f32 %v1252_v35, %v1044_v6 }
 0x31b   :  { %1526 = vmatmul.f32.gmra.mxu0 %v673_v2  ;;  %v694_v2 = vld [vmem:[%s5600_s2 + $0x640] sm:$0xff] }
 0x31c   :  { %v4352_v57 = vadd.f32 %v4246_v17, %v1253_v4  ;;  %v4363_v22 = vpop.f32.mrf.mxu2  ;;  %v4368_v44 = vpop.f32.mrf.mxu0  ;;  %v685_v4 = vld [vmem:[%s5600_s2 + $0x5f8] sm:$0xff] }
 0x31d   :  { %896 = vmatmul.f32.gmra.mxu1 %v666_v20  ;;  %1108 = vmatmul.f32.gmra.mxu2 %v671_v50  ;;  %v691_v20 = vld [vmem:[%s5600_s2 + $0x628] sm:$0xff] }
 0x31e   :  { %1302 = vmatmul.f32.gmra.mxu3 %v652_v10  ;;  %v4398_v51 = vpop.f32.mrf.mxu1 }
 0x321   :  { %v1255_v17 = vpop.f32.mrf.mxu3 }
 0x322   :  { %v1256_v38 = vadd.f32 %v1255_v17, %v1047_v0 }
 0x323   :  { %1529 = vmatmul.f32.gmra.mxu0 %v677_v16  ;;  %v856_v16 = vadd.f32 %v3828_v21, %v4398_v51 }
 0x324   :  { %v4374_v30 = vadd.f32 %v4274_v18, %v1256_v38  ;;  %v4384_v23 = vpop.f32.mrf.mxu2  ;;  %v4390_v18 = vpop.f32.mrf.mxu0  ;;  %v689_v38 = vld [vmem:[%s5600_s2 + $0x618] sm:$0xff] }
 0x325   :  { %899 = vmatmul.f32.gmra.mxu1 %v670_v42  ;;  %1111 = vmatmul.f32.gmra.mxu2 %v675_v28  ;;  %v680_v42 = vld [vmem:[%s5600_s2 + $0x5d0] sm:$0xff]  ;;  %v693_v28 = vld [vmem:[%s5600_s2 + $0x638] sm:$0xff] }
 0x326   :  { %1305 = vmatmul.f32.gmra.mxu3 %v656_v41  ;;  %v858_v8 = vpop.f32.mrf.mxu1  ;;  %v690_v41 = vld [vmem:[%s5600_s2 + $0x620] sm:$0xff] }
 0x329   :  { %v1258_v37 = vpop.f32.mrf.mxu3 }
 0x32a   :  { %v1259_v24 = vadd.f32 %v1258_v37, %v4291_v39 }
 0x32b   :  { %1532 = vmatmul.f32.gmra.mxu0 %v681_v56 }
 0x32c   :  { %v4396_v48 = vadd.f32 %v4298_v32, %v1259_v24  ;;  %v4406_v34 = vpop.f32.mrf.mxu2  ;;  %v4413_v39 = vpop.f32.mrf.mxu0  ;;  %v695_v24 = vld [vmem:[%s5600_s2 + $0x648] sm:$0xff] }
 0x32d   :  { %902 = vmatmul.f32.gmra.mxu1 %v674_v33  ;;  %1114 = vmatmul.f32.gmra.mxu2 %v679_v12 }
 0x32e   :  { %1308 = vmatmul.f32.gmra.mxu3 %v660_v11  ;;  %v861_v25 = vpop.f32.mrf.mxu1 }
 0x331   :  { %v4408_v9 = vpop.f32.mrf.mxu3 }
 0x333   :  { %1535 = vmatmul.f32.gmra.mxu0 %v685_v4 }
 0x334   :  { %v1067_v32 = vpop.f32.mrf.mxu2  ;;  %v4429_v47 = vpop.f32.mrf.mxu0 }
 0x335   :  { %905 = vmatmul.f32.gmra.mxu1 %v678_v31  ;;  %1117 = vmatmul.f32.gmra.mxu2 %v683_v49  ;;  %v4500_v31 = vld [vmem:[%s5598_s5 + $0x8] ss:$0 sm:$0xff]  ;;  %v684_v49 = vld [vmem:[%s5600_s2 + $0x5f0] sm:$0xff] }
 0x336   :  { %1311 = vmatmul.f32.gmra.mxu3 %v664_v19  ;;  %v864_v35 = vpop.f32.mrf.mxu1  ;;  %v859_v19 = vadd.f32 %v3828_v21, %v858_v8  ;;  %v699_v8 = vld [vmem:[%s5600_s2 + $0x668] sm:$0xff]  ;;  %v853_v21 = vadd.f32 %v4500_v31, %v4376_v29 }
 0x338   :  { %v1068_v51 = vadd.f32 %v1067_v32, %v859_v19  ;;  %v847_v32 = vadd.f32 %v4500_v31, %v4330_v59  ;;  %v703_v59 = vld [vmem:[%s5600_s2 + $0x688] sm:$0xff]  ;;  %v701_v19 = vld [vmem:[%s5600_s2 + $0x678] sm:$0xff] }
 0x339   :  { %v4424_v58 = vpop.f32.mrf.mxu3 }
 0x33b   :  { %1538 = vmatmul.f32.gmra.mxu0 %v689_v38 }
 0x33c   :  { %v1070_v15 = vpop.f32.mrf.mxu2  ;;  %v4445_v6 = vpop.f32.mrf.mxu0 }
 0x33d   :  { %908 = vmatmul.f32.gmra.mxu1 %v682_v53  ;;  %1120 = vmatmul.f32.gmra.mxu2 %v687_v7  ;;  %v1065_v7 = vadd.f32 %v4406_v34, %v856_v16 }
 0x33e   :  { %1314 = vmatmul.f32.gmra.mxu3 %v668_v43  ;;  %v4466_v17 = vpop.f32.mrf.mxu1  ;;  %v862_v43 = vadd.f32 %v4500_v31, %v861_v25  ;;  %v697_v25 = vld [vmem:[%s5600_s2 + $0x658] sm:$0xff] }
 0x340   :  { %v1071_v4 = vadd.f32 %v1070_v15, %v862_v43 }
 0x341   :  { %v4440_v55 = vpop.f32.mrf.mxu3 }
 0x343   :  { %1541 = vmatmul.f32.gmra.mxu0 %v693_v28 }
 0x344   :  { %v4456_v10 = vpop.f32.mrf.mxu2  ;;  %v4461_v0 = vpop.f32.mrf.mxu0 }
 0x345   :  { %911 = vmatmul.f32.gmra.mxu1 %v686_v5  ;;  %1123 = vmatmul.f32.gmra.mxu2 %v691_v20  ;;  %v698_v5 = vld [vmem:[%s5600_s2 + $0x660] sm:$0xff] }
 0x346   :  { %1317 = vmatmul.f32.gmra.mxu3 %v672_v3  ;;  %v4484_v11 = vpop.f32.mrf.mxu1  ;;  %v850_v3 = vadd.f32 %v4500_v31, %v4354_v45  ;;  %v844_v45 = vadd.f32 %v4500_v31, %v4306_v1 }
 0x348   :  { %v1059_v15 = vadd.f32 %v4363_v22, %v850_v3 }
 0x349   :  { %v1270_v27 = vpop.f32.mrf.mxu3 }
 0x34b   :  { %1544 = vmatmul.f32.gmra.mxu0 %v697_v25  ;;  %v692_v25 = vld [vmem:[%s5600_s2 + $0x630] sm:$0xff] }
 0x34c   :  { %v4474_v50 = vpop.f32.mrf.mxu2  ;;  %v4479_v37 = vpop.f32.mrf.mxu0 }
 0x34d   :  { %914 = vmatmul.f32.gmra.mxu1 %v690_v41  ;;  %1126 = vmatmul.f32.gmra.mxu2 %v695_v24  ;;  %v688_v24 = vld [vmem:[%s5600_s2 + $0x610] sm:$0xff] }
 0x34e   :  { %1320 = vmatmul.f32.gmra.mxu3 %v676_v14  ;;  %v4513_v53 = vpop.f32.mrf.mxu1  ;;  %v1062_v14 = vadd.f32 %v4384_v23, %v853_v21  ;;  %v1056_v23 = vadd.f32 %v4339_v40, %v847_v32 }
 0x350   :  { %v1271_v1 = vadd.f32 %v1270_v27, %v1062_v14 }
 0x351   :  { %v1273_v26 = vpop.f32.mrf.mxu3 }
 0x352   :  { %v1274_v38 = vadd.f32 %v1273_v26, %v1065_v7  ;;  %v1480_v27 = vadd.f32 %v4390_v18, %v1271_v1  ;;  %v707_v18 = vld [vmem:[%s5600_s2 + $0x6a8] sm:$0xff]  ;;  %v1609_v1 = vmax.f32 %v4352_v57, 0.0 }
 0x353   :  { %1547 = vmatmul.f32.gmra.mxu0 %v701_v19  ;;  %v715_v19 = vld [vmem:[%s5600_s2 + $0x6e8] sm:$0xff] }
 0x354   :  { %v4492_v33 = vpop.f32.mrf.mxu2  ;;  %v4506_v56 = vpop.f32.mrf.mxu0  ;;  %v1483_v16 = vadd.f32 %v4413_v39, %v1274_v38  ;;  %v1611_v38 = vmax.f32 %v4396_v48, 0.0  ;;  %v710_v48 = vld [vmem:[%s5600_s2 + $0x6c0] sm:$0xff] }
 0x355   :  { %917 = vmatmul.f32.gmra.mxu1 %v694_v2  ;;  %1129 = vmatmul.f32.gmra.mxu2 %v699_v8 }
 0x356   :  { %1323 = vmatmul.f32.gmra.mxu3 %v680_v42  ;;  %v865_v42 = vadd.f32 %v4500_v31, %v864_v35  ;;  %v1053_v35 = vadd.f32 %v4315_v54, %v844_v45 }
 0x358   :  { %v1074_v40 = vadd.f32 %v4456_v10, %v865_v42  ;;  %v1262_v39 = vadd.f32 %v4408_v9, %v1053_v35  ;;  %v1616_v10 = vmax.f32 %v1483_v16, 0.0  ;;  %v1615_v9 = vmax.f32 %v1480_v27, 0.0 }
 0x359   :  { %v1276_v12 = vpop.f32.mrf.mxu3  ;;  %v1604_v27 = vmax.f32 %v4224_v60, 0.0 }
 0x35a   :  { %v1277_v20 = vadd.f32 %v1276_v12, %v1068_v51  ;;  %v4545_v26 = vpop.f32.mrf.mxu1  ;;  %v1268_v12 = vadd.f32 %v4440_v55, %v1059_v15  ;;  %v868_v51 = vadd.f32 %v4500_v31, %v4466_v17  ;;  %v705_v17 = vld [vmem:[%s5600_s2 + $0x698] sm:$0xff]  ;;  %v711_v15 = vld [vmem:[%s5600_s2 + $0x6c8] sm:$0xff] }
 0x35b   :  { %1550 = vmatmul.f32.gmra.mxu0 %v705_v17 }
 0x35c   :  { %v4524_v29 = vpop.f32.mrf.mxu2  ;;  %v4536_v28 = vpop.f32.mrf.mxu0  ;;  %v1486_v2 = vadd.f32 %v4429_v47, %v1277_v20  ;;  %v702_v47 = vld [vmem:[%s5600_s2 + $0x680] sm:$0xff]  ;;  %v1477_v8 = vadd.f32 %v4368_v44, %v1268_v12  ;;  %v1607_v12 = vmax.f32 %v4304_v46, 0.0 }
 0x35d   :  { %920 = vmatmul.f32.gmra.mxu1 %v698_v5  ;;  %1132 = vmatmul.f32.gmra.mxu2 %v703_v59  ;;  %v1610_v59 = vmax.f32 %v4374_v30, 0.0  ;;  %v874_v30 = vadd.f32 %v4500_v31, %v4513_v53  ;;  %v713_v53 = vld [vmem:[%s5600_s2 + $0x6d8] sm:$0xff]  ;;  %v714_v46 = vld [vmem:[%s5600_s2 + $0x6e0] sm:$0xff] }
 0x35e   :  { %1326 = vmatmul.f32.gmra.mxu3 %v684_v49  ;;  %v1617_v49 = vmax.f32 %v1486_v2, 0.0  ;;  %v1614_v5 = vmax.f32 %v1477_v8, 0.0 }
 0x361   :  { %v1279_v34 = vpop.f32.mrf.mxu3 }
 0x362   :  { %v1280_v41 = vadd.f32 %v1279_v34, %v1071_v4  ;;  %v1471_v4 = vadd.f32 %v4322_v36, %v1262_v39  ;;  %v871_v36 = vadd.f32 %v4500_v31, %v4484_v11  ;;  %v709_v11 = vld [vmem:[%s5600_s2 + $0x6b8] sm:$0xff]  ;;  %v719_v39 = vld [vmem:[%s5600_s2 + $0x708] sm:$0xff] }
 0x363   :  { %1553 = vmatmul.f32.gmra.mxu0 %v709_v11 }
 0x364   :  { %v1489_v22 = vadd.f32 %v4445_v6, %v1280_v41  ;;  %v4556_v54 = vpop.f32.mrf.mxu2  ;;  %v1265_v6 = vadd.f32 %v4424_v58, %v1056_v23  ;;  %v4574_v44 = vpop.f32.mrf.mxu0  ;;  %v1612_v45 = vmax.f32 %v1471_v4, 0.0  ;;  %v1080_v23 = vadd.f32 %v4492_v33, %v871_v36  ;;  %v700_v33 = vld [vmem:[%s5600_s2 + $0x670] sm:$0xff] }
 0x365   :  { %923 = vmatmul.f32.gmra.mxu1 %v702_v47  ;;  %1135 = vmatmul.f32.gmra.mxu2 %v707_v18  ;;  %v4576_v7 = vpop.f32.mrf.mxu1  ;;  %v1605_v47 = vmax.f32 %v4252_v52, 0.0  ;;  %v708_v18 = vld [vmem:[%s5600_s2 + $0x6b0] sm:$0xff] }
 0x366   :  { %v1618_v43 = vmax.f32 %v1489_v22, 0.0  ;;  %1329 = vmatmul.f32.gmra.mxu3 %v688_v24  ;;  %v1474_v58 = vadd.f32 %v4346_v13, %v1265_v6  ;;  %v1077_v13 = vadd.f32 %v4474_v50, %v868_v51  ;;  %v696_v50 = vld [vmem:[%s5600_s2 + $0x650] sm:$0xff]  ;;  %v1608_v22 = vmax.f32 %v4328_v62, 0.0 }
 0x368   :  { %1724 = vmatpush.msra.mxu2 %v1618_v43  ;;  %v1613_v14 = vmax.f32 %v1474_v58, 0.0  ;;  %v1606_v43 = vmax.f32 %v4280_v63, 0.0  ;;  %v877_v63 = vadd.f32 %v4500_v31, %v4545_v26  ;;  %v717_v26 = vld [vmem:[%s5600_s2 + $0x6f8] sm:$0xff] }
 0x369   :  { %v1282_v55 = vpop.f32.mrf.mxu3 }
 0x36a   :  { %v1283_v21 = vadd.f32 %v1282_v55, %v1074_v40  ;;  %1725 = vmatpush.msra.mxu2 %v1617_v49  ;;  %v1083_v40 = vadd.f32 %v4524_v29, %v874_v30  ;;  %v704_v29 = vld [vmem:[%s5600_s2 + $0x690] sm:$0xff]  ;;  %v1603_v55 = vmax.f32 %v4199_v61, 0.0  ;;  %v718_v61 = vld [vmem:[%s5600_s2 + $0x700] sm:$0xff] }
 0x36b   :  { %1556 = vmatmul.f32.gmra.mxu0 %v713_v53  ;;  %v730_v30 = vld [vmem:[%s5600_s2 + $0x760] sm:$0xff] }
 0x36c   :  { %v4572_v3 = vadd.f32 %v4461_v0, %v1283_v21  ;;  %1726 = vmatpush.msra.mxu2 %v1616_v10  ;;  %v706_v0 = vld [vmem:[%s5600_s2 + $0x6a0] sm:$0xff]  ;;  %v4586_v32 = vpop.f32.mrf.mxu2  ;;  %v4600_v42 = vpop.f32.mrf.mxu0  ;;  %v1086_v10 = vadd.f32 %v4556_v54, %v877_v63  ;;  %v723_v54 = vld [vmem:[%s5600_s2 + $0x728] sm:$0xff] }
 0x36d   :  { %926 = vmatmul.f32.gmra.mxu1 %v706_v0  ;;  %1138 = vmatmul.f32.gmra.mxu2 %v711_v15 }
 0x36e   :  { %1332 = vmatmul.f32.gmra.mxu3 %v692_v25  ;;  %1727 = vmatpush.msra.mxu2 %v1615_v9  ;;  %v880_v25 = vadd.f32 %v4500_v31, %v4576_v7  ;;  %v721_v7 = vld [vmem:[%s5600_s2 + $0x718] sm:$0xff] }
 0x370   :  { %1728 = vmatpush.msra.mxu2 %v1614_v5  ;;  %v1089_v4 = vadd.f32 %v4586_v32, %v880_v25  ;;  %v722_v5 = vld [vmem:[%s5600_s2 + $0x720] sm:$0xff]  ;;  %v727_v32 = vld [vmem:[%s5600_s2 + $0x748] sm:$0xff]  ;;  %v741_v25 = vld [vmem:[%s5600_s2 + $0x7b8] sm:$0xff] }
 0x371   :  { %v1285_v20 = vpop.f32.mrf.mxu3 }
 0x372   :  { %v1286_v34 = vadd.f32 %v1285_v20, %v1077_v13  ;;  %1729 = vmatpush.msra.mxu2 %v1613_v14  ;;  %v4602_v24 = vpop.f32.mrf.mxu1  ;;  %v712_v20 = vld [vmem:[%s5600_s2 + $0x6d0] sm:$0xff] }
 0x373   :  { %1559 = vmatmul.f32.gmra.mxu0 %v717_v26  ;;  %v883_v14 = vadd.f32 %v4500_v31, %v4602_v24 }
 0x374   :  { %v4598_v41 = vadd.f32 %v4479_v37, %v1286_v34  ;;  %1730 = vmatpush.msra.mxu2 %v1612_v45  ;;  %v4612_v37 = vpop.f32.mrf.mxu2  ;;  %v4628_v62 = vpop.f32.mrf.mxu0 }
 0x375   :  { %929 = vmatmul.f32.gmra.mxu1 %v710_v48  ;;  %1141 = vmatmul.f32.gmra.mxu2 %v715_v19  ;;  %v1092_v15 = vadd.f32 %v4612_v37, %v883_v14  ;;  %v731_v48 = vld [vmem:[%s5600_s2 + $0x768] sm:$0xff]  ;;  %v745_v14 = vld [vmem:[%s5600_s2 + $0x7d8] sm:$0xff] }
 0x376   :  { %1335 = vmatmul.f32.gmra.mxu3 %v696_v50  ;;  %1731 = vmatpush.msra.mxu2 %v1611_v38  ;;  %v725_v50 = vld [vmem:[%s5600_s2 + $0x738] sm:$0xff]  ;;  %v726_v38 = vld [vmem:[%s5600_s2 + $0x740] sm:$0xff] }
 0x378   :  { %1732 = vmatpush.msra.mxu2 %v1610_v59 }
 0x379   :  { %v1288_v2 = vpop.f32.mrf.mxu3 }
 0x37a   :  { %v1289_v35 = vadd.f32 %v1288_v2, %v1080_v23  ;;  %1733 = vmatpush.msra.mxu2 %v1609_v1  ;;  %v4630_v16 = vpop.f32.mrf.mxu1  ;;  %v716_v23 = vld [vmem:[%s5600_s2 + $0x6f0] sm:$0xff] }
 0x37b   :  { %1562 = vmatmul.f32.gmra.mxu0 %v721_v7  ;;  %v886_v59 = vadd.f32 %v4500_v31, %v4630_v16  ;;  %v735_v16 = vld [vmem:[%s5600_s2 + $0x788] sm:$0xff] }
 0x37c   :  { %v4626_v57 = vadd.f32 %v4506_v56, %v1289_v35  ;;  %1734 = vmatpush.msra.mxu2 %v1608_v22  ;;  %v4640_v56 = vpop.f32.mrf.mxu2  ;;  %v4656_v60 = vpop.f32.mrf.mxu0  ;;  %v729_v22 = vld [vmem:[%s5600_s2 + $0x758] sm:$0xff] }
 0x37d   :  { %932 = vmatmul.f32.gmra.mxu1 %v714_v46  ;;  %1144 = vmatmul.f32.gmra.mxu2 %v719_v39  ;;  %v1095_v35 = vadd.f32 %v4640_v56, %v886_v59  ;;  %v733_v46 = vld [vmem:[%s5600_s2 + $0x778] sm:$0xff]  ;;  %v734_v56 = vld [vmem:[%s5600_s2 + $0x780] sm:$0xff] }
 0x37e   :  { %1338 = vmatmul.f32.gmra.mxu3 %v700_v33  ;;  %1735 = vmatpush.msra.mxu2 %v1607_v12  ;;  %v737_v39 = vld [vmem:[%s5600_s2 + $0x798] sm:$0xff] }
 0x380   :  { %1736 = vmatpush.msra.mxu2 %v1606_v43 }
 0x381   :  { %v1291_v6 = vpop.f32.mrf.mxu3 }
 0x382   :  { %v1292_v49 = vadd.f32 %v1291_v6, %v1083_v40  ;;  %1737 = vmatpush.msra.mxu2 %v1605_v47  ;;  %v4658_v8 = vpop.f32.mrf.mxu1 }
 0x383   :  { %1565 = vmatmul.f32.gmra.mxu0 %v725_v50 }
 0x384   :  { %v4654_v52 = vadd.f32 %v4536_v28, %v1292_v49  ;;  %1738 = vmatpush.msra.mxu2 %v1604_v27  ;;  %v4667_v28 = vpop.f32.mrf.mxu2  ;;  %v4680_v9 = vpop.f32.mrf.mxu0  ;;  %v724_v27 = vld [vmem:[%s5600_s2 + $0x730] sm:$0xff]  ;;  %v739_v49 = vld [vmem:[%s5600_s2 + $0x7a8] sm:$0xff] }
 0x385   :  { %935 = vmatmul.f32.gmra.mxu1 %v718_v61  ;;  %1147 = vmatmul.f32.gmra.mxu2 %v723_v54  ;;  %v743_v61 = vld [vmem:[%s5600_s2 + $0x7c8] sm:$0xff] }
 0x386   :  { %1341 = vmatmul.f32.gmra.mxu3 %v704_v29  ;;  %1739 = vmatpush.msra.mxu2 %v1603_v55  ;;  %v738_v55 = vld [vmem:[%s5600_s2 + $0x7a0] sm:$0xff] }
 0x389   :  { %v1294_v21 = vpop.f32.mrf.mxu3 }
 0x38a   :  { %v1295_v51 = vadd.f32 %v1294_v21, %v1086_v10  ;;  %v4682_v17 = vpop.f32.mrf.mxu1  ;;  %v728_v10 = vld [vmem:[%s5600_s2 + $0x750] sm:$0xff] }
 0x38b   :  { %1568 = vmatmul.f32.gmra.mxu0 %v729_v22 }
 0x38c   :  { %v4678_v58 = vadd.f32 %v4574_v44, %v1295_v51  ;;  %v4691_v13 = vpop.f32.mrf.mxu2  ;;  %v4704_v34 = vpop.f32.mrf.mxu0 }
 0x38d   :  { %938 = vmatmul.f32.gmra.mxu1 %v722_v5  ;;  %1150 = vmatmul.f32.gmra.mxu2 %v727_v32  ;;  %v747_v5 = vld [vmem:[%s5600_s2 + $0x7e8] sm:$0xff] }
 0x38e   :  { %1344 = vmatmul.f32.gmra.mxu3 %v708_v18  ;;  %v742_v18 = vld [vmem:[%s5600_s2 + $0x7c0] sm:$0xff] }
 0x391   :  { %v1297_v44 = vpop.f32.mrf.mxu3 }
 0x392   :  { %v1298_v0 = vadd.f32 %v1297_v44, %v1089_v4  ;;  %v4706_v36 = vpop.f32.mrf.mxu1  ;;  %v732_v4 = vld [vmem:[%s5600_s2 + $0x770] sm:$0xff] }
 0x393   :  { %1571 = vmatmul.f32.gmra.mxu0 %v733_v46 }
 0x394   :  { %v4702_v45 = vadd.f32 %v4600_v42, %v1298_v0  ;;  %v4715_v24 = vpop.f32.mrf.mxu2  ;;  %v4728_v1 = vpop.f32.mrf.mxu0 }
 0x395   :  { %941 = vmatmul.f32.gmra.mxu1 %v726_v38  ;;  %1153 = vmatmul.f32.gmra.mxu2 %v731_v48  ;;  %v740_v48 = vld [vmem:[%s5600_s2 + $0x7b0] sm:$0xff] }
 0x396   :  { %1347 = vmatmul.f32.gmra.mxu3 %v712_v20  ;;  %v746_v20 = vld [vmem:[%s5600_s2 + $0x7e0] sm:$0xff] }
 0x399   :  { %v1300_v42 = vpop.f32.mrf.mxu3 }
 0x39a   :  { %v1301_v11 = vadd.f32 %v1300_v42, %v1092_v15  ;;  %v4730_v2 = vpop.f32.mrf.mxu1  ;;  %v736_v15 = vld [vmem:[%s5600_s2 + $0x790] sm:$0xff] }
 0x39b   :  { %1574 = vmatmul.f32.gmra.mxu0 %v737_v39 }
 0x39c   :  { %v4726_v37 = vadd.f32 %v4628_v62, %v1301_v11  ;;  %v4739_v33 = vpop.f32.mrf.mxu2  ;;  %v720_v62 = vld [vmem:[%s5600_s2 + $0x710] sm:$0xff]  ;;  %v4750_v43 = vpop.f32.mrf.mxu0  ;;  %v749_v11 = vld [vmem:[%s5600_s2 + $0x7f8] sm:$0xff] }
 0x39d   :  { %944 = vmatmul.f32.gmra.mxu1 %v730_v30  ;;  %1156 = vmatmul.f32.gmra.mxu2 %v735_v16 }
 0x39e   :  { %1350 = vmatmul.f32.gmra.mxu3 %v716_v23 }
 0x3a1   :  { %v1303_v19 = vpop.f32.mrf.mxu3 }
 0x3a2   :  { %v1304_v12 = vadd.f32 %v1303_v19, %v1095_v35  ;;  %v4752_v40 = vpop.f32.mrf.mxu1 }
 0x3a3   :  { %1577 = vmatmul.f32.gmra.mxu0 %v741_v25  ;;  %v898_v25 = vadd.f32 %v4500_v31, %v4730_v2 }
 0x3a4   :  { %v4748_v53 = vadd.f32 %v4656_v60, %v1304_v12  ;;  %v4760_v47 = vpop.f32.mrf.mxu2  ;;  %v4770_v63 = vpop.f32.mrf.mxu0  ;;  %v744_v12 = vld [vmem:[%s5600_s2 + $0x7d0] sm:$0xff] }
 0x3a5   :  { %947 = vmatmul.f32.gmra.mxu1 %v734_v56  ;;  %1159 = vmatmul.f32.gmra.mxu2 %v739_v49 }
 0x3a6   :  { %1353 = vmatmul.f32.gmra.mxu3 %v720_v62 }
 0x3a9   :  { %v4762_v6 = vpop.f32.mrf.mxu3 }
 0x3aa   :  { %v903_v29 = vpop.f32.mrf.mxu1 }
 0x3ab   :  { %1580 = vmatmul.f32.gmra.mxu0 %v745_v14  ;;  %v904_v49 = vadd.f32 %v4500_v31, %v903_v29  ;;  %v895_v29 = vadd.f32 %v4500_v31, %v4706_v36 }
 0x3ac   :  { %v1112_v60 = vpop.f32.mrf.mxu2  ;;  %v4786_v21 = vpop.f32.mrf.mxu0 }
 0x3ad   :  { %950 = vmatmul.f32.gmra.mxu1 %v738_v55  ;;  %1162 = vmatmul.f32.gmra.mxu2 %v743_v61  ;;  %v748_v55 = vld [vmem:[%s5600_s2 + $0x7f0] sm:$0xff] }
 0x3ae   :  { %1356 = vmatmul.f32.gmra.mxu3 %v724_v27 }
 0x3b1   :  { %v4778_v26 = vpop.f32.mrf.mxu3 }
 0x3b2   :  { %v906_v51 = vpop.f32.mrf.mxu1 }
 0x3b3   :  { %1583 = vmatmul.f32.gmra.mxu0 %v749_v11  ;;  %v907_v46 = vadd.f32 %v4500_v31, %v906_v51  ;;  %v1104_v11 = vadd.f32 %v4715_v24, %v895_v29  ;;  %v1624_v29 = vmax.f32 %v4702_v45, 0.0  ;;  %v1620_v45 = vmax.f32 %v4598_v41, 0.0 }
 0x3b4   :  { %v1115_v54 = vpop.f32.mrf.mxu2  ;;  %v1533_v44 = vpop.f32.mrf.mxu0 }
 0x3b5   :  { %953 = vmatmul.f32.gmra.mxu1 %v742_v18  ;;  %1165 = vmatmul.f32.gmra.mxu2 %v747_v5  ;;  %v1116_v61 = vadd.f32 %v1115_v54, %v907_v46  ;;  %v1113_v18 = vadd.f32 %v1112_v60, %v904_v49  ;;  %v1107_v54 = vadd.f32 %v4739_v33, %v898_v25 }
 0x3b6   :  { %1359 = vmatmul.f32.gmra.mxu3 %v728_v10  ;;  %v901_v10 = vadd.f32 %v4500_v31, %v4752_v40  ;;  %v892_v40 = vadd.f32 %v4500_v31, %v4682_v17 }
 0x3b9   :  { %v4794_v7 = vpop.f32.mrf.mxu3 }
 0x3ba   :  { %v909_v0 = vpop.f32.mrf.mxu1 }
 0x3bb   :  { %v910_v39 = vadd.f32 %v4500_v31, %v909_v0  ;;  %v1110_v0 = vadd.f32 %v4760_v47, %v901_v10  ;;  %v1101_v47 = vadd.f32 %v4691_v13, %v892_v40  ;;  %v1621_v40 = vmax.f32 %v4626_v57, 0.0 }
 0x3bc   :  { %v1118_v32 = vpop.f32.mrf.mxu2  ;;  %v1536_v38 = vpop.f32.mrf.mxu0 }
 0x3bd   :  { %956 = vmatmul.f32.gmra.mxu1 %v746_v20  ;;  %v1119_v51 = vadd.f32 %v1118_v32, %v910_v39  ;;  %v889_v32 = vadd.f32 %v4500_v31, %v4658_v8  ;;  %v1310_v13 = vadd.f32 %v4778_v26, %v1101_v47 }
 0x3be   :  { %1362 = vmatmul.f32.gmra.mxu3 %v732_v4 }
 0x3bf   :  { %v1098_v33 = vadd.f32 %v4667_v28, %v889_v32 }
 0x3c1   :  { %v1315_v50 = vpop.f32.mrf.mxu3  ;;  %v1307_v28 = vadd.f32 %v4762_v6, %v1098_v33 }
 0x3c2   :  { %v4811_v42 = vpop.f32.mrf.mxu1  ;;  %v1316_v46 = vadd.f32 %v1315_v50, %v1107_v54 }
 0x3c3   :  { %v1516_v10 = vadd.f32 %v4680_v9, %v1307_v28 }
 0x3c4   :  { %v4816_v59 = vpop.f32.mrf.mxu2  ;;  %v4821_v22 = vpop.f32.mrf.mxu0  ;;  %v1525_v50 = vadd.f32 %v4750_v43, %v1316_v46  ;;  %v1652_v46 = vld [vmem:[%s5601_s3 + $0x8] sm:$0xff] }
 0x3c5   :  { %5606 = vst [vmem:[#allocation2_spill] sm:$0xff] %v4816_v59  ;;  %1740 = vmatmul.f32.vlgmr.msra.gmra.mxu2 %v1652_v46  ;;  %v1669_v46 = vld [vmem:[%s5601_s3 + $0x90] sm:$0xff] }
 0x3c6   :  { %1365 = vmatmul.f32.gmra.mxu3 %v736_v15  ;;  %5607 = vst [vmem:[#allocation3_spill] sm:$0xff] %v4821_v22 }
 0x3c9   :  { %v1318_v23 = vpop.f32.mrf.mxu3 }
 0x3ca   :  { %v4823_v35 = vpop.f32.mrf.mxu1 }
 0x3cc   :  { %v4825_v30 = vpop.f32.mrf.mxu2  ;;  %v4830_v62 = vpop.f32.mrf.mxu0 }
 0x3cd   :  { %5608 = vst [vmem:[#allocation4_spill] sm:$0xff] %v4830_v62  ;;  %v1680_v62 = vld [vmem:[%s5601_s3 + $0xe8] sm:$0xff] }
 0x3ce   :  { %1368 = vmatmul.f32.gmra.mxu3 %v740_v48  ;;  %v1319_v48 = vadd.f32 %v1318_v23, %v1110_v0  ;;  %v1519_v23 = vadd.f32 %v4704_v34, %v1310_v13  ;;  %v1623_v0 = vmax.f32 %v4678_v58, 0.0  ;;  %v1619_v58 = vmax.f32 %v4572_v3, 0.0 }
 0x3d0   :  { %v1528_v49 = vadd.f32 %v4770_v63, %v1319_v48  ;;  %v1628_v43 = vmax.f32 %v1519_v23, 0.0  ;;  %v1660_v23 = vld [vmem:[%s5601_s3 + $0x48] sm:$0xff] }
 0x3d1   :  { %v1321_v19 = vpop.f32.mrf.mxu3 }
 0x3d2   :  { %v4832_v16 = vpop.f32.mrf.mxu1  ;;  %v1322_v2 = vadd.f32 %v1321_v19, %v1113_v18  ;;  %v1313_v19 = vadd.f32 %v4794_v7, %v1104_v11  ;;  %v1626_v18 = vmax.f32 %v4748_v53, 0.0  ;;  %v1622_v53 = vmax.f32 %v4654_v52, 0.0 }
 0x3d4   :  { %v4835_v27 = vpop.f32.mrf.mxu2  ;;  %v4846_v4 = vpop.f32.mrf.mxu0  ;;  %v1522_v7 = vadd.f32 %v4728_v1, %v1313_v19  ;;  %v1627_v1 = vmax.f32 %v1516_v10, 0.0  ;;  %v1661_v10 = vld [vmem:[%s5601_s3 + $0x50] sm:$0xff] }
 0x3d5   :  { %5609 = vst [vmem:[#allocation5_spill] sm:$0xff] %v4846_v4 }
 0x3d6   :  { %1371 = vmatmul.f32.gmra.mxu3 %v744_v12 }
 0x3d9   :  { %v1324_v56 = vpop.f32.mrf.mxu3 }
 0x3da   :  { %v4848_v5 = vpop.f32.mrf.mxu1  ;;  %v1325_v14 = vadd.f32 %v1324_v56, %v1116_v61  ;;  %v1531_v56 = vadd.f32 %v4786_v21, %v1322_v2  ;;  %v1629_v61 = vmax.f32 %v1522_v7, 0.0  ;;  %v1655_v7 = vld [vmem:[%s5601_s3 + $0x20] sm:$0xff] }
 0x3dc   :  { %v4858_v15 = vpop.f32.mrf.mxu2  ;;  %v1534_v36 = vadd.f32 %v1533_v44, %v1325_v14  ;;  %v4866_v39 = vpop.f32.mrf.mxu0  ;;  %v1632_v21 = vmax.f32 %v1531_v56, 0.0 }
 0x3dd   :  { %5610 = vst [vmem:[#allocation6_spill] sm:$0xff] %v4866_v39 }
 0x3de   :  { %1374 = vmatmul.f32.gmra.mxu3 %v748_v55  ;;  %v1633_v8 = vmax.f32 %v1534_v36, 0.0  ;;  %v1630_v55 = vmax.f32 %v1525_v50, 0.0 }
 0x3e1   :  { %v1327_v20 = vpop.f32.mrf.mxu3 }
 0x3e2   :  { %v1328_v60 = vadd.f32 %v1327_v20, %v1119_v51  ;;  %v4870_v44 = vpop.f32.mrf.mxu1  ;;  %v1625_v51 = vmax.f32 %v4726_v37, 0.0 }
 0x3e4   :  { %v1537_v12 = vadd.f32 %v1536_v38, %v1328_v60  ;;  %v1631_v38 = vmax.f32 %v1528_v49, 0.0  ;;  %v4876_v63 = vpop.f32.mrf.mxu2  ;;  %v4882_v25 = vpop.f32.mrf.mxu0  ;;  %v1651_v49 = vld [vmem:[%s5601_s3] sm:$0xff] }
 0x3e5   :  { %5613 = vst [vmem:[#allocation9_spill] sm:$0xff] %v4882_v25  ;;  %1699 = vmatmul.f32.vlgmr.msrb.gmra.mxu1 %v1651_v49 }
 0x3e6   :  { %v1634_v17 = vmax.f32 %v1537_v12, 0.0 }
 0x3e8   :  { %1765 = vmatpush.msra.mxu3 %v1634_v17  ;;  %v1653_v17 = vld [vmem:[%s5601_s3 + $0x10] sm:$0xff] }
 0x3e9   :  { %v4868_v24 = vpop.f32.mrf.mxu3 }
 0x3ea   :  { %5611 = vst [vmem:[#allocation7_spill] sm:$0xff] %v4868_v24  ;;  %1766 = vmatpush.msra.mxu3 %v1633_v8  ;;  %v4884_v6 = vpop.f32.mrf.mxu1  ;;  %v1656_v8 = vld [vmem:[%s5601_s3 + $0x28] sm:$0xff] }
 0x3eb   :  { %1743 = vmatmul.f32.gmra.mxu2 %v1656_v8  ;;  %v1667_v8 = vld [vmem:[%s5601_s3 + $0x80] sm:$0xff] }
 0x3ec   :  { %1767 = vmatpush.msra.mxu3 %v1632_v21  ;;  %v4887_v34 = vpop.f32.mrf.mxu2  ;;  %v4894_v14 = vpop.f32.mrf.mxu0  ;;  %v1657_v21 = vld [vmem:[%s5601_s3 + $0x30] sm:$0xff] }
 0x3ed   :  { %5615 = vst [vmem:[#allocation11_spill] sm:$0xff] %v4894_v14  ;;  %1702 = vmatmul.f32.gmra.mxu1 %v1655_v7  ;;  %v1672_v7 = vld [vmem:[%s5601_s3 + $0xa8] sm:$0xff] }
 0x3ee   :  { %1768 = vmatpush.msra.mxu3 %v1631_v38 }
 0x3f0   :  { %1769 = vmatpush.msra.mxu3 %v1630_v55 }
 0x3f1   :  { %v4880_v26 = vpop.f32.mrf.mxu3 }
 0x3f2   :  { %5612 = vst [vmem:[#allocation8_spill] sm:$0xff] %v4880_v26  ;;  %1770 = vmatpush.msra.mxu3 %v1629_v61  ;;  %v4896_v20 = vpop.f32.mrf.mxu1 }
 0x3f3   :  { %1746 = vmatmul.f32.gmra.mxu2 %v1660_v23 }
 0x3f4   :  { %1771 = vmatpush.msra.mxu3 %v1628_v43  ;;  %v4902_v54 = vpop.f32.mrf.mxu2  ;;  %v4906_v2 = vpop.f32.mrf.mxu0  ;;  %v1659_v43 = vld [vmem:[%s5601_s3 + $0x40] sm:$0xff] }
 0x3f5   :  { %1705 = vmatmul.f32.gmra.mxu1 %v1659_v43 }
 0x3f6   :  { %1772 = vmatpush.msra.mxu3 %v1627_v1 }
 0x3f8   :  { %1773 = vmatpush.msra.mxu3 %v1626_v18  ;;  %v1664_v18 = vld [vmem:[%s5601_s3 + $0x68] sm:$0xff] }
 0x3f9   :  { %v4890_v9 = vpop.f32.mrf.mxu3 }
 0x3fa   :  { %5614 = vst [vmem:[#allocation10_spill] sm:$0xff] %v4890_v9  ;;  %1774 = vmatpush.msra.mxu3 %v1625_v51  ;;  %v4908_v60 = vpop.f32.mrf.mxu1 }
 0x3fb   :  { %1749 = vmatmul.f32.gmra.mxu2 %v1664_v18 }
 0x3fc   :  { %1775 = vmatpush.msra.mxu3 %v1624_v29  ;;  %v4912_v32 = vpop.f32.mrf.mxu2  ;;  %v4914_v57 = vpop.f32.mrf.mxu0 }
 0x3fe   :  { %1776 = vmatpush.msra.mxu3 %v1623_v0  ;;  %v1665_v0 = vld [vmem:[%s5601_s3 + $0x70] sm:$0xff] }
 0x400   :  { %1777 = vmatpush.msra.mxu3 %v1622_v53 }
 0x401   :  { %v4900_v37 = vpop.f32.mrf.mxu3 }
 0x402   :  { %5616 = vst [vmem:[#allocation12_spill] sm:$0xff] %v4900_v37  ;;  %1778 = vmatpush.msra.mxu3 %v1621_v40  ;;  %v4918_v48 = vpop.f32.mrf.mxu1  ;;  %v1663_v40 = vld [vmem:[%s5601_s3 + $0x60] sm:$0xff] }
 0x403   :  { %1708 = vmatmul.f32.gmra.mxu1 %v1663_v40  ;;  %v1676_v40 = vld [vmem:[%s5601_s3 + $0xc8] sm:$0xff] }
 0x404   :  { %1779 = vmatpush.msra.mxu3 %v1620_v45  ;;  %v4920_v41 = vpop.f32.mrf.mxu2  ;;  %v4924_v3 = vpop.f32.mrf.mxu0  ;;  %v1668_v45 = vld [vmem:[%s5601_s3 + $0x88] sm:$0xff] }
 0x405   :  { %1752 = vmatmul.f32.gmra.mxu2 %v1668_v45 }
 0x406   :  { %1780 = vmatpush.msra.mxu3 %v1619_v58 }
 0x407   :  { %1781 = vmatmul.f32.vlgmr.msra.gmra.mxu3 %v1653_v17 }
 0x409   :  { %v4910_v52 = vpop.f32.mrf.mxu3 }
 0x40a   :  { %v4926_v12 = vpop.f32.mrf.mxu1 }
 0x40b   :  { %1711 = vmatmul.f32.gmra.mxu1 %v1667_v8  ;;  %v1677_v8 = vld [vmem:[%s5601_s3 + $0xd0] sm:$0xff] }
 0x40c   :  { %v4928_v47 = vpop.f32.mrf.mxu2  ;;  %v4938_v33 = vpop.f32.mrf.mxu0 }
 0x40d   :  { %1755 = vmatmul.f32.gmra.mxu2 %v1672_v7  ;;  %v1675_v7 = vld [vmem:[%s5601_s3 + $0xc0] sm:$0xff] }
 0x40f   :  { %1784 = vmatmul.f32.gmra.mxu3 %v1657_v21 }
 0x411   :  { %v4916_v11 = vpop.f32.mrf.mxu3 }
 0x412   :  { %v4940_v19 = vpop.f32.mrf.mxu1 }
 0x414   :  { %v4950_v50 = vpop.f32.mrf.mxu2  ;;  %v4955_v28 = vpop.f32.mrf.mxu0 }
 0x415   :  { %1758 = vmatmul.f32.gmra.mxu2 %v1676_v40 }
 0x417   :  { %1787 = vmatmul.f32.gmra.mxu3 %v1661_v10  ;;  %v1673_v10 = vld [vmem:[%s5601_s3 + $0xb0] sm:$0xff] }
 0x419   :  { %v4922_v36 = vpop.f32.mrf.mxu3 }
 0x41a   :  { %v945_v38 = vpop.f32.mrf.mxu1 }
 0x41c   :  { %v4968_v61 = vpop.f32.mrf.mxu2  ;;  %v4973_v1 = vpop.f32.mrf.mxu0 }
 0x41d   :  { %1761 = vmatmul.f32.gmra.mxu2 %v1680_v62  ;;  %v1679_v62 = vld [vmem:[%s5601_s3 + $0xe0] sm:$0xff] }
 0x41f   :  { %1790 = vmatmul.f32.gmra.mxu3 %v1665_v0  ;;  %v1671_v0 = vld [vmem:[%s5601_s3 + $0xa0] sm:$0xff] }
 0x420   :  { %1714 = vmatmul.f32.gmra.mxu1 %v1671_v0 }
 0x421   :  { %v4933_v56 = vpop.f32.mrf.mxu3 }
 0x422   :  { %v948_v29 = vpop.f32.mrf.mxu1 }
 0x424   :  { %v1157_v53 = vpop.f32.mrf.mxu2  ;;  %v4992_v17 = vpop.f32.mrf.mxu0 }
 0x427   :  { %1793 = vmatmul.f32.gmra.mxu3 %v1669_v46 }
 0x428   :  { %1717 = vmatmul.f32.gmra.mxu1 %v1675_v7  ;;  %v949_v7 = vadd.f32 %v4500_v31, %v948_v29  ;;  %v940_v29 = vadd.f32 %v4500_v31, %v4926_v12 }
 0x429   :  { %v4948_v13 = vpop.f32.mrf.mxu3 }
 0x42a   :  { %v951_v49 = vpop.f32.mrf.mxu1 }
 0x42b   :  { %v952_v40 = vadd.f32 %v4500_v31, %v951_v49  ;;  %v1158_v49 = vadd.f32 %v1157_v53, %v949_v7 }
 0x42c   :  { %v1160_v21 = vpop.f32.mrf.mxu2  ;;  %v1578_v43 = vpop.f32.mrf.mxu0 }
 0x42d   :  { %v1161_v25 = vadd.f32 %v1160_v21, %v952_v40 }
 0x42f   :  { %1796 = vmatmul.f32.gmra.mxu3 %v1673_v10 }
 0x430   :  { %1720 = vmatmul.f32.gmra.mxu1 %v1679_v62  ;;  %v5619_v62 = vld [vmem:[#allocation2_spill] sm:$0xff] }
 0x431   :  { %v4963_v55 = vpop.f32.mrf.mxu3 }
 0x432   :  { %v954_v18 = vpop.f32.mrf.mxu1 }
 0x433   :  { %v955_v0 = vadd.f32 %v4500_v31, %v954_v18  ;;  %v946_v18 = vadd.f32 %v4500_v31, %v945_v38 }
 0x434   :  { %v1163_v46 = vpop.f32.mrf.mxu2  ;;  %v1581_v10 = vpop.f32.mrf.mxu0 }
 0x435   :  { %v1164_v26 = vadd.f32 %v1163_v46, %v955_v0  ;;  %v1155_v46 = vadd.f32 %v4968_v61, %v946_v18 }
 0x437   :  { %1799 = vmatmul.f32.gmra.mxu3 %v1677_v8  ;;  %v1681_v8 = vld [vmem:[%s5601_s3 + $0xf0] sm:$0xff] }
 0x439   :  { %v4978_v51 = vpop.f32.mrf.mxu3 }
 0x43a   :  { %v957_v22 = vpop.f32.mrf.mxu1 }
 0x43b   :  { %v958_v24 = vadd.f32 %v4500_v31, %v957_v22  ;;  %v943_v22 = vadd.f32 %v4500_v31, %v4940_v19 }
 0x43c   :  { %v1166_v39 = vpop.f32.mrf.mxu2  ;;  %v1584_v37 = vpop.f32.mrf.mxu0 }
 0x43d   :  { %v1167_v9 = vadd.f32 %v1166_v39, %v958_v24  ;;  %v937_v39 = vadd.f32 %v4500_v31, %v4918_v48  ;;  %v1152_v24 = vadd.f32 %v4950_v50, %v943_v22 }
 0x43f   :  { %1802 = vmatmul.f32.gmra.mxu3 %v1681_v8 }
 0x441   :  { %v1363_v58 = vpop.f32.mrf.mxu3 }
 0x442   :  { %v1364_v19 = vadd.f32 %v1363_v58, %v1155_v46  ;;  %v5623_v46 = vld [vmem:[#allocation6_spill] sm:$0xff] }
 0x449   :  { %v1366_v23 = vpop.f32.mrf.mxu3 }
 0x44a   :  { %v1367_v0 = vadd.f32 %v1366_v23, %v1158_v49  ;;  %v5620_v49 = vld [vmem:[#allocation10_spill] sm:$0xff] }
 0x44c   :  { %v1576_v48 = vadd.f32 %v4992_v17, %v1367_v0 }
 0x44e   :  { %v1647_v17 = vmax.f32 %v1576_v48, 0.0  ;;  %v1658_v48 = vld [vmem:[%s5601_s3 + $0x38] sm:$0xff] }
 0x451   :  { %v1369_v45 = vpop.f32.mrf.mxu3 }
 0x452   :  { %v1370_v38 = vadd.f32 %v1369_v45, %v1161_v25  ;;  %v931_v25 = vadd.f32 %v4500_v31, %v4896_v20  ;;  %v925_v20 = vadd.f32 %v4500_v31, %v4870_v44  ;;  %v919_v44 = vadd.f32 %v4500_v31, %v4832_v16 }
 0x453   :  { %v913_v16 = vadd.f32 %v4500_v31, %v4811_v42  ;;  %v5621_v42 = vld [vmem:[#allocation9_spill] sm:$0xff] }
 0x454   :  { %v1579_v53 = vadd.f32 %v1578_v43, %v1370_v38 }
 0x455   :  { %v1122_v22 = vadd.f32 %v5619_v62, %v913_v16  ;;  %v5169_v62 = vld [vmem:[%s5603_s0 + $0x20] sm:$0xff] }
 0x456   :  { %v1648_v61 = vmax.f32 %v1579_v53, 0.0 }
 0x459   :  { %v1372_v4 = vpop.f32.mrf.mxu3 }
 0x45a   :  { %v1373_v59 = vadd.f32 %v1372_v4, %v1164_v26  ;;  %v934_v4 = vadd.f32 %v4500_v31, %v4908_v60  ;;  %v1149_v26 = vadd.f32 %v4928_v47, %v940_v29  ;;  %v1573_v47 = vadd.f32 %v4973_v1, %v1364_v19  ;;  %v5627_v19 = vld [vmem:[#allocation3_spill] sm:$0xff] }
 0x45c   :  { %v1582_v40 = vadd.f32 %v1581_v10, %v1373_v59  ;;  %v928_v59 = vadd.f32 %v4500_v31, %v4884_v6  ;;  %v1358_v60 = vadd.f32 %v4963_v55, %v1149_v26  ;;  %v922_v6 = vadd.f32 %v4500_v31, %v4848_v5 }
 0x45d   :  { %v1646_v23 = vmax.f32 %v1573_v47, 0.0  ;;  %v916_v5 = vadd.f32 %v4500_v31, %v4823_v35  ;;  %v1678_v47 = vld [vmem:[%s5601_s3 + $0xd8] sm:$0xff] }
 0x45e   :  { %v1649_v50 = vmax.f32 %v1582_v40, 0.0  ;;  %v1567_v1 = vadd.f32 %v4938_v33, %v1358_v60  ;;  %v1674_v60 = vld [vmem:[%s5601_s3 + $0xb8] sm:$0xff] }
 0x45f   :  { %v1125_v35 = vadd.f32 %v4825_v30, %v916_v5  ;;  %v5624_v30 = vld [vmem:[#allocation7_spill] sm:$0xff] }
 0x460   :  { %v1644_v45 = vmax.f32 %v1567_v1, 0.0  ;;  %v1849_v1 = vld [vmem:[%s5602_s4 + $0x10] sm:$0xff]  ;;  %v5144_v5 = vld [vmem:[%s5603_s0 + $0x8] sm:$0xff] }
 0x461   :  { %v1375_v14 = vpop.f32.mrf.mxu3 }
 0x462   :  { %v1376_v21 = vadd.f32 %v1375_v14, %v1167_v9  ;;  %v1146_v9 = vadd.f32 %v4920_v41, %v937_v39  ;;  %v1361_v14 = vadd.f32 %v4978_v51, %v1152_v24  ;;  %v1140_v41 = vadd.f32 %v4902_v54, %v931_v25  ;;  %v5625_v24 = vld [vmem:[#allocation5_spill] sm:$0xff] }
 0x463   :  { %v1134_v54 = vadd.f32 %v4876_v63, %v925_v20  ;;  %v1128_v63 = vadd.f32 %v4835_v27, %v919_v44  ;;  %v1331_v39 = vadd.f32 %v5624_v30, %v1122_v22  ;;  %v1682_v20 = vld [vmem:[%s5601_s3 + $0xf8] sm:$0xff]  ;;  %v1847_v44 = vld [vmem:[%s5602_s4] sm:$0xff]  ;;  %v5205_v30 = vld [vmem:[%s5602_s4 + $0x70] sm:$0xff] }
 0x464   :  { %v1585_v8 = vadd.f32 %v1584_v37, %v1376_v21  ;;  %v1143_v37 = vadd.f32 %v4912_v32, %v934_v4  ;;  %v1355_v51 = vadd.f32 %v4948_v13, %v1146_v9  ;;  %v1570_v58 = vadd.f32 %v4955_v28, %v1361_v14  ;;  %v1654_v14 = vld [vmem:[%s5601_s3 + $0x18] sm:$0xff] }
 0x465   :  { %v1137_v32 = vadd.f32 %v4887_v34, %v928_v59  ;;  %v1349_v13 = vadd.f32 %v4922_v36, %v1140_v41  ;;  %v1131_v34 = vadd.f32 %v4858_v15, %v922_v6  ;;  %v1343_v36 = vadd.f32 %v4910_v52, %v1134_v54  ;;  %v5617_v15 = vld [vmem:[#allocation12_spill] sm:$0xff]  ;;  %v1666_v59 = vld [vmem:[%s5601_s3 + $0x78] sm:$0xff]  ;;  %v1852_v6 = vld [vmem:[%s5602_s4 + $0x28] sm:$0xff] }
 0x466   :  { %v1650_v12 = vmax.f32 %v1585_v8, 0.0  ;;  %v1352_v55 = vadd.f32 %v4933_v56, %v1143_v37  ;;  %v1564_v28 = vadd.f32 %v4924_v3, %v1355_v51  ;;  %v1645_v43 = vmax.f32 %v1570_v58, 0.0  ;;  %v5622_v52 = vld [vmem:[#allocation8_spill] sm:$0xff]  ;;  %v1670_v37 = vld [vmem:[%s5601_s3 + $0x98] sm:$0xff]  ;;  %1959 = vmatpush.msrb.mxu3 %v1852_v6  ;;  %v5135_v54 = vld [vmem:[%s5603_s0] sm:$0xff] }
 0x467   :  { %v1346_v56 = vadd.f32 %v4916_v11, %v1137_v32  ;;  %v1558_v3 = vadd.f32 %v4906_v2, %v1349_v13  ;;  %v1340_v7 = vadd.f32 %v5617_v15, %v1131_v34  ;;  %v5618_v11 = vld [vmem:[#allocation11_spill] sm:$0xff]  ;;  %v1337_v31 = vadd.f32 %v5620_v49, %v1128_v63  ;;  %v5626_v8 = vld [vmem:[#allocation4_spill] sm:$0xff]  ;;  %v1851_v32 = vld [vmem:[%s5602_s4 + $0x20] sm:$0xff]  ;;  %v1741_v13 = vpop.f32.mrf.mxu2 }
 0x468   :  { %1806 = vmatpush.msra.mxu1 %v1650_v12  ;;  %v1561_v33 = vadd.f32 %v4914_v57, %v1352_v55  ;;  %v1643_v10 = vmax.f32 %v1564_v28, 0.0  ;;  %v1552_v27 = vadd.f32 %v5621_v42, %v1343_v36  ;;  %v1334_v2 = vadd.f32 %v5622_v52, %v1125_v35  ;;  %1918 = vmatpush.msrb.mxu2 %v1851_v32  ;;  %v1850_v55 = vld [vmem:[%s5602_s4 + $0x18] sm:$0xff]  ;;  %v5183_v42 = vld [vmem:[%s5602_s4 + $0x90] sm:$0xff] }
 0x469   :  { %v1555_v18 = vadd.f32 %v5618_v11, %v1346_v56  ;;  %v1641_v29 = vmax.f32 %v1558_v3, 0.0  ;;  %v1549_v38 = vadd.f32 %v5623_v46, %v1340_v7  ;;  %v1546_v0 = vadd.f32 %v5625_v24, %v1337_v31  ;;  %1960 = vmatpush.msrb.mxu3 %v1850_v55  ;;  %v5178_v31 = vld [vmem:[%s5602_s4 + $0xa0] sm:$0xff]  ;;  %v5197_v46 = vld [vmem:[%s5603_s0 + $0x28] sm:$0xff] }
 0x46a   :  { %1807 = vmatpush.msra.mxu1 %v1649_v50  ;;  %v1642_v57 = vmax.f32 %v1561_v33, 0.0  ;;  %v1639_v40 = vmax.f32 %v1552_v27, 0.0  ;;  %v1543_v4 = vadd.f32 %v5626_v8, %v1334_v2  ;;  %v1540_v53 = vadd.f32 %v5627_v19, %v1331_v39  ;;  %v1662_v50 = vld [vmem:[%s5601_s3 + $0x58] sm:$0xff]  ;;  %1919 = vmatpush.msrb.mxu2 %v1849_v1  ;;  %v5192_v2 = vld [vmem:[%s5602_s4 + $0x80] sm:$0xff]  ;;  %v5234_v19 = vld [vmem:[%s5603_s0 + $0x30] sm:$0xff] }
 0x46b   :  { %v1640_v21 = vmax.f32 %v1555_v18, 0.0  ;;  %v1638_v26 = vmax.f32 %v1549_v38, 0.0  ;;  %v1637_v12 = vmax.f32 %v1546_v0, 0.0  ;;  %2125 = vmatpush.msra.mxu3 %v5178_v31  ;;  %v5214_v24 = vld [vmem:[%s5602_s4 + $0x60] sm:$0xff]  ;;  %v5221_v0 = vld [vmem:[%s5602_s4 + $0x50] sm:$0xff]  ;;  %v5308_v55 = vld [vmem:[%s5602_s4 + $0x48] sm:$0xff] }
 0x46c   :  { %1808 = vmatpush.msra.mxu1 %v1648_v61  ;;  %v1636_v25 = vmax.f32 %v1543_v4, 0.0  ;;  %v1635_v9 = vmax.f32 %v1540_v53, 0.0  ;;  %v1700_v61 = vpop.f32.mrf.mxu1 }
 0x46d   :  { %v1742_v16 = vadd.f32 %v1741_v13, %v1700_v61  ;;  %2126 = vmatpush.msra.mxu3 %v5183_v42 }
 0x46e   :  { %1809 = vmatpush.msra.mxu1 %v1647_v17 }
 0x46f   :  { %v1744_v34 = vpop.f32.mrf.mxu2  ;;  %2127 = vmatpush.msra.mxu3 %v5192_v2 }
 0x470   :  { %1810 = vmatpush.msra.mxu1 %v1646_v23 }
 0x471   :  { %2128 = vmatpush.msra.mxu3 %v5205_v30 }
 0x472   :  { %1811 = vmatpush.msra.mxu1 %v1645_v43 }
 0x473   :  { %2129 = vmatpush.msra.mxu3 %v5214_v24 }
 0x474   :  { %1812 = vmatpush.msra.mxu1 %v1644_v45  ;;  %v1703_v41 = vpop.f32.mrf.mxu1  ;;  %v5153_v45 = vld [vmem:[%s5603_s0 + $0x10] sm:$0xff] }
 0x475   :  { %v1745_v7 = vadd.f32 %v1744_v34, %v1703_v41  ;;  %2130 = vmatpush.msra.mxu3 %v5221_v0  ;;  %v1848_v41 = vld [vmem:[%s5602_s4 + $0x8] sm:$0xff] }
 0x476   :  { %1813 = vmatpush.msra.mxu1 %v1643_v10  ;;  %v5160_v10 = vld [vmem:[%s5603_s0 + $0x18] sm:$0xff]  ;;  %2066 = vmatpush.msra.mxu2 %v1848_v41 }
 0x477   :  { %v1747_v63 = vpop.f32.mrf.mxu2 }
 0x478   :  { %1814 = vmatpush.msra.mxu1 %v1642_v57 }
 0x47a   :  { %1815 = vmatpush.msra.mxu1 %v1641_v29 }
 0x47c   :  { %1816 = vmatpush.msra.mxu1 %v1640_v21  ;;  %v1706_v51 = vpop.f32.mrf.mxu1 }
 0x47d   :  { %v1748_v49 = vadd.f32 %v1747_v63, %v1706_v51 }
 0x47e   :  { %1817 = vmatpush.msra.mxu1 %v1639_v40 }
 0x47f   :  { %v1750_v57 = vpop.f32.mrf.mxu2 }
 0x480   :  { %1818 = vmatpush.msra.mxu1 %v1638_v26  ;;  %v5229_v26 = vld [vmem:[%s5602_s4 + $0x40] sm:$0xff] }
 0x481   :  { %2131 = vmatpush.msra.mxu3 %v5229_v26 }
 0x482   :  { %1819 = vmatpush.msra.mxu1 %v1637_v12  ;;  %v5243_v12 = vld [vmem:[%s5602_s4 + $0x30] sm:$0xff] }
 0x483   :  { %2132 = vmatpush.msra.mxu3 %v5243_v12 }
 0x484   :  { %1820 = vmatpush.msra.mxu1 %v1636_v25  ;;  %v5111_v58 = vpop.f32.mrf.mxu1 }
 0x485   :  { %v1751_v39 = vadd.f32 %v1750_v57, %v5111_v58  ;;  %v5293_v58 = vld [vmem:[%s5602_s4 + $0x68] sm:$0xff] }
 0x486   :  { %1821 = vmatpush.msra.mxu1 %v1635_v9  ;;  %v5252_v9 = vld [vmem:[%s5602_s4 + $0xa8] sm:$0xff] }
 0x487   :  { %1822 = vmatmul.f32.vlgmr.msra.gmra.mxu1 %v1654_v14 }
 0x488   :  { %2025 = vmatpush.msrb.mxu1 %v1847_v44  ;;  %v1753_v21 = vpop.f32.mrf.mxu2  ;;  %v5316_v44 = vld [vmem:[%s5602_s4 + $0x38] sm:$0xff] }
 0x48a   :  { %v1782_v43 = vpop.f32.mrf.mxu3  ;;  %2327 = vmatpush.msra.mxu1 %v5178_v31 }
 0x48b   :  { %v1783_v36 = vadd.f32 %v1782_v43, %v1742_v16 }
 0x48c   :  { %v5113_v17 = vpop.f32.mrf.mxu1  ;;  %2328 = vmatpush.msra.mxu1 %v5183_v42 }
 0x48d   :  { %v1754_v25 = vadd.f32 %v1753_v21, %v5113_v17  ;;  %v5300_v17 = vld [vmem:[%s5602_s4 + $0x58] sm:$0xff] }
 0x48e   :  { %2329 = vmatpush.msra.mxu1 %v5192_v2 }
 0x48f   :  { %1825 = vmatmul.f32.gmra.mxu1 %v1658_v48  ;;  %v5258_v48 = vld [vmem:[%s5602_s4 + $0x98] sm:$0xff] }
 0x490   :  { %2330 = vmatpush.msra.mxu1 %v5205_v30  ;;  %v1756_v14 = vpop.f32.mrf.mxu2 }
 0x492   :  { %v1785_v33 = vpop.f32.mrf.mxu3  ;;  %2331 = vmatpush.msra.mxu1 %v5214_v24 }
 0x493   :  { %v1786_v11 = vadd.f32 %v1785_v33, %v1745_v7  ;;  %v3254_v7 = vmov 0.0  }
 0x494   :  { %2332 = vmatpush.msra.mxu1 %v5221_v0 }
 0x496   :  { %2333 = vmatpush.msra.mxu1 %v5229_v26 }
 0x497   :  { %1828 = vmatmul.f32.gmra.mxu1 %v1662_v50  ;;  %v5266_v50 = vld [vmem:[%s5602_s4 + $0x88] sm:$0xff] }
 0x498   :  { %2334 = vmatpush.msra.mxu1 %v5243_v12  ;;  %v1759_v6 = vpop.f32.mrf.mxu2 }
 0x49a   :  { %v1788_v15 = vpop.f32.mrf.mxu3 }
 0x49b   :  { %v1789_v29 = vadd.f32 %v1788_v15, %v1748_v49 }
 0x49d   :  { %v5127_v23 = vpop.f32.mrf.mxu1 }
 0x49e   :  { %v1757_v51 = vadd.f32 %v1756_v14, %v5127_v23 }
 0x49f   :  { %1831 = vmatmul.f32.gmra.mxu1 %v1666_v59 }
 0x4a0   :  { %v1762_v16 = vpop.f32.mrf.mxu2 }
 0x4a2   :  { %v1791_v27 = vpop.f32.mrf.mxu3 }
 0x4a3   :  { %v1792_v8 = vadd.f32 %v1791_v27, %v1751_v39 }
 0x4a5   :  { %v5139_v28 = vpop.f32.mrf.mxu1 }
 0x4a6   :  { %v1760_v43 = vadd.f32 %v1759_v6, %v5139_v28 }
 0x4a7   :  { %1834 = vmatmul.f32.gmra.mxu1 %v1670_v37 }
 0x4aa   :  { %v1794_v40 = vpop.f32.mrf.mxu3 }
 0x4ab   :  { %v1795_v59 = vadd.f32 %v1794_v40, %v1754_v25 }
 0x4ad   :  { %v5148_v56 = vpop.f32.mrf.mxu1 }
 0x4ae   :  { %v1763_v28 = vadd.f32 %v1762_v16, %v5148_v56  ;;  %v3083_v56 = vld [vmem:[%s5602_s4 + $0xb0] ss:$8 sm:$0x3] }
 0x4af   :  { %1837 = vmatmul.f32.gmra.mxu1 %v1674_v60 }
 0x4b2   :  { %v1797_v60 = vpop.f32.mrf.mxu3 }
 0x4b3   :  { %v1798_v32 = vadd.f32 %v1797_v60, %v1757_v51 }
 0x4b7   :  { %1840 = vmatmul.f32.gmra.mxu1 %v1678_v47  ;;  %v5273_v47 = vld [vmem:[%s5603_s0 + $0x38] sm:$0xff] }
 0x4ba   :  { %v1800_v13 = vpop.f32.mrf.mxu3 }
 0x4bb   :  { %v1801_v34 = vadd.f32 %v1800_v13, %v1760_v43 }
 0x4bf   :  { %1843 = vmatmul.f32.gmra.mxu1 %v1682_v20  ;;  %v5279_v20 = vld [vmem:[%s5602_s4 + $0x78] sm:$0xff]  ;;  %s3255_s4 = smov 64  }
 0x4c7   :  { %3100 = vmatmul.msk.f32.vlgmr.msrb.gmra.mxu1 %vm92_vm0, %v5135_v54 }
 0x4c8   :  { %2448 = vmatpush.msrb.mxu1 %v5252_v9 }
 0x4ca   :  { %2449 = vmatpush.msrb.mxu1 %v5258_v48 }
 0x4cc   :  { %2450 = vmatpush.msrb.mxu1 %v5266_v50 }
 0x4ce   :  { %2451 = vmatpush.msrb.mxu1 %v5279_v20 }
 0x4cf   :  { %3101 = vmatmul.msk.f32.gmra.mxu1 %vm92_vm0, %v5144_v5 }
 0x4d0   :  { %2452 = vmatpush.msrb.mxu1 %v5293_v58 }
 0x4d2   :  { %2453 = vmatpush.msrb.mxu1 %v5300_v17 }
 0x4d4   :  { %2454 = vmatpush.msrb.mxu1 %v5308_v55 }
 0x4d6   :  { %2455 = vmatpush.msrb.mxu1 %v5316_v44 }
 0x4d7   :  { %3102 = vmatmul.msk.f32.gmra.mxu1 %vm92_vm0, %v5153_v45 }
 0x4df   :  { %3103 = vmatmul.msk.f32.gmra.mxu1 %vm92_vm0, %v5160_v10 }
 0x4e7   :  { %3104 = vmatmul.msk.f32.gmra.mxu1 %vm92_vm0, %v5169_v62 }
 0x4ef   :  { %3105 = vmatmul.msk.f32.gmra.mxu1 %vm92_vm0, %v5197_v46 }
 0x4f7   :  { %3106 = vmatmul.msk.f32.gmra.mxu1 %vm92_vm0, %v5234_v19 }
 0x4ff   :  { %3107 = vmatmul.msk.f32.gmra.mxu1 %vm92_vm0, %v5273_v47 }
 0x504   :  { %v1823_v3 = vpop.f32.mrf.mxu1 }
 0x505   :  { %v1824_v35 = vadd.f32 %v1823_v3, %v1783_v36  ;;  %v1803_v36 = vpop.f32.mrf.mxu3 }
 0x506   :  { %v1804_v3 = vadd.f32 %v1803_v36, %v1763_v28 }
 0x507   :  { %3092 = vmatmul.msk.f32.vlgmr.msrb.gmra.mxu3 %vm1879_vm1, %v1824_v35  ;;  %3084 = vmatmul.msk.f32.vlgmr.msrb.gmra.mxu2 %vm1879_vm1, %v1824_v35 }
 0x508   :  { %2145 = vmatpush.msrb.mxu3 %v5252_v9  ;;  %2347 = vmatpush.msrb.mxu2 %v5252_v9 }
 0x50a   :  { %2146 = vmatpush.msrb.mxu3 %v5258_v48  ;;  %2348 = vmatpush.msrb.mxu2 %v5258_v48 }
 0x50c   :  { %v1826_v18 = vpop.f32.mrf.mxu1  ;;  %2147 = vmatpush.msrb.mxu3 %v5266_v50  ;;  %2349 = vmatpush.msrb.mxu2 %v5266_v50 }
 0x50d   :  { %v1827_v22 = vadd.f32 %v1826_v18, %v1786_v11 }
 0x50e   :  { %2148 = vmatpush.msrb.mxu3 %v5279_v20  ;;  %2350 = vmatpush.msrb.mxu2 %v5279_v20 }
 0x50f   :  { %3093 = vmatmul.msk.f32.gmra.mxu3 %vm1879_vm1, %v1827_v22  ;;  %3085 = vmatmul.msk.f32.gmra.mxu2 %vm1879_vm1, %v1827_v22 }
 0x510   :  { %2149 = vmatpush.msrb.mxu3 %v5293_v58  ;;  %2351 = vmatpush.msrb.mxu2 %v5293_v58 }
 0x512   :  { %2150 = vmatpush.msrb.mxu3 %v5300_v17  ;;  %2352 = vmatpush.msrb.mxu2 %v5300_v17 }
 0x514   :  { %v1829_v52 = vpop.f32.mrf.mxu1  ;;  %2151 = vmatpush.msrb.mxu3 %v5308_v55  ;;  %2353 = vmatpush.msrb.mxu2 %v5308_v55 }
 0x515   :  { %v1830_v38 = vadd.f32 %v1829_v52, %v1789_v29 }
 0x516   :  { %2152 = vmatpush.msrb.mxu3 %v5316_v44  ;;  %2354 = vmatpush.msrb.mxu2 %v5316_v44 }
 0x517   :  { %3094 = vmatmul.msk.f32.gmra.mxu3 %vm1879_vm1, %v1830_v38  ;;  %3086 = vmatmul.msk.f32.gmra.mxu2 %vm1879_vm1, %v1830_v38 }
 0x51c   :  { %v1832_v4 = vpop.f32.mrf.mxu1 }
 0x51d   :  { %v1833_v53 = vadd.f32 %v1832_v4, %v1792_v8 }
 0x51f   :  { %3095 = vmatmul.msk.f32.gmra.mxu3 %vm1879_vm1, %v1833_v53  ;;  %3087 = vmatmul.msk.f32.gmra.mxu2 %vm1879_vm1, %v1833_v53 }
 0x524   :  { %v1835_v37 = vpop.f32.mrf.mxu1 }
 0x525   :  { %v1836_v61 = vadd.f32 %v1835_v37, %v1795_v59 }
 0x527   :  { %3096 = vmatmul.msk.f32.gmra.mxu3 %vm1879_vm1, %v1836_v61  ;;  %3088 = vmatmul.msk.f32.gmra.mxu2 %vm1879_vm1, %v1836_v61 }
 0x52c   :  { %v1838_v1 = vpop.f32.mrf.mxu1 }
 0x52d   :  { %v1839_v23 = vadd.f32 %v1838_v1, %v1798_v32 }
 0x52f   :  { %3097 = vmatmul.msk.f32.gmra.mxu3 %vm1879_vm1, %v1839_v23  ;;  %3089 = vmatmul.msk.f32.gmra.mxu2 %vm1879_vm1, %v1839_v23 }
 0x534   :  { %v1841_v33 = vpop.f32.mrf.mxu1 }
 0x535   :  { %v1842_v63 = vadd.f32 %v1841_v33, %v1801_v34 }
 0x537   :  { %3098 = vmatmul.msk.f32.gmra.mxu3 %vm1879_vm1, %v1842_v63  ;;  %3090 = vmatmul.msk.f32.gmra.mxu2 %vm1879_vm1, %v1842_v63 }
 0x53c   :  { %v1844_v35 = vpop.f32.mrf.mxu1 }
 0x53d   :  { %v1845_v15 = vadd.f32 %v1844_v35, %v1804_v3 }
 0x53f   :  { %3099 = vmatmul.msk.f32.gmra.mxu3 %vm1879_vm1, %v1845_v15  ;;  %3091 = vmatmul.msk.f32.gmra.mxu2 %vm1879_vm1, %v1845_v15  ;;  %v2094_v15 = vperm.slane %v3083_v56, 1 }
 0x547   :  { %2133 = vmatmul.f32.vlgmr.msra.gmra.mxu3 %v3254_v7  ;;  %3108 = vmatmul.msk.f32.vlgmr.msra.gmra.mxu2 %vm92_vm0, %v5135_v54  ;;  %v2027_v54 = vpop.f32.mrf.mxu1 }
 0x548   :  { %2226 = vmatpush.msra.mxu3 %v5178_v31  ;;  %2529 = vmatpush.msra.mxu2 %v5178_v31 }
 0x54a   :  { %2227 = vmatpush.msra.mxu3 %v5183_v42  ;;  %2530 = vmatpush.msra.mxu2 %v5183_v42 }
 0x54c   :  { %2228 = vmatpush.msra.mxu3 %v5192_v2  ;;  %2531 = vmatpush.msra.mxu2 %v5192_v2 }
 0x54e   :  { %2229 = vmatpush.msra.mxu3 %v5205_v30  ;;  %2532 = vmatpush.msra.mxu2 %v5205_v30 }
 0x54f   :  { %2153 = vmatmul.f32.vlgmr.msrb.gmra.mxu3 %v3254_v7  ;;  %3109 = vmatmul.msk.f32.gmra.mxu2 %vm92_vm0, %v5144_v5  ;;  %v2030_v5 = vpop.f32.mrf.mxu1 }
 0x550   :  { %2230 = vmatpush.msra.mxu3 %v5214_v24  ;;  %2533 = vmatpush.msra.mxu2 %v5214_v24 }
 0x552   :  { %2231 = vmatpush.msra.mxu3 %v5221_v0  ;;  %2534 = vmatpush.msra.mxu2 %v5221_v0 }
 0x554   :  { %2232 = vmatpush.msra.mxu3 %v5229_v26  ;;  %2535 = vmatpush.msra.mxu2 %v5229_v26 }
 0x556   :  { %2233 = vmatpush.msra.mxu3 %v5243_v12  ;;  %2536 = vmatpush.msra.mxu2 %v5243_v12 }
 0x557   :  { %3110 = vmatmul.msk.f32.gmra.mxu2 %vm92_vm0, %v5153_v45  ;;  %v2093_v45 = vperm.slane %v3083_v56, 0 }
 0x558   :  { %2246 = vmatpush.msrb.mxu3 %v5252_v9 }
 0x55a   :  { %2247 = vmatpush.msrb.mxu3 %v5258_v48 }
 0x55c   :  { %2248 = vmatpush.msrb.mxu3 %v5266_v50 }
 0x55e   :  { %2249 = vmatpush.msrb.mxu3 %v5279_v20 }
 0x55f   :  { %3111 = vmatmul.msk.f32.gmra.mxu2 %vm92_vm0, %v5160_v10 }
 0x560   :  { %2250 = vmatpush.msrb.mxu3 %v5293_v58 }
 0x562   :  { %2251 = vmatpush.msrb.mxu3 %v5300_v17 }
 0x564   :  { %2252 = vmatpush.msrb.mxu3 %v5308_v55 }
 0x566   :  { %2253 = vmatpush.msrb.mxu3 %v5316_v44 }
 0x567   :  { %3112 = vmatmul.msk.f32.gmra.mxu2 %vm92_vm0, %v5169_v62  ;;  %v2033_v62 = vpop.f32.mrf.mxu1 }
 0x56f   :  { %3113 = vmatmul.msk.f32.gmra.mxu2 %vm92_vm0, %v5197_v46  ;;  %v2036_v52 = vpop.f32.mrf.mxu1 }
 0x577   :  { %3114 = vmatmul.msk.f32.gmra.mxu2 %vm92_vm0, %v5234_v19  ;;  %v2039_v40 = vpop.f32.mrf.mxu1 }
 0x57f   :  { %3115 = vmatmul.msk.f32.gmra.mxu2 %vm92_vm0, %v5273_v47  ;;  %v2042_v37 = vpop.f32.mrf.mxu1 }
 0x587   :  { %v2045_v6 = vpop.f32.mrf.mxu1 }
 0x58a   :  { %v1962_v10 = vpop.f32.mrf.mxu3  ;;  %v1921_v11 = vpop.f32.mrf.mxu2 }
 0x58b   :  { %v2028_v18 = vadd.f32 %v2027_v54, %v1921_v11 }
 0x58d   :  { %v2097_v57 = vadd.f32 %v2093_v45, %v2028_v18 }
 0x58f   :  { %v2048_v43 = vpop.f32.mrf.mxu1 }
 0x592   :  { %v1965_v22 = vpop.f32.mrf.mxu3  ;;  %v1924_v49 = vpop.f32.mrf.mxu2 }
 0x593   :  { %v2031_v27 = vadd.f32 %v2030_v5, %v1924_v49 }
 0x595   :  { %v5379_v29 = vadd.f32 %v2093_v45, %v2031_v27 }
 0x59a   :  { %v1968_v46 = vpop.f32.mrf.mxu3  ;;  %v1927_v38 = vpop.f32.mrf.mxu2 }
 0x59b   :  { %v2034_v21 = vadd.f32 %v2033_v62, %v1927_v38 }
 0x59d   :  { %v5381_v39 = vadd.f32 %v2093_v45, %v2034_v21 }
 0x5a2   :  { %v1971_v8 = vpop.f32.mrf.mxu3  ;;  %v1930_v4 = vpop.f32.mrf.mxu2 }
 0x5a3   :  { %v2037_v19 = vadd.f32 %v2036_v52, %v1930_v4 }
 0x5a5   :  { %v5383_v53 = vadd.f32 %v2093_v45, %v2037_v19 }
 0x5aa   :  { %v1974_v25 = vpop.f32.mrf.mxu3  ;;  %v1933_v14 = vpop.f32.mrf.mxu2 }
 0x5ab   :  { %v2040_v59 = vadd.f32 %v2039_v40, %v1933_v14 }
 0x5ad   :  { %v5385_v60 = vadd.f32 %v2093_v45, %v2040_v59 }
 0x5b2   :  { %v1977_v47 = vpop.f32.mrf.mxu3  ;;  %v1936_v61 = vpop.f32.mrf.mxu2 }
 0x5b3   :  { %v2043_v41 = vadd.f32 %v2042_v37, %v1936_v61 }
 0x5b5   :  { %v5387_v51 = vadd.f32 %v2093_v45, %v2043_v41 }
 0x5ba   :  { %v1980_v32 = vpop.f32.mrf.mxu3  ;;  %v1939_v1 = vpop.f32.mrf.mxu2 }
 0x5bb   :  { %v2046_v23 = vadd.f32 %v2045_v6, %v1939_v1 }
 0x5bd   :  { %v5389_v13 = vadd.f32 %v2093_v45, %v2046_v23 }
 0x5c2   :  { %v1983_v34 = vpop.f32.mrf.mxu3  ;;  %v1942_v33 = vpop.f32.mrf.mxu2 }
 0x5c3   :  { %v2049_v16 = vadd.f32 %v2048_v43, %v1942_v33 }
 0x5c5   :  { %v5391_v63 = vadd.f32 %v2093_v45, %v2049_v16 }
 0x5ca   :  { %v2134_v28 = vpop.f32.mrf.mxu3  ;;  %v2068_v36 = vpop.f32.mrf.mxu2 }
 0x5cb   :  { %v2157_v3 = vadd.f32 %v2134_v28, %v2097_v57  ;;  %v2069_v35 = vadd.f32 %v2068_v36, %v1962_v10 }
 0x5cd   :  { %v2098_v7 = vadd.f32 %v2094_v15, %v2069_v35  ;;  %v3116_v6 = vmul.f32 -1.442695, %v2157_v3 }
 0x5d2   :  { %v2154_v54 = vpop.f32.mrf.mxu3  ;;  %v2071_v5 = vpop.f32.mrf.mxu2 }
 0x5d3   :  { %v2158_v11 = vadd.f32 %v2154_v54, %v2098_v7  ;;  %v2072_v18 = vadd.f32 %v2071_v5, %v1965_v22 }
 0x5d5   :  { %3157 = vtanh.f32 %v2158_v11  ;;  %v5393_v62 = vadd.f32 %v2094_v15, %v2072_v18  ;;  %v3117_v18 = vmul.f32 -1.442695, %v2158_v11 }
 0x5d6   :  { %3159 = vpow2.f32 %v3116_v6 }
 0x5da   :  { %v2074_v49 = vpop.f32.mrf.mxu2 }
 0x5db   :  { %v3158_v27 = vpop.eup %3157  ;;  %v2075_v52 = vadd.f32 %v2074_v49, %v1968_v46 }
 0x5dc   :  { %2200 = vrot.lane.b32.xlu0 %v3158_v27, %s3255_s4 }
 0x5dd   :  { %v5396_v45 = vadd.f32 %v2094_v15, %v2075_v52 }
 0x5e2   :  { %v2077_v38 = vpop.f32.mrf.mxu2 }
 0x5e3   :  { %v2078_v57 = vadd.f32 %v2077_v38, %v1971_v8  ;;  %v3160_v8 = vpop.eup %3159 }
 0x5e4   :  { %v2165_v1 = vadd.f32 1.0, %v3160_v8 }
 0x5e5   :  { %v5398_v10 = vadd.f32 %v2094_v15, %v2078_v57 }
 0x5e6   :  { %3161 = vrcp.f32 %v2165_v1  ;;  %v2178_v16 = vand.u32 2147483648, %v2165_v1  ;;  %vm2172_vm3 = vweird.f32 %v2165_v1 }
 0x5e8   :  { %v2179_v36 = vor.u32 1.1754944e-38, %v2178_v16 }
 0x5ea   :  { %v2080_v56 = vpop.f32.mrf.mxu2 }
 0x5eb   :  { %v2081_v21 = vadd.f32 %v2080_v56, %v1974_v25 }
 0x5ec   :  { %v3162_v25 = vpop.eup %3161 }
 0x5ed   :  { %v5400_v40 = vadd.f32 %v2094_v15, %v2081_v21  ;;  %v2168_v23 = vmul.f32 %v3162_v25, %v2165_v1  ;;  %vm2173_vm2 = vweird.f32 %v3162_v25 }
 0x5ee   :  { %vm2174_vm4 = vmor %vm2172_vm3, %vm2173_vm2 }
 0x5ef   :  { %v2169_v43 = vsub.f32 1.0, %v2168_v23 }
 0x5f1   :  { %v2170_v33 = vmul.f32 %v3162_v25, %v2169_v43 }
 0x5f2   :  { %v2083_v22 = vpop.f32.mrf.mxu2 }
 0x5f3   :  { %v2084_v4 = vadd.f32 %v2083_v22, %v1977_v47  ;;  %v2171_v47 = vadd.f32 %v3162_v25, %v2170_v33 }
 0x5f5   :  { %v5402_v19 = vadd.f32 %v2094_v15, %v2084_v4  ;;  %v2175_v28 = vsel %vm2174_vm4, %v3162_v25, %v2171_v47 }
 0x5fa   :  { %v2086_v14 = vpop.f32.mrf.mxu2 }
 0x5fb   :  { %v2087_v59 = vadd.f32 %v2086_v14, %v1980_v32  ;;  %v2176_v32 = vand.u32 2147483647, %v2165_v1 }
 0x5fd   :  { %v5404_v46 = vadd.f32 %v2094_v15, %v2087_v59  ;;  %vm2177_vm5 = vcmp.eq.f32.partialorder %v2176_v32, 8.507059e+37 }
 0x5fe   :  { %v2180_v35 = vsel %vm2177_vm5, %v2179_v36, %v2175_v28 }
 0x602   :  { %v2089_v37 = vpop.f32.mrf.mxu2 }
 0x603   :  { %v2090_v61 = vadd.f32 %v2089_v37, %v1983_v34 }
 0x605   :  { %v5406_v41 = vadd.f32 %v2094_v15, %v2090_v61  ;;  %v2198_v15 = vmul.f32 0.0, %v2180_v35 }
 0x64e   :  { %v2201_v34 = vpop.permute.xlu0 %2200 }
 0x64f   :  { %v2203_v3 = vmul.f32 %v2201_v34, %v2180_v35 }
 0x651   :  { %2205 = vrot.lane.b32.xlu0 %v2203_v3, %s3255_s4 }
 0x6c3   :  { %v2206_v7 = vpop.permute.xlu0 %2205 }
 0x6c4   :  { %v5409_v54 = vadd.f32 %v2206_v7, %v2198_v15 }
 0x6c6   :  { %3163 = vtanh.f32 %v5409_v54 }
 0x6c7   :  { %3165 = vpow2.f32 %v3117_v18 }
 0x6cc   :  { %v3164_v5 = vpop.eup %3163 }
 0x6cd   :  { %2211 = vrot.lane.b32.xlu1 %v3164_v5, %s3255_s4  ;;  %v3166_v49 = vpop.eup %3165 }
 0x6ce   :  { %v2166_v27 = vadd.f32 1.0, %v3166_v49 }
 0x6d0   :  { %3167 = vrcp.f32 %v2166_v27  ;;  %v2193_v22 = vand.u32 2147483648, %v2166_v27  ;;  %vm2187_vm7 = vweird.f32 %v2166_v27  ;;  %v2191_v4 = vand.u32 2147483647, %v2166_v27 }
 0x6d2   :  { %v2194_v59 = vor.u32 1.1754944e-38, %v2193_v22  ;;  %vm2192_vm9 = vcmp.eq.f32.partialorder %v2191_v4, 8.507059e+37 }
 0x6d6   :  { %v3168_v52 = vpop.eup %3167 }
 0x6d7   :  { %v2183_v38 = vmul.f32 %v3168_v52, %v2166_v27  ;;  %vm2188_vm6 = vweird.f32 %v3168_v52 }
 0x6d8   :  { %vm2189_vm8 = vmor %vm2187_vm7, %vm2188_vm6 }
 0x6d9   :  { %v2184_v57 = vsub.f32 1.0, %v2183_v38 }
 0x6db   :  { %v2185_v56 = vmul.f32 %v3168_v52, %v2184_v57 }
 0x6dd   :  { %v2186_v21 = vadd.f32 %v3168_v52, %v2185_v56 }
 0x6df   :  { %v2190_v14 = vsel %vm2189_vm8, %v3168_v52, %v2186_v21 }
 0x6e0   :  { %v2195_v37 = vsel %vm2192_vm9, %v2194_v59, %v2190_v14 }
 0x73f   :  { %v2212_v61 = vpop.permute.xlu1 %2211 }
 0x740   :  { %v2214_v11 = vmul.f32 %v2212_v61, %v2195_v37 }
 0x742   :  { %3118 = vmatmul.msk.f32.vlgmr.msra.gmra.mxu3 %vm2113_vm10, %v2214_v11 }
 0x743   :  { %2428 = vmatpush.msra.mxu3 %v5178_v31 }
 0x745   :  { %2429 = vmatpush.msra.mxu3 %v5183_v42 }
 0x747   :  { %2430 = vmatpush.msra.mxu3 %v5192_v2 }
 0x749   :  { %2431 = vmatpush.msra.mxu3 %v5205_v30 }
 0x74a   :  { %3119 = vmatmul.msk.f32.vlgmr.msrb.gmra.mxu3 %vm2113_vm10, %v2214_v11 }
 0x74b   :  { %2432 = vmatpush.msra.mxu3 %v5214_v24 }
 0x74d   :  { %2433 = vmatpush.msra.mxu3 %v5221_v0 }
 0x74f   :  { %2434 = vmatpush.msra.mxu3 %v5229_v26 }
 0x751   :  { %2435 = vmatpush.msra.mxu3 %v5243_v12 }
 0x753   :  { %2549 = vmatpush.msrb.mxu3 %v5252_v9 }
 0x755   :  { %2550 = vmatpush.msrb.mxu3 %v5258_v48 }
 0x757   :  { %2551 = vmatpush.msrb.mxu3 %v5266_v50 }
 0x759   :  { %2552 = vmatpush.msrb.mxu3 %v5279_v20 }
 0x75b   :  { %2553 = vmatpush.msrb.mxu3 %v5293_v58 }
 0x75d   :  { %2554 = vmatpush.msrb.mxu3 %v5300_v17 }
 0x75f   :  { %2555 = vmatpush.msrb.mxu3 %v5308_v55 }
 0x761   :  { %2556 = vmatpush.msrb.mxu3 %v5316_v44 }
 0x7c5   :  { %v2235_v6 = vpop.f32.mrf.mxu3 }
 0x7c6   :  { %v2258_v8 = vadd.f32 %v2235_v6, %v5379_v29 }
 0x7c8   :  { %v3120_v43 = vmul.f32 -1.442695, %v2258_v8 }
 0x7cd   :  { %v2255_v1 = vpop.f32.mrf.mxu3 }
 0x7ce   :  { %v2259_v25 = vadd.f32 %v2255_v1, %v5393_v62 }
 0x7d0   :  { %3169 = vtanh.f32 %v2259_v25  ;;  %v3121_v38 = vmul.f32 -1.442695, %v2259_v25 }
 0x7d1   :  { %3171 = vpow2.f32 %v3120_v43 }
 0x7d6   :  { %v3170_v23 = vpop.eup %3169 }
 0x7d7   :  { %2301 = vrot.lane.b32.xlu1 %v3170_v23, %s3255_s4  ;;  %v3172_v33 = vpop.eup %3171 }
 0x7d8   :  { %v2266_v47 = vadd.f32 1.0, %v3172_v33 }
 0x7da   :  { %3173 = vrcp.f32 %v2266_v47  ;;  %v2279_v35 = vand.u32 2147483648, %v2266_v47  ;;  %vm2273_vm12 = vweird.f32 %v2266_v47  ;;  %v2277_v29 = vand.u32 2147483647, %v2266_v47 }
 0x7dc   :  { %v2280_v3 = vor.u32 1.1754944e-38, %v2279_v35  ;;  %vm2278_vm14 = vcmp.eq.f32.partialorder %v2277_v29, 8.507059e+37 }
 0x7e0   :  { %v3174_v16 = vpop.eup %3173 }
 0x7e1   :  { %v2269_v32 = vmul.f32 %v3174_v16, %v2266_v47  ;;  %vm2274_vm11 = vweird.f32 %v3174_v16 }
 0x7e2   :  { %vm2275_vm13 = vmor %vm2273_vm12, %vm2274_vm11 }
 0x7e3   :  { %v2270_v28 = vsub.f32 1.0, %v2269_v32 }
 0x7e5   :  { %v2271_v36 = vmul.f32 %v3174_v16, %v2270_v28 }
 0x7e7   :  { %v2272_v34 = vadd.f32 %v3174_v16, %v2271_v36 }
 0x7e9   :  { %v2276_v62 = vsel %vm2275_vm13, %v3174_v16, %v2272_v34 }
 0x7ea   :  { %v2281_v15 = vsel %vm2278_vm14, %v2280_v3, %v2276_v62 }
 0x7eb   :  { %v2299_v18 = vmul.f32 %v2281_v15, %v5409_v54 }
 0x849   :  { %v2302_v7 = vpop.permute.xlu1 %2301 }
 0x84a   :  { %v2304_v5 = vmul.f32 %v2302_v7, %v2281_v15 }
 0x84c   :  { %2306 = vrot.lane.b32.xlu2 %v2304_v5, %s3255_s4 }
 0x8a6   :  { %v2307_v49 = vpop.permute.xlu2 %2306 }
 0x8a7   :  { %v5436_v27 = vadd.f32 %v2307_v49, %v2299_v18 }
 0x8a9   :  { %3175 = vtanh.f32 %v5436_v27 }
 0x8aa   :  { %3177 = vpow2.f32 %v3121_v38 }
 0x8af   :  { %v3176_v52 = vpop.eup %3175 }
 0x8b0   :  { %2312 = vrot.lane.b32.xlu2 %v3176_v52, %s3255_s4  ;;  %v3178_v57 = vpop.eup %3177 }
 0x8b1   :  { %v2267_v56 = vadd.f32 1.0, %v3178_v57 }
 0x8b3   :  { %3179 = vrcp.f32 %v2267_v56  ;;  %v2294_v54 = vand.u32 2147483648, %v2267_v56  ;;  %vm2288_vm0 = vweird.f32 %v2267_v56  ;;  %v2292_v37 = vand.u32 2147483647, %v2267_v56 }
 0x8b5   :  { %v2295_v11 = vor.u32 1.1754944e-38, %v2294_v54  ;;  %vm2293_vm2 = vcmp.eq.f32.partialorder %v2292_v37, 8.507059e+37 }
 0x8b9   :  { %v3180_v21 = vpop.eup %3179 }
 0x8ba   :  { %v2284_v22 = vmul.f32 %v3180_v21, %v2267_v56  ;;  %vm2289_vm15 = vweird.f32 %v3180_v21 }
 0x8bb   :  { %vm2290_vm1 = vmor %vm2288_vm0, %vm2289_vm15 }
 0x8bc   :  { %v2285_v4 = vsub.f32 1.0, %v2284_v22 }
 0x8be   :  { %v2286_v14 = vmul.f32 %v3180_v21, %v2285_v4 }
 0x8c0   :  { %v2287_v59 = vadd.f32 %v3180_v21, %v2286_v14 }
 0x8c2   :  { %v2291_v61 = vsel %vm2290_vm1, %v3180_v21, %v2287_v59 }
 0x8c3   :  { %v2296_v8 = vsel %vm2293_vm2, %v2295_v11, %v2291_v61 }
 0x90a   :  { %v2313_v6 = vpop.permute.xlu2 %2312 }
 0x90b   :  { %v2315_v1 = vmul.f32 %v2313_v6, %v2296_v8 }
 0x90d   :  { %3122 = vmatmul.msk.f32.vlgmr.msra.gmra.mxu1 %vm2113_vm10, %v2315_v1  ;;  %3123 = vmatmul.msk.f32.vlgmr.msrb.gmra.mxu2 %vm2113_vm10, %v2315_v1 }
 0x90e   :  { %2630 = vmatpush.msra.mxu1 %v5178_v31  ;;  %2650 = vmatpush.msrb.mxu2 %v5252_v9 }
 0x910   :  { %2631 = vmatpush.msra.mxu1 %v5183_v42  ;;  %2651 = vmatpush.msrb.mxu2 %v5258_v48 }
 0x912   :  { %2632 = vmatpush.msra.mxu1 %v5192_v2  ;;  %2652 = vmatpush.msrb.mxu2 %v5266_v50 }
 0x914   :  { %2633 = vmatpush.msra.mxu1 %v5205_v30  ;;  %2653 = vmatpush.msrb.mxu2 %v5279_v20 }
 0x916   :  { %2634 = vmatpush.msra.mxu1 %v5214_v24  ;;  %2654 = vmatpush.msrb.mxu2 %v5293_v58 }
 0x918   :  { %2635 = vmatpush.msra.mxu1 %v5221_v0  ;;  %2655 = vmatpush.msrb.mxu2 %v5300_v17 }
 0x91a   :  { %2636 = vmatpush.msra.mxu1 %v5229_v26  ;;  %2656 = vmatpush.msrb.mxu2 %v5308_v55 }
 0x91c   :  { %2637 = vmatpush.msra.mxu1 %v5243_v12  ;;  %2657 = vmatpush.msrb.mxu2 %v5316_v44 }
 0x98a   :  { %v2336_v33 = vpop.f32.mrf.mxu1 }
 0x98b   :  { %v2359_v47 = vadd.f32 %v2336_v33, %v5381_v39 }
 0x98d   :  { %v3124_v16 = vmul.f32 -1.442695, %v2359_v47 }
 0x990   :  { %v2356_v25 = vpop.f32.mrf.mxu2 }
 0x991   :  { %v2360_v23 = vadd.f32 %v2356_v25, %v5396_v45 }
 0x993   :  { %3181 = vtanh.f32 %v2360_v23  ;;  %v3125_v56 = vmul.f32 -1.442695, %v2360_v23 }
 0x994   :  { %3183 = vpow2.f32 %v3124_v16 }
 0x999   :  { %v3182_v43 = vpop.eup %3181 }
 0x99a   :  { %2402 = vrot.lane.b32.xlu0 %v3182_v43, %s3255_s4  ;;  %v3184_v32 = vpop.eup %3183 }
 0x99b   :  { %v2367_v28 = vadd.f32 1.0, %v3184_v32 }
 0x99d   :  { %3185 = vrcp.f32 %v2367_v28  ;;  %v2380_v3 = vand.u32 2147483648, %v2367_v28  ;;  %vm2374_vm4 = vweird.f32 %v2367_v28  ;;  %v2378_v45 = vand.u32 2147483647, %v2367_v28 }
 0x99f   :  { %v2381_v7 = vor.u32 1.1754944e-38, %v2380_v3  ;;  %vm2379_vm6 = vcmp.eq.f32.partialorder %v2378_v45, 8.507059e+37 }
 0x9a3   :  { %v3186_v36 = vpop.eup %3185 }
 0x9a4   :  { %v2370_v34 = vmul.f32 %v3186_v36, %v2367_v28  ;;  %vm2375_vm3 = vweird.f32 %v3186_v36 }
 0x9a5   :  { %vm2376_vm5 = vmor %vm2374_vm4, %vm2375_vm3 }
 0x9a6   :  { %v2371_v35 = vsub.f32 1.0, %v2370_v34 }
 0x9a8   :  { %v2372_v29 = vmul.f32 %v3186_v36, %v2371_v35 }
 0x9aa   :  { %v2373_v62 = vadd.f32 %v3186_v36, %v2372_v29 }
 0x9ac   :  { %v2377_v15 = vsel %vm2376_vm5, %v3186_v36, %v2373_v62 }
 0x9ad   :  { %v2382_v39 = vsel %vm2379_vm6, %v2381_v7, %v2377_v15 }
 0x9ae   :  { %v2400_v49 = vmul.f32 %v2382_v39, %v5436_v27 }
 0xa0c   :  { %v2403_v5 = vpop.permute.xlu0 %2402 }
 0xa0d   :  { %v2405_v18 = vmul.f32 %v2403_v5, %v2382_v39 }
 0xa0f   :  { %2407 = vrot.lane.b32.xlu1 %v2405_v18, %s3255_s4 }
 0xa81   :  { %v2408_v52 = vpop.permute.xlu1 %2407 }
 0xa82   :  { %v5463_v38 = vadd.f32 %v2408_v52, %v2400_v49 }
 0xa84   :  { %3187 = vtanh.f32 %v5463_v38 }
 0xa85   :  { %3189 = vpow2.f32 %v3125_v56 }
 0xa8a   :  { %v3188_v57 = vpop.eup %3187 }
 0xa8b   :  { %2413 = vrot.lane.b32.xlu2 %v3188_v57, %s3255_s4  ;;  %v3190_v21 = vpop.eup %3189 }
 0xa8c   :  { %v2368_v22 = vadd.f32 1.0, %v3190_v21 }
 0xa8e   :  { %3191 = vrcp.f32 %v2368_v22  ;;  %v2395_v27 = vand.u32 2147483648, %v2368_v22  ;;  %vm2389_vm8 = vweird.f32 %v2368_v22  ;;  %v2393_v61 = vand.u32 2147483647, %v2368_v22 }
 0xa90   :  { %v2396_v6 = vor.u32 1.1754944e-38, %v2395_v27  ;;  %vm2394_vm11 = vcmp.eq.f32.partialorder %v2393_v61, 8.507059e+37 }
 0xa94   :  { %v3192_v4 = vpop.eup %3191 }
 0xa95   :  { %v2385_v14 = vmul.f32 %v3192_v4, %v2368_v22  ;;  %vm2390_vm7 = vweird.f32 %v3192_v4 }
 0xa96   :  { %vm2391_vm9 = vmor %vm2389_vm8, %vm2390_vm7 }
 0xa97   :  { %v2386_v59 = vsub.f32 1.0, %v2385_v14 }
 0xa99   :  { %v2387_v54 = vmul.f32 %v3192_v4, %v2386_v59 }
 0xa9b   :  { %v2388_v37 = vadd.f32 %v3192_v4, %v2387_v54 }
 0xa9d   :  { %v2392_v11 = vsel %vm2391_vm9, %v3192_v4, %v2388_v37 }
 0xa9e   :  { %v2397_v8 = vsel %vm2394_vm11, %v2396_v6, %v2392_v11 }
 0xae5   :  { %v2414_v1 = vpop.permute.xlu2 %2413 }
 0xae6   :  { %v2416_v25 = vmul.f32 %v2414_v1, %v2397_v8 }
 0xae8   :  { %3126 = vmatmul.msk.f32.vlgmr.msra.gmra.mxu3 %vm2113_vm10, %v2416_v25  ;;  %3127 = vmatmul.msk.f32.vlgmr.msrb.gmra.mxu1 %vm2113_vm10, %v2416_v25 }
 0xae9   :  { %2731 = vmatpush.msra.mxu3 %v5178_v31  ;;  %2751 = vmatpush.msrb.mxu1 %v5252_v9 }
 0xaeb   :  { %2732 = vmatpush.msra.mxu3 %v5183_v42  ;;  %2752 = vmatpush.msrb.mxu1 %v5258_v48 }
 0xaed   :  { %2733 = vmatpush.msra.mxu3 %v5192_v2  ;;  %2753 = vmatpush.msrb.mxu1 %v5266_v50 }
 0xaef   :  { %2734 = vmatpush.msra.mxu3 %v5205_v30  ;;  %2754 = vmatpush.msrb.mxu1 %v5279_v20 }
 0xaf1   :  { %2735 = vmatpush.msra.mxu3 %v5214_v24  ;;  %2755 = vmatpush.msrb.mxu1 %v5293_v58 }
 0xaf3   :  { %2736 = vmatpush.msra.mxu3 %v5221_v0  ;;  %2756 = vmatpush.msrb.mxu1 %v5300_v17 }
 0xaf5   :  { %2737 = vmatpush.msra.mxu3 %v5229_v26  ;;  %2757 = vmatpush.msrb.mxu1 %v5308_v55 }
 0xaf7   :  { %2738 = vmatpush.msra.mxu3 %v5243_v12  ;;  %2758 = vmatpush.msrb.mxu1 %v5316_v44 }
 0xb65   :  { %v2457_v23 = vpop.f32.mrf.mxu1 }
 0xb66   :  { %v2461_v43 = vadd.f32 %v2457_v23, %v5398_v10 }
 0xb68   :  { %3193 = vtanh.f32 %v2461_v43  ;;  %v3129_v56 = vmul.f32 -1.442695, %v2461_v43 }
 0xb6b   :  { %v2437_v47 = vpop.f32.mrf.mxu3 }
 0xb6c   :  { %v2460_v16 = vadd.f32 %v2437_v47, %v5383_v53 }
 0xb6e   :  { %v3194_v33 = vpop.eup %3193  ;;  %v3128_v32 = vmul.f32 -1.442695, %v2460_v16 }
 0xb6f   :  { %2503 = vrot.lane.b32.xlu0 %v3194_v33, %s3255_s4 }
 0xb70   :  { %3195 = vpow2.f32 %v3128_v32 }
 0xb76   :  { %v3196_v28 = vpop.eup %3195 }
 0xb77   :  { %v2468_v36 = vadd.f32 1.0, %v3196_v28 }
 0xb79   :  { %3197 = vrcp.f32 %v2468_v36  ;;  %v2481_v45 = vand.u32 2147483648, %v2468_v36  ;;  %vm2475_vm13 = vweird.f32 %v2468_v36  ;;  %v2479_v10 = vand.u32 2147483647, %v2468_v36 }
 0xb7b   :  { %v2482_v7 = vor.u32 1.1754944e-38, %v2481_v45  ;;  %vm2480_vm15 = vcmp.eq.f32.partialorder %v2479_v10, 8.507059e+37 }
 0xb7f   :  { %v3198_v34 = vpop.eup %3197 }
 0xb80   :  { %v2471_v35 = vmul.f32 %v3198_v34, %v2468_v36  ;;  %vm2476_vm12 = vweird.f32 %v3198_v34 }
 0xb81   :  { %vm2477_vm14 = vmor %vm2475_vm13, %vm2476_vm12 }
 0xb82   :  { %v2472_v29 = vsub.f32 1.0, %v2471_v35 }
 0xb84   :  { %v2473_v62 = vmul.f32 %v3198_v34, %v2472_v29 }
 0xb86   :  { %v2474_v3 = vadd.f32 %v3198_v34, %v2473_v62 }
 0xb88   :  { %v2478_v15 = vsel %vm2477_vm14, %v3198_v34, %v2474_v3 }
 0xb89   :  { %v2483_v53 = vsel %vm2480_vm15, %v2482_v7, %v2478_v15 }
 0xb8a   :  { %v2501_v18 = vmul.f32 %v2483_v53, %v5463_v38 }
 0xbe1   :  { %v2504_v5 = vpop.permute.xlu0 %2503 }
 0xbe2   :  { %v2506_v39 = vmul.f32 %v2504_v5, %v2483_v53 }
 0xbe4   :  { %2508 = vrot.lane.b32.xlu1 %v2506_v39, %s3255_s4 }
 0xc56   :  { %v2509_v49 = vpop.permute.xlu1 %2508 }
 0xc57   :  { %v5490_v52 = vadd.f32 %v2509_v49, %v2501_v18 }
 0xc59   :  { %3199 = vtanh.f32 %v5490_v52 }
 0xc5a   :  { %3201 = vpow2.f32 %v3129_v56 }
 0xc5f   :  { %v3200_v57 = vpop.eup %3199 }
 0xc60   :  { %2514 = vrot.lane.b32.xlu2 %v3200_v57, %s3255_s4  ;;  %v3202_v21 = vpop.eup %3201 }
 0xc61   :  { %v2469_v22 = vadd.f32 1.0, %v3202_v21 }
 0xc63   :  { %3203 = vrcp.f32 %v2469_v22  ;;  %v2496_v38 = vand.u32 2147483648, %v2469_v22  ;;  %vm2490_vm1 = vweird.f32 %v2469_v22  ;;  %v2494_v27 = vand.u32 2147483647, %v2469_v22 }
 0xc65   :  { %v2497_v11 = vor.u32 1.1754944e-38, %v2496_v38  ;;  %vm2495_vm3 = vcmp.eq.f32.partialorder %v2494_v27, 8.507059e+37 }
 0xc69   :  { %v3204_v4 = vpop.eup %3203 }
 0xc6a   :  { %v2486_v14 = vmul.f32 %v3204_v4, %v2469_v22  ;;  %vm2491_vm0 = vweird.f32 %v3204_v4 }
 0xc6b   :  { %vm2492_vm2 = vmor %vm2490_vm1, %vm2491_vm0 }
 0xc6c   :  { %v2487_v59 = vsub.f32 1.0, %v2486_v14 }
 0xc6e   :  { %v2488_v54 = vmul.f32 %v3204_v4, %v2487_v59 }
 0xc70   :  { %v2489_v37 = vadd.f32 %v3204_v4, %v2488_v54 }
 0xc72   :  { %v2493_v61 = vsel %vm2492_vm2, %v3204_v4, %v2489_v37 }
 0xc73   :  { %v2498_v6 = vsel %vm2495_vm3, %v2497_v11, %v2493_v61 }
 0xcba   :  { %v2515_v8 = vpop.permute.xlu2 %2514 }
 0xcbb   :  { %v2517_v1 = vmul.f32 %v2515_v8, %v2498_v6 }
 0xcbd   :  { %3130 = vmatmul.msk.f32.vlgmr.msra.gmra.mxu2 %vm2113_vm10, %v2517_v1  ;;  %3131 = vmatmul.msk.f32.vlgmr.msrb.gmra.mxu3 %vm2113_vm10, %v2517_v1 }
 0xcbe   :  { %2832 = vmatpush.msra.mxu2 %v5178_v31  ;;  %2852 = vmatpush.msrb.mxu3 %v5252_v9 }
 0xcc0   :  { %2833 = vmatpush.msra.mxu2 %v5183_v42  ;;  %2853 = vmatpush.msrb.mxu3 %v5258_v48 }
 0xcc2   :  { %2834 = vmatpush.msra.mxu2 %v5192_v2  ;;  %2854 = vmatpush.msrb.mxu3 %v5266_v50 }
 0xcc4   :  { %2835 = vmatpush.msra.mxu2 %v5205_v30  ;;  %2855 = vmatpush.msrb.mxu3 %v5279_v20 }
 0xcc6   :  { %2836 = vmatpush.msra.mxu2 %v5214_v24  ;;  %2856 = vmatpush.msrb.mxu3 %v5293_v58 }
 0xcc8   :  { %2837 = vmatpush.msra.mxu2 %v5221_v0  ;;  %2857 = vmatpush.msrb.mxu3 %v5300_v17 }
 0xcca   :  { %2838 = vmatpush.msra.mxu2 %v5229_v26  ;;  %2858 = vmatpush.msrb.mxu3 %v5308_v55 }
 0xccc   :  { %2839 = vmatpush.msra.mxu2 %v5243_v12  ;;  %2859 = vmatpush.msrb.mxu3 %v5316_v44 }
 0xd40   :  { %v2558_v31 = vpop.f32.mrf.mxu3  ;;  %v2538_v30 = vpop.f32.mrf.mxu2 }
 0xd41   :  { %v2562_v42 = vadd.f32 %v2558_v31, %v5400_v40  ;;  %v2561_v24 = vadd.f32 %v2538_v30, %v5385_v60 }
 0xd43   :  { %3205 = vtanh.f32 %v2562_v42  ;;  %v3132_v0 = vmul.f32 -1.442695, %v2561_v24  ;;  %v3133_v32 = vmul.f32 -1.442695, %v2562_v42 }
 0xd45   :  { %3207 = vpow2.f32 %v3132_v0 }
 0xd49   :  { %v3206_v2 = vpop.eup %3205 }
 0xd4a   :  { %2604 = vrot.lane.b32.xlu0 %v3206_v2, %s3255_s4 }
 0xd4b   :  { %v3208_v9 = vpop.eup %3207 }
 0xd4c   :  { %v2569_v26 = vadd.f32 1.0, %v3208_v9 }
 0xd4e   :  { %3209 = vrcp.f32 %v2569_v26  ;;  %v2582_v17 = vand.u32 2147483648, %v2569_v26  ;;  %vm2576_vm5 = vweird.f32 %v2569_v26  ;;  %v2580_v55 = vand.u32 2147483647, %v2569_v26 }
 0xd50   :  { %v2583_v40 = vor.u32 1.1754944e-38, %v2582_v17  ;;  %vm2581_vm7 = vcmp.eq.f32.partialorder %v2580_v55, 8.507059e+37 }
 0xd54   :  { %v3210_v48 = vpop.eup %3209 }
 0xd55   :  { %v2572_v50 = vmul.f32 %v3210_v48, %v2569_v26  ;;  %vm2577_vm4 = vweird.f32 %v3210_v48 }
 0xd56   :  { %vm2578_vm6 = vmor %vm2576_vm5, %vm2577_vm4 }
 0xd57   :  { %v2573_v12 = vsub.f32 1.0, %v2572_v50 }
 0xd59   :  { %v2574_v20 = vmul.f32 %v3210_v48, %v2573_v12 }
 0xd5b   :  { %v2575_v58 = vadd.f32 %v3210_v48, %v2574_v20 }
 0xd5d   :  { %v2579_v44 = vsel %vm2578_vm6, %v3210_v48, %v2575_v58 }
 0xd5e   :  { %v2584_v60 = vsel %vm2581_vm7, %v2583_v40, %v2579_v44 }
 0xd5f   :  { %v2602_v43 = vmul.f32 %v2584_v60, %v5490_v52 }
 0xdbc   :  { %v2605_v25 = vpop.permute.xlu0 %2604 }
 0xdbd   :  { %v2607_v23 = vmul.f32 %v2605_v25, %v2584_v60 }
 0xdbf   :  { %2609 = vrot.lane.b32.xlu1 %v2607_v23, %s3255_s4 }
 0xe31   :  { %v2610_v33 = vpop.permute.xlu1 %2609 }
 0xe32   :  { %v2612_v47 = vadd.f32 %v2610_v33, %v2602_v43 }
 0xe34   :  { %3211 = vtanh.f32 %v2612_v47 }
 0xe35   :  { %3213 = vpow2.f32 %v3133_v32 }
 0xe3a   :  { %v3212_v16 = vpop.eup %3211 }
 0xe3b   :  { %2615 = vrot.lane.b32.xlu2 %v3212_v16, %s3255_s4  ;;  %v3214_v28 = vpop.eup %3213 }
 0xe3c   :  { %v2570_v36 = vadd.f32 1.0, %v3214_v28 }
 0xe3e   :  { %3215 = vrcp.f32 %v2570_v36  ;;  %v2597_v45 = vand.u32 2147483648, %v2570_v36  ;;  %vm2591_vm9 = vweird.f32 %v2570_v36  ;;  %v2595_v10 = vand.u32 2147483647, %v2570_v36 }
 0xe40   :  { %v2598_v7 = vor.u32 1.1754944e-38, %v2597_v45  ;;  %vm2596_vm12 = vcmp.eq.f32.partialorder %v2595_v10, 8.507059e+37 }
 0xe44   :  { %v3216_v34 = vpop.eup %3215 }
 0xe45   :  { %v2587_v35 = vmul.f32 %v3216_v34, %v2570_v36  ;;  %vm2592_vm8 = vweird.f32 %v3216_v34 }
 0xe46   :  { %vm2593_vm11 = vmor %vm2591_vm9, %vm2592_vm8 }
 0xe47   :  { %v2588_v29 = vsub.f32 1.0, %v2587_v35 }
 0xe49   :  { %v2589_v62 = vmul.f32 %v3216_v34, %v2588_v29 }
 0xe4b   :  { %v2590_v3 = vadd.f32 %v3216_v34, %v2589_v62 }
 0xe4d   :  { %v2594_v15 = vsel %vm2593_vm11, %v3216_v34, %v2590_v3 }
 0xe4e   :  { %v2599_v5 = vsel %vm2596_vm12, %v2598_v7, %v2594_v15 }
 0xe95   :  { %v2616_v53 = vpop.permute.xlu2 %2615 }
 0xe96   :  { %v2618_v39 = vmul.f32 %v2616_v53, %v2599_v5 }
 0xe98   :  { %3134 = vmatmul.msk.f32.vlgmr.msra.gmra.mxu1 %vm2113_vm10, %v2618_v39  ;;  %3135 = vmatmul.msk.f32.vlgmr.msrb.gmra.mxu2 %vm2113_vm10, %v2618_v39 }
 0xf15   :  { %v2639_v57 = vpop.f32.mrf.mxu1 }
 0xf16   :  { %v2662_v56 = vadd.f32 %v2639_v57, %v5387_v51 }
 0xf18   :  { %v3136_v21 = vmul.f32 -1.442695, %v2662_v56 }
 0xf1b   :  { %v2659_v18 = vpop.f32.mrf.mxu2 }
 0xf1c   :  { %v2663_v49 = vadd.f32 %v2659_v18, %v5402_v19 }
 0xf1e   :  { %3217 = vtanh.f32 %v2663_v49  ;;  %v3137_v30 = vmul.f32 -1.442695, %v2663_v49 }
 0xf1f   :  { %3219 = vpow2.f32 %v3136_v21 }
 0xf24   :  { %v3218_v52 = vpop.eup %3217 }
 0xf25   :  { %2705 = vrot.lane.b32.xlu0 %v3218_v52, %s3255_s4  ;;  %v3220_v22 = vpop.eup %3219 }
 0xf26   :  { %v2670_v4 = vadd.f32 1.0, %v3220_v22 }
 0xf28   :  { %3221 = vrcp.f32 %v2670_v4  ;;  %v2683_v27 = vand.u32 2147483648, %v2670_v4  ;;  %vm2677_vm14 = vweird.f32 %v2670_v4  ;;  %v2681_v19 = vand.u32 2147483647, %v2670_v4 }
 0xf2a   :  { %v2684_v11 = vor.u32 1.1754944e-38, %v2683_v27  ;;  %vm2682_vm0 = vcmp.eq.f32.partialorder %v2681_v19, 8.507059e+37 }
 0xf2e   :  { %v3222_v14 = vpop.eup %3221 }
 0xf2f   :  { %v2673_v59 = vmul.f32 %v3222_v14, %v2670_v4  ;;  %vm2678_vm13 = vweird.f32 %v3222_v14 }
 0xf30   :  { %vm2679_vm15 = vmor %vm2677_vm14, %vm2678_vm13 }
 0xf31   :  { %v2674_v54 = vsub.f32 1.0, %v2673_v59 }
 0xf33   :  { %v2675_v37 = vmul.f32 %v3222_v14, %v2674_v54 }
 0xf35   :  { %v2676_v38 = vadd.f32 %v3222_v14, %v2675_v37 }
 0xf37   :  { %v2680_v61 = vsel %vm2679_vm15, %v3222_v14, %v2676_v38 }
 0xf38   :  { %v2685_v51 = vsel %vm2682_vm0, %v2684_v11, %v2680_v61 }
 0xf39   :  { %v2703_v1 = vmul.f32 %v2685_v51, %v2612_v47 }
 0xf97   :  { %v2706_v6 = vpop.permute.xlu0 %2705 }
 0xf98   :  { %v2708_v8 = vmul.f32 %v2706_v6, %v2685_v51 }
 0xf9a   :  { %2710 = vrot.lane.b32.xlu1 %v2708_v8, %s3255_s4 }
0x100c   :  { %v2711_v31 = vpop.permute.xlu1 %2710 }
0x100d   :  { %v2713_v42 = vadd.f32 %v2711_v31, %v2703_v1 }
0x100f   :  { %3223 = vtanh.f32 %v2713_v42 }
0x1010   :  { %3225 = vpow2.f32 %v3137_v30 }
0x1015   :  { %v3224_v2 = vpop.eup %3223 }
0x1016   :  { %2716 = vrot.lane.b32.xlu2 %v3224_v2, %s3255_s4  ;;  %v3226_v24 = vpop.eup %3225 }
0x1017   :  { %v2671_v0 = vadd.f32 1.0, %v3226_v24 }
0x1019   :  { %3227 = vrcp.f32 %v2671_v0  ;;  %v2698_v20 = vand.u32 2147483648, %v2671_v0  ;;  %vm2692_vm2 = vweird.f32 %v2671_v0  ;;  %v2696_v58 = vand.u32 2147483647, %v2671_v0 }
0x101b   :  { %v2699_v55 = vor.u32 1.1754944e-38, %v2698_v20  ;;  %vm2697_vm4 = vcmp.eq.f32.partialorder %v2696_v58, 8.507059e+37 }
0x101f   :  { %v3228_v9 = vpop.eup %3227 }
0x1020   :  { %v2688_v26 = vmul.f32 %v3228_v9, %v2671_v0  ;;  %vm2693_vm1 = vweird.f32 %v3228_v9 }
0x1021   :  { %vm2694_vm3 = vmor %vm2692_vm2, %vm2693_vm1 }
0x1022   :  { %v2689_v48 = vsub.f32 1.0, %v2688_v26 }
0x1024   :  { %v2690_v50 = vmul.f32 %v3228_v9, %v2689_v48 }
0x1026   :  { %v2691_v12 = vadd.f32 %v3228_v9, %v2690_v50 }
0x1028   :  { %v2695_v17 = vsel %vm2694_vm3, %v3228_v9, %v2691_v12 }
0x1029   :  { %v2700_v44 = vsel %vm2697_vm4, %v2699_v55, %v2695_v17  ;;  %v2929_v17 = vld [vmem:[%s5604_s6 + $0x38] sm:$0xff]  ;;  %v2928_v55 = vld [vmem:[%s5604_s6 + $0x30] sm:$0xff] }
0x102a   :  { %2951 = vmatpush.msra.mxu1 %v2929_v17 }
0x102c   :  { %2952 = vmatpush.msra.mxu1 %v2928_v55 }
0x1070   :  { %v2717_v40 = vpop.permute.xlu2 %2716 }
0x1071   :  { %v2719_v25 = vmul.f32 %v2717_v40, %v2700_v44  ;;  %v2927_v44 = vld [vmem:[%s5604_s6 + $0x28] sm:$0xff]  ;;  %v2926_v40 = vld [vmem:[%s5604_s6 + $0x20] sm:$0xff] }
0x1072   :  { %2953 = vmatpush.msra.mxu1 %v2927_v44 }
0x1073   :  { %3138 = vmatmul.msk.f32.vlgmr.msra.gmra.mxu3 %vm2113_vm10, %v2719_v25  ;;  %3139 = vmatmul.msk.f32.vlgmr.msrb.gmra.mxu1 %vm2113_vm10, %v2719_v25  ;;  %v2925_v25 = vld [vmem:[%s5604_s6 + $0x18] sm:$0xff] }
0x1074   :  { %2954 = vmatpush.msra.mxu1 %v2926_v40 }
0x1076   :  { %2955 = vmatpush.msra.mxu1 %v2925_v25 }
0x10f0   :  { %v2760_v60 = vpop.f32.mrf.mxu1 }
0x10f1   :  { %v2764_v23 = vadd.f32 %v2760_v60, %v5404_v46  ;;  %v2924_v60 = vld [vmem:[%s5604_s6 + $0x10] sm:$0xff] }
0x10f2   :  { %2956 = vmatpush.msra.mxu1 %v2924_v60 }
0x10f3   :  { %3229 = vtanh.f32 %v2764_v23  ;;  %v3141_v49 = vmul.f32 -1.442695, %v2764_v23  ;;  %v2923_v23 = vld [vmem:[%s5604_s6 + $0x8] sm:$0xff] }
0x10f4   :  { %2957 = vmatpush.msra.mxu1 %v2923_v23 }
0x10f6   :  { %v2740_v33 = vpop.f32.mrf.mxu3 }
0x10f7   :  { %v2763_v47 = vadd.f32 %v2740_v33, %v5389_v13 }
0x10f9   :  { %v3230_v43 = vpop.eup %3229  ;;  %v3140_v16 = vmul.f32 -1.442695, %v2763_v47 }
0x10fa   :  { %2806 = vrot.lane.b32.xlu0 %v3230_v43, %s3255_s4 }
0x10fb   :  { %3231 = vpow2.f32 %v3140_v16 }
0x1101   :  { %v3232_v32 = vpop.eup %3231 }
0x1102   :  { %v2771_v28 = vadd.f32 1.0, %v3232_v32 }
0x1104   :  { %3233 = vrcp.f32 %v2771_v28  ;;  %v2784_v3 = vand.u32 2147483648, %v2771_v28  ;;  %vm2778_vm6 = vweird.f32 %v2771_v28  ;;  %v2782_v46 = vand.u32 2147483647, %v2771_v28 }
0x1106   :  { %v2785_v10 = vor.u32 1.1754944e-38, %v2784_v3  ;;  %vm2783_vm8 = vcmp.eq.f32.partialorder %v2782_v46, 8.507059e+37 }
0x110a   :  { %v3234_v36 = vpop.eup %3233 }
0x110b   :  { %v2774_v34 = vmul.f32 %v3234_v36, %v2771_v28  ;;  %vm2779_vm5 = vweird.f32 %v3234_v36 }
0x110c   :  { %vm2780_vm7 = vmor %vm2778_vm6, %vm2779_vm5  ;;  %vm2964_vm6 = vcmask 195584  }
0x110d   :  { %v2775_v35 = vsub.f32 1.0, %v2774_v34  ;;  %v2922_v34 = vld [vmem:[%s5604_s6] sm:$0xff] }
0x110e   :  { %2958 = vmatpush.msra.mxu1 %v2922_v34 }
0x110f   :  { %v2776_v29 = vmul.f32 %v3234_v36, %v2775_v35  ;;  %v2932_v35 = vld [vmem:[%s5604_s6 + $0x50] sm:$0xff] }
0x1110   :  { %2981 = vmatpush.msrb.mxu2 %v2932_v35 }
0x1111   :  { %v2777_v62 = vadd.f32 %v3234_v36, %v2776_v29 }
0x1113   :  { %v2781_v45 = vsel %vm2780_vm7, %v3234_v36, %v2777_v62 }
0x1114   :  { %v2786_v13 = vsel %vm2783_vm8, %v2785_v10, %v2781_v45 }
0x1115   :  { %v2804_v5 = vmul.f32 %v2786_v13, %v2713_v42 }
0x116c   :  { %v2807_v15 = vpop.permute.xlu0 %2806 }
0x116d   :  { %v2809_v7 = vmul.f32 %v2807_v15, %v2786_v13 }
0x116f   :  { %2811 = vrot.lane.b32.xlu1 %v2809_v7, %s3255_s4 }
0x11e1   :  { %v2812_v53 = vpop.permute.xlu1 %2811 }
0x11e2   :  { %v5531_v39 = vadd.f32 %v2812_v53, %v2804_v5 }
0x11e4   :  { %3235 = vtanh.f32 %v5531_v39 }
0x11e5   :  { %3237 = vpow2.f32 %v3141_v49  ;;  %v2930_v49 = vld [vmem:[%s5604_s6 + $0x40] sm:$0xff] }
0x11ea   :  { %v3236_v18 = vpop.eup %3235 }
0x11eb   :  { %2817 = vrot.lane.b32.xlu2 %v3236_v18, %s3255_s4  ;;  %v3238_v52 = vpop.eup %3237  ;;  %v2931_v18 = vld [vmem:[%s5604_s6 + $0x48] sm:$0xff] }
0x11ec   :  { %v2772_v57 = vadd.f32 1.0, %v3238_v52  ;;  %2982 = vmatpush.msrb.mxu2 %v2931_v18  ;;  %v3154_v52 = vld [vmem:[%s5604_s6 + $0x70] ss:$0 sm:$0xff] }
0x11ee   :  { %3239 = vrcp.f32 %v2772_v57  ;;  %v2799_v59 = vand.u32 2147483648, %v2772_v57  ;;  %vm2793_vm11 = vweird.f32 %v2772_v57  ;;  %v2797_v54 = vand.u32 2147483647, %v2772_v57  ;;  %2983 = vmatpush.msrb.mxu2 %v2930_v49 }
0x11f0   :  { %v2800_v38 = vor.u32 1.1754944e-38, %v2799_v59  ;;  %vm2798_vm13 = vcmp.eq.f32.partialorder %v2797_v54, 8.507059e+37 }
0x11f4   :  { %v3240_v56 = vpop.eup %3239 }
0x11f5   :  { %v2789_v21 = vmul.f32 %v3240_v56, %v2772_v57  ;;  %vm2794_vm9 = vweird.f32 %v3240_v56 }
0x11f6   :  { %vm2795_vm12 = vmor %vm2793_vm11, %vm2794_vm9 }
0x11f7   :  { %v2790_v22 = vsub.f32 1.0, %v2789_v21  ;;  %v2935_v21 = vld [vmem:[%s5604_s6 + $0x68] sm:$0xff] }
0x11f8   :  { %3006 = vmatpush.msra.mxu3 %v2935_v21 }
0x11f9   :  { %v2791_v4 = vmul.f32 %v3240_v56, %v2790_v22  ;;  %v2934_v22 = vld [vmem:[%s5604_s6 + $0x60] sm:$0xff] }
0x11fa   :  { %3007 = vmatpush.msra.mxu3 %v2934_v22 }
0x11fb   :  { %v2792_v14 = vadd.f32 %v3240_v56, %v2791_v4  ;;  %v2933_v4 = vld [vmem:[%s5604_s6 + $0x58] sm:$0xff] }
0x11fc   :  { %3008 = vmatpush.msra.mxu3 %v2933_v4 }
0x11fd   :  { %v2796_v37 = vsel %vm2795_vm12, %v3240_v56, %v2792_v14  ;;  %v3155_v14 = vld [vmem:[%s5604_s6 + $0x71] ss:$0 sm:$0xff] }
0x11fe   :  { %v2801_v27 = vsel %vm2798_vm13, %v2800_v38, %v2796_v37  ;;  %v3156_v38 = vld [vmem:[%s5604_s6 + $0x72] ss:$0 sm:$0xff] }
0x1245   :  { %v2818_v19 = vpop.permute.xlu2 %2817 }
0x1246   :  { %v2820_v61 = vmul.f32 %v2818_v19, %v2801_v27 }
0x1248   :  { %3142 = vmatmul.msk.f32.vlgmr.msra.gmra.mxu2 %vm2113_vm10, %v2820_v61  ;;  %3143 = vmatmul.msk.f32.vlgmr.msrb.gmra.mxu3 %vm2113_vm10, %v2820_v61 }
0x12cb   :  { %v2861_v11 = vpop.f32.mrf.mxu3  ;;  %v2841_v8 = vpop.f32.mrf.mxu2 }
0x12cc   :  { %v2865_v6 = vadd.f32 %v2861_v11, %v5406_v41  ;;  %v2864_v1 = vadd.f32 %v2841_v8, %v5391_v63 }
0x12ce   :  { %3241 = vtanh.f32 %v2865_v6  ;;  %v3144_v31 = vmul.f32 -1.442695, %v2864_v1  ;;  %v3145_v32 = vmul.f32 -1.442695, %v2865_v6 }
0x12d0   :  { %3243 = vpow2.f32 %v3144_v31 }
0x12d4   :  { %v3242_v51 = vpop.eup %3241 }
0x12d5   :  { %2907 = vrot.lane.b32.xlu0 %v3242_v51, %s3255_s4 }
0x12d6   :  { %v3244_v42 = vpop.eup %3243 }
0x12d7   :  { %v2872_v2 = vadd.f32 1.0, %v3244_v42 }
0x12d9   :  { %3245 = vrcp.f32 %v2872_v2  ;;  %v2885_v48 = vand.u32 2147483648, %v2872_v2  ;;  %vm2879_vm15 = vweird.f32 %v2872_v2  ;;  %v2883_v41 = vand.u32 2147483647, %v2872_v2 }
0x12db   :  { %v2886_v12 = vor.u32 1.1754944e-38, %v2885_v48  ;;  %vm2884_vm1 = vcmp.eq.f32.partialorder %v2883_v41, 8.507059e+37 }
0x12df   :  { %v3246_v30 = vpop.eup %3245 }
0x12e0   :  { %v2875_v24 = vmul.f32 %v3246_v30, %v2872_v2  ;;  %vm2880_vm14 = vweird.f32 %v3246_v30 }
0x12e1   :  { %vm2881_vm0 = vmor %vm2879_vm15, %vm2880_vm14 }
0x12e2   :  { %v2876_v0 = vsub.f32 1.0, %v2875_v24 }
0x12e4   :  { %v2877_v9 = vmul.f32 %v3246_v30, %v2876_v0 }
0x12e6   :  { %v2878_v26 = vadd.f32 %v3246_v30, %v2877_v9 }
0x12e8   :  { %v2882_v50 = vsel %vm2881_vm0, %v3246_v30, %v2878_v26 }
0x12e9   :  { %v2887_v63 = vsel %vm2884_vm1, %v2886_v12, %v2882_v50 }
0x12ea   :  { %v2905_v43 = vmul.f32 %v2887_v63, %v5531_v39 }
0x1347   :  { %v2908_v20 = vpop.permute.xlu0 %2907 }
0x1348   :  { %v2910_v58 = vmul.f32 %v2908_v20, %v2887_v63 }
0x134a   :  { %2912 = vrot.lane.b32.xlu1 %v2910_v58, %s3255_s4 }
0x13bc   :  { %v2913_v33 = vpop.permute.xlu1 %2912 }
0x13bd   :  { %v2915_v47 = vadd.f32 %v2913_v33, %v2905_v43 }
0x13bf   :  { %3247 = vtanh.f32 %v2915_v47 }
0x13c0   :  { %3249 = vpow2.f32 %v3145_v32 }
0x13c5   :  { %v3248_v16 = vpop.eup %3247 }
0x13c6   :  { %2918 = vrot.lane.b32.xlu2 %v3248_v16, %s3255_s4  ;;  %v3250_v28 = vpop.eup %3249 }
0x13c7   :  { %v2873_v36 = vadd.f32 1.0, %v3250_v28 }
0x13c9   :  { %3251 = vrcp.f32 %v2873_v36  ;;  %v2900_v10 = vand.u32 2147483648, %v2873_v36  ;;  %vm2894_vm3 = vweird.f32 %v2873_v36  ;;  %v2898_v15 = vand.u32 2147483647, %v2873_v36 }
0x13cb   :  { %v2901_v7 = vor.u32 1.1754944e-38, %v2900_v10  ;;  %vm2899_vm5 = vcmp.eq.f32.partialorder %v2898_v15, 8.507059e+37 }
0x13cf   :  { %v3252_v29 = vpop.eup %3251 }
0x13d0   :  { %v2890_v62 = vmul.f32 %v3252_v29, %v2873_v36  ;;  %vm2895_vm2 = vweird.f32 %v3252_v29 }
0x13d1   :  { %vm2896_vm4 = vmor %vm2894_vm3, %vm2895_vm2 }
0x13d2   :  { %v2891_v3 = vsub.f32 1.0, %v2890_v62 }
0x13d4   :  { %v2892_v46 = vmul.f32 %v3252_v29, %v2891_v3 }
0x13d6   :  { %v2893_v45 = vadd.f32 %v3252_v29, %v2892_v46 }
0x13d8   :  { %v2897_v13 = vsel %vm2896_vm4, %v3252_v29, %v2893_v45 }
0x13d9   :  { %v2902_v5 = vsel %vm2899_vm5, %v2901_v7, %v2897_v13 }
0x1420   :  { %v2919_v53 = vpop.permute.xlu2 %2918 }
0x1421   :  { %v2921_v39 = vmul.f32 %v2919_v53, %v2902_v5 }
0x1423   :  { %3146 = vmatmul.msk.f32.vlgmr.msra.gmra.mxu1 %vm2113_vm10, %v2921_v39  ;;  %vm3013_vm10 = vcmask 15360  }
0x14a0   :  { %v2960_v57 = vpop.f32.mrf.mxu1 }
0x14a1   :  { %v2961_v56 = vadd.f32 %v3154_v52, %v2960_v57 }
0x14a3   :  { %3147 = vmatmul.msk.f32.vlgmr.msrb.gmra.mxu2 %vm2964_vm6, %v2961_v56 }
0x1526   :  { %v2985_v59 = vpop.f32.mrf.mxu2 }
0x1527   :  { %v2986_v54 = vadd.f32 %v3155_v14, %v2985_v59 }
0x1529   :  { %v2988_v37 = vmax.f32 %v2986_v54, 0.0 }
0x152b   :  { %3148 = vmatmul.msk.f32.vlgmr.msra.gmra.mxu3 %vm2964_vm6, %v2988_v37 }
0x15ae   :  { %v3010_v27 = vpop.f32.mrf.mxu3 }
0x15af   :  { %v3011_v19 = vadd.f32 %v3156_v38, %v3010_v27 }
0x15b1   :  { %3014 = vst.msk [vmem:[%s5605_s7] sm:$0xff] %vm3013_vm10, %v3011_v19 }

</bundles_post_ra>
